<compile_context>
chip_gen: v6e
topology: v6e:2x2x1
jax: 0.10.0
libtpu: 0.0.40
codegen_flags: <defaults>
</compile_context>

<pallas_src>
import functools
import math

import jax
import jax.numpy as jnp
from jax.experimental import pallas as pl
from jax.experimental.pallas import tpu as pltpu

NEG_SLOPE = 0.2     # GATConv default LeakyReLU slope
LN_EPS = 1e-5       # nn.LayerNorm default eps
PAD_OUT = 128       # lane-dense width for the coordinate output slab
MASK_VAL = -1e30    # additive mask for non-edges (self-loops guarantee >=1 valid)


def _spec(shape):
  nd = len(shape)
  return pl.BlockSpec(shape, lambda i: (0,) * nd)


# ----------------------------- fused kernel ---------------------------------

def _fused_forward_kernel(*refs, num_layers, num_heads, head_dim, hidden_dim):
  hh = num_heads * head_dim
  n_lrefs = 8 * num_layers
  x_ref, adjb_ref, inw_ref, inb_ref = refs[:4]
  lrefs = refs[4:4 + n_lrefs]
  (cw1_ref, cb1_ref, cw2_ref, cb2_ref,
   lw1_ref, lb1_ref, lw2_ref, lb2_ref) = refs[4 + n_lrefs:12 + n_lrefs]
  coords_ref = refs[12 + n_lrefs]
  leg_ref = refs[13 + n_lrefs]
  g_ref = refs[14 + n_lrefs]                       # VMEM scratch [N, hh]

  bf16 = jnp.bfloat16
  adj_bias = adjb_ref[...]                          # [N, N] additive mask

  # input_proj
  h = jnp.dot(x_ref[...].astype(bf16), inw_ref[...].astype(bf16),
              preferred_element_type=jnp.float32) + inb_ref[...]

  for li in range(num_layers):
    (lin_w, att_bd, proj_w, proj_b, ln_g, ln_b,
     skip_w, skip_b) = lrefs[8 * li:8 * li + 8]
    h_bf = h.astype(bf16)
    # GATConv shared linear projection (bias=False): [N, heads*head_dim]
    feat = jnp.dot(h_bf, lin_w[...].astype(bf16),
                   preferred_element_type=jnp.float32)
    feat_bf = feat.astype(bf16)
    # attention logits for ALL heads in one matmul:
    #   ad[:, 0:heads]        = <feat_h, att_src_h>
    #   ad[:, heads:2*heads]  = <feat_h, att_dst_h>
    ad = jnp.dot(feat_bf, att_bd[...].astype(bf16),
                 preferred_element_type=jnp.float32)        # [N, 2*heads]

    for hi in range(num_heads):                    # static unroll over heads
      lo = hi * head_dim
      a_src = ad[:, hi:hi + 1]                                    # [N, 1]
      a_dst = ad[:, num_heads + hi:num_heads + hi + 1]            # [N, 1]
      # scores[t, s] = leaky_relu(a_dst[t] + a_src[s]) + mask, softmax over s
      s = a_dst + jnp.transpose(a_src)                            # [N, N]
      s = jnp.where(s > 0, s, NEG_SLOPE * s)
      s = s + adj_bias
      m = jnp.max(s, axis=-1, keepdims=True)
      p = jnp.exp(s - m)
      attn = p * pl.reciprocal(jnp.sum(p, axis=-1, keepdims=True), approx=True)
      # TODO(synk): GATConv attention dropout (p=0.1) is identity at inference.
      g_ref[:, lo:lo + head_dim] = jnp.dot(
          attn.astype(bf16), feat_bf[:, lo:lo + head_dim],
          preferred_element_type=jnp.float32)

    # output_proj (GATConv bias folded into proj_b by pack_params)
    y = jnp.dot(g_ref[...].astype(bf16), proj_w[...].astype(bf16),
                preferred_element_type=jnp.float32) + proj_b[...]
    # layer_norm over the feature axis
    mu = jnp.mean(y, axis=-1, keepdims=True)
    yc = y - mu
    var = jnp.mean(yc * yc, axis=-1, keepdims=True)
    y = yc * jax.lax.rsqrt(var + LN_EPS) * ln_g[...] + ln_b[...]
    # nn.Dropout after layer_norm: identity at inference.
    if li > 0:   # skip is added AFTER layer norm (matches PyTorch forward)
      y = y + jnp.dot(h_bf, skip_w[...].astype(bf16),
                      preferred_element_type=jnp.float32) + skip_b[...]
    h = y

  # coordinate head: Linear -> ReLU -> (Dropout=id) -> Linear (zero-padded to
  # 128 lanes so the output store is lane-dense; wrapper slices [:, :2]).
  h_bf = h.astype(bf16)
  z = jnp.dot(h_bf, cw1_ref[...].astype(bf16),
              preferred_element_type=jnp.float32) + cb1_ref[...]
  z = jnp.maximum(z, 0.0)
  coords_ref[...] = jnp.dot(z.astype(bf16), cw2_ref[...].astype(bf16),
                            preferred_element_type=jnp.float32) + cb2_ref[...]

  # legality head: global mean pool (batch=None path) -> MLP -> sigmoid, [1, 1]
  hg = jnp.mean(h, axis=0, keepdims=True)                         # [1, H]
  z2 = jnp.dot(hg, lw1_ref[...], preferred_element_type=jnp.float32) + lb1_ref[...]
  z2 = jnp.maximum(z2, 0.0)
  leg = jnp.dot(z2, lw2_ref[...], preferred_element_type=jnp.float32) + lb2_ref[...]
  leg_ref[...] = jax.nn.sigmoid(leg)


# ----------------------------- wrapper ---------------------------------------

def floorplan_gnn_forward(x, adj_bias, packed, *, num_layers, num_heads,
                          head_dim, hidden_dim):
  n = x.shape[0]
  hh = num_heads * head_dim
  args = [x, adj_bias, packed["input_proj_w"], packed["input_proj_b"]]
  for lp in packed["layers"]:
    args += [lp["lin_w"], lp["att_bd"], lp["proj_w"], lp["proj_b"],
             lp["ln_g"], lp["ln_b"], lp["skip_w"], lp["skip_b"]]
  args += [packed["coord_w1"], packed["coord_b1"],
           packed["coord_w2p"], packed["coord_b2p"],
           packed["leg_w1"], packed["leg_b1"],
           packed["leg_w2"], packed["leg_b2"]]

  coords_pad, leg = pl.pallas_call(
      functools.partial(_fused_forward_kernel, num_layers=num_layers,
                        num_heads=num_heads, head_dim=head_dim,
                        hidden_dim=hidden_dim),
      grid_spec=pltpu.PrefetchScalarGridSpec(
          num_scalar_prefetch=0,
          grid=(1,),
          in_specs=[_spec(a.shape) for a in args],
          out_specs=[_spec((n, PAD_OUT)), _spec((1, 1))],
          scratch_shapes=[pltpu.VMEM((n, hh), jnp.float32)]),
      out_shape=(jax.ShapeDtypeStruct((n, PAD_OUT), jnp.float32),
                 jax.ShapeDtypeStruct((1, 1), jnp.float32)),
      compiler_params=pltpu.CompilerParams(
          dimension_semantics=("arbitrary",)),
  )(*args)

  coordinates = coords_pad[:, :2]
  legality = jnp.broadcast_to(leg, (n, 1))
  return coordinates, legality


# ----------------------------- params ----------------------------------------

def _xavier(key, shape):
  fan_in, fan_out = shape
  bound = math.sqrt(6.0 / (fan_in + fan_out))
  return jax.random.uniform(key, shape, jnp.float32, -bound, bound)


def init_params(key, node_dim, hidden_dim, num_layers, num_heads):
  head_dim = max(8, hidden_dim // num_heads)
  hh = num_heads * head_dim
  keys = iter(jax.random.split(key, 8 + 8 * num_layers))
  params = {
      "input_proj_w": _xavier(next(keys), (node_dim, hidden_dim)),
      "input_proj_b": jnp.zeros((1, hidden_dim), jnp.float32),
      "layers": [],
  }
  for _ in range(num_layers):
    params["layers"].append({
        "lin_w":   _xavier(next(keys), (hidden_dim, hh)),   # GATConv.lin (no bias)
        "att_src": _xavier(next(keys), (num_heads, head_dim)),
        "att_dst": _xavier(next(keys), (num_heads, head_dim)),
        "gat_b":   jnp.zeros((1, hh), jnp.float32),          # GATConv.bias
        "proj_w":  _xavier(next(keys), (hh, hidden_dim)),     # output_proj
        "proj_b":  jnp.zeros((1, hidden_dim), jnp.float32),
        "ln_g":    jnp.ones((1, hidden_dim), jnp.float32),
        "ln_b":    jnp.zeros((1, hidden_dim), jnp.float32),
        "skip_w":  _xavier(next(keys), (hidden_dim, hidden_dim)),
        "skip_b":  jnp.zeros((1, hidden_dim), jnp.float32),
    })
  params["coord_w1"] = _xavier(next(keys), (hidden_dim, hidden_dim // 2))
  params["coord_b1"] = jnp.zeros((1, hidden_dim // 2), jnp.float32)
  params["coord_w2"] = _xavier(next(keys), (hidden_dim // 2, 2))
  params["coord_b2"] = jnp.zeros((1, 2), jnp.float32)
  params["leg_w1"] = _xavier(next(keys), (hidden_dim, hidden_dim // 4))
  params["leg_b1"] = jnp.zeros((1, hidden_dim // 4), jnp.float32)
  params["leg_w2"] = _xavier(next(keys), (hidden_dim // 4, 1))
  params["leg_b2"] = jnp.zeros((1, 1), jnp.float32)
  return params, head_dim


def pack_params(raw, *, num_heads, head_dim):
  """Kernel-facing layout: block-diag att, folded GAT bias, padded coord w2."""
  hh = num_heads * head_dim
  packed = {"input_proj_w": raw["input_proj_w"],
            "input_proj_b": raw["input_proj_b"], "layers": []}
  for lp in raw["layers"]:
    att_bd = jnp.zeros((hh, 2 * num_heads), jnp.float32)
    for h in range(num_heads):
      lo = h * head_dim
      att_bd = att_bd.at[lo:lo + head_dim, h].set(lp["att_src"][h])
      att_bd = att_bd.at[lo:lo + head_dim, num_heads + h].set(lp["att_dst"][h])
    proj_b_eff = lp["gat_b"] @ lp["proj_w"] + lp["proj_b"]   # fold GATConv bias
    packed["layers"].append({
        "lin_w": lp["lin_w"], "att_bd": att_bd,
        "proj_w": lp["proj_w"], "proj_b": proj_b_eff,
        "ln_g": lp["ln_g"], "ln_b": lp["ln_b"],
        "skip_w": lp["skip_w"], "skip_b": lp["skip_b"],
    })
  packed["coord_w1"] = raw["coord_w1"]
  packed["coord_b1"] = raw["coord_b1"]
  packed["coord_w2p"] = jnp.zeros((raw["coord_w2"].shape[0], PAD_OUT),
                                  jnp.float32).at[:, :2].set(raw["coord_w2"])
  packed["coord_b2p"] = jnp.zeros((1, PAD_OUT),
                                  jnp.float32).at[:, :2].set(raw["coord_b2"])
  packed["leg_w1"] = raw["leg_w1"]
  packed["leg_b1"] = raw["leg_b1"]
  packed["leg_w2"] = raw["leg_w2"]
  packed["leg_b2"] = raw["leg_b2"]
  return packed


# ----------------------------- main -------------------------------------------

if __name__ == "__main__":
  NODE_DIM, HIDDEN_DIM, NUM_LAYERS, NUM_HEADS = 64, 128, 2, 8
  N_NODES, N_EDGES = 32, 96

  root = jax.random.PRNGKey(0)
  k_param, k_x, k_src, k_dst = jax.random.split(root, 4)

  raw_params, head_dim = init_params(k_param, NODE_DIM, HIDDEN_DIM,
                                     NUM_LAYERS, NUM_HEADS)
  params = pack_params(raw_params, num_heads=NUM_HEADS, head_dim=head_dim)

  # graph_data
  x = jax.random.normal(k_x, (N_NODES, NODE_DIM), jnp.float32)
  src = jax.random.randint(k_src, (N_EDGES,), 0, N_NODES)
  dst = jax.random.randint(k_dst, (N_EDGES,), 0, N_NODES)
  edge_index = jnp.stack([src, dst])          # [2, num_edges] (PyG convention)

  # additive attention mask adj_bias[target, source]: 0 for edges (incl.
  # self-loops, GATConv add_self_loops=True), -1e30 otherwise.
  # TODO(synk): sparse edge_index -> dense mask scatter is done in plain JAX.
  adj_bias = jnp.full((N_NODES, N_NODES), MASK_VAL, jnp.float32)
  adj_bias = adj_bias.at[edge_index[1], edge_index[0]].set(0.0)
  diag = jnp.arange(N_NODES)
  adj_bias = adj_bias.at[diag, diag].set(0.0)

  fwd = jax.jit(functools.partial(floorplan_gnn_forward,
                                  num_layers=NUM_LAYERS, num_heads=NUM_HEADS,
                                  head_dim=head_dim, hidden_dim=HIDDEN_DIM))
  coordinates, legality = fwd(x, adj_bias, params)
  jax.block_until_ready((coordinates, legality))

  assert coordinates.shape == (N_NODES, 2)
  assert legality.shape == (N_NODES, 1)
  assert bool(jnp.all(jnp.isfinite(coordinates)))
  assert bool(jnp.all((legality >= 0.0) & (legality <= 1.0)))
  print("KERNEL_OK")
</pallas_src>

<mosaic_0001>
module attributes {stable_mosaic.version = 11 : i64} {
  func.func @_fused_forward_kernel(%arg0: i32, %arg1: memref<32x64xf32, #tpu.memory_space<vmem>>, %arg2: memref<32x32xf32, #tpu.memory_space<vmem>>, %arg3: memref<64x128xf32, #tpu.memory_space<vmem>>, %arg4: memref<1x128xf32, #tpu.memory_space<vmem>>, %arg5: memref<128x128xf32, #tpu.memory_space<vmem>>, %arg6: memref<128x16xf32, #tpu.memory_space<vmem>>, %arg7: memref<128x128xf32, #tpu.memory_space<vmem>>, %arg8: memref<1x128xf32, #tpu.memory_space<vmem>>, %arg9: memref<1x128xf32, #tpu.memory_space<vmem>>, %arg10: memref<1x128xf32, #tpu.memory_space<vmem>>, %arg11: memref<128x128xf32, #tpu.memory_space<vmem>>, %arg12: memref<1x128xf32, #tpu.memory_space<vmem>>, %arg13: memref<128x128xf32, #tpu.memory_space<vmem>>, %arg14: memref<128x16xf32, #tpu.memory_space<vmem>>, %arg15: memref<128x128xf32, #tpu.memory_space<vmem>>, %arg16: memref<1x128xf32, #tpu.memory_space<vmem>>, %arg17: memref<1x128xf32, #tpu.memory_space<vmem>>, %arg18: memref<1x128xf32, #tpu.memory_space<vmem>>, %arg19: memref<128x128xf32, #tpu.memory_space<vmem>>, %arg20: memref<1x128xf32, #tpu.memory_space<vmem>>, %arg21: memref<128x64xf32, #tpu.memory_space<vmem>>, %arg22: memref<1x64xf32, #tpu.memory_space<vmem>>, %arg23: memref<64x128xf32, #tpu.memory_space<vmem>>, %arg24: memref<1x128xf32, #tpu.memory_space<vmem>>, %arg25: memref<128x32xf32, #tpu.memory_space<vmem>>, %arg26: memref<1x32xf32, #tpu.memory_space<vmem>>, %arg27: memref<32x1xf32, #tpu.memory_space<vmem>>, %arg28: memref<1x1xf32, #tpu.memory_space<vmem>>, %arg29: memref<32x128xf32, #tpu.memory_space<vmem>>, %arg30: memref<1x1xf32, #tpu.memory_space<vmem>>, %arg31: memref<32x128xf32, #tpu.memory_space<vmem>>) attributes {dimension_semantics = [#tpu.dimension_semantics<arbitrary>], iteration_bounds = array<i64: 1>, scalar_prefetch = 0 : i64, scratch_operands = 1 : i64, tpu.core_type = #tpu.core_type<tc>, window_params = [{pipeline_mode = #tpu.pipeline_mode<synchronous>, transform_indices = @transform_0, window_bounds = array<i64: 32, 64>}, {pipeline_mode = #tpu.pipeline_mode<synchronous>, transform_indices = @transform_1, window_bounds = array<i64: 32, 32>}, {pipeline_mode = #tpu.pipeline_mode<synchronous>, transform_indices = @transform_2, window_bounds = array<i64: 64, 128>}, {pipeline_mode = #tpu.pipeline_mode<synchronous>, transform_indices = @transform_3, window_bounds = array<i64: 1, 128>}, {pipeline_mode = #tpu.pipeline_mode<synchronous>, transform_indices = @transform_4, window_bounds = array<i64: 128, 128>}, {pipeline_mode = #tpu.pipeline_mode<synchronous>, transform_indices = @transform_5, window_bounds = array<i64: 128, 16>}, {pipeline_mode = #tpu.pipeline_mode<synchronous>, transform_indices = @transform_6, window_bounds = array<i64: 128, 128>}, {pipeline_mode = #tpu.pipeline_mode<synchronous>, transform_indices = @transform_7, window_bounds = array<i64: 1, 128>}, {pipeline_mode = #tpu.pipeline_mode<synchronous>, transform_indices = @transform_8, window_bounds = array<i64: 1, 128>}, {pipeline_mode = #tpu.pipeline_mode<synchronous>, transform_indices = @transform_9, window_bounds = array<i64: 1, 128>}, {pipeline_mode = #tpu.pipeline_mode<synchronous>, transform_indices = @transform_10, window_bounds = array<i64: 128, 128>}, {pipeline_mode = #tpu.pipeline_mode<synchronous>, transform_indices = @transform_11, window_bounds = array<i64: 1, 128>}, {pipeline_mode = #tpu.pipeline_mode<synchronous>, transform_indices = @transform_12, window_bounds = array<i64: 128, 128>}, {pipeline_mode = #tpu.pipeline_mode<synchronous>, transform_indices = @transform_13, window_bounds = array<i64: 128, 16>}, {pipeline_mode = #tpu.pipeline_mode<synchronous>, transform_indices = @transform_14, window_bounds = array<i64: 128, 128>}, {pipeline_mode = #tpu.pipeline_mode<synchronous>, transform_indices = @transform_15, window_bounds = array<i64: 1, 128>}, {pipeline_mode = #tpu.pipeline_mode<synchronous>, transform_indices = @transform_16, window_bounds = array<i64: 1, 128>}, {pipeline_mode = #tpu.pipeline_mode<synchronous>, transform_indices = @transform_17, window_bounds = array<i64: 1, 128>}, {pipeline_mode = #tpu.pipeline_mode<synchronous>, transform_indices = @transform_18, window_bounds = array<i64: 128, 128>}, {pipeline_mode = #tpu.pipeline_mode<synchronous>, transform_indices = @transform_19, window_bounds = array<i64: 1, 128>}, {pipeline_mode = #tpu.pipeline_mode<synchronous>, transform_indices = @transform_20, window_bounds = array<i64: 128, 64>}, {pipeline_mode = #tpu.pipeline_mode<synchronous>, transform_indices = @transform_21, window_bounds = array<i64: 1, 64>}, {pipeline_mode = #tpu.pipeline_mode<synchronous>, transform_indices = @transform_22, window_bounds = array<i64: 64, 128>}, {pipeline_mode = #tpu.pipeline_mode<synchronous>, transform_indices = @transform_23, window_bounds = array<i64: 1, 128>}, {pipeline_mode = #tpu.pipeline_mode<synchronous>, transform_indices = @transform_24, window_bounds = array<i64: 128, 32>}, {pipeline_mode = #tpu.pipeline_mode<synchronous>, transform_indices = @transform_25, window_bounds = array<i64: 1, 32>}, {pipeline_mode = #tpu.pipeline_mode<synchronous>, transform_indices = @transform_26, window_bounds = array<i64: 32, 1>}, {pipeline_mode = #tpu.pipeline_mode<synchronous>, transform_indices = @transform_27, window_bounds = array<i64: 1, 1>}, {pipeline_mode = #tpu.pipeline_mode<synchronous>, transform_indices = @transform_28, window_bounds = array<i64: 32, 128>}, {pipeline_mode = #tpu.pipeline_mode<synchronous>, transform_indices = @transform_29, window_bounds = array<i64: 1, 1>}]} {
    %c0 = arith.constant 0 : index
    %c0_0 = arith.constant 0 : index
    %0 = vector.load %arg2[%c0, %c0_0] : memref<32x32xf32, #tpu.memory_space<vmem>>, vector<32x32xf32>
    %c0_1 = arith.constant 0 : index
    %c0_2 = arith.constant 0 : index
    %1 = vector.load %arg1[%c0_1, %c0_2] : memref<32x64xf32, #tpu.memory_space<vmem>>, vector<32x64xf32>
    %2 = arith.truncf %1 : vector<32x64xf32> to vector<32x64xbf16>
    %c0_3 = arith.constant 0 : index
    %c0_4 = arith.constant 0 : index
    %3 = vector.load %arg3[%c0_3, %c0_4] : memref<64x128xf32, #tpu.memory_space<vmem>>, vector<64x128xf32>
    %4 = arith.truncf %3 : vector<64x128xf32> to vector<64x128xbf16>
    %cst = arith.constant dense<0.000000e+00> : vector<32x128xf32>
    %5 = tpu.matmul %2, %4, %cst {dimension_numbers = #tpu.dot_dimension_numbers<[1], [0], [0], [1], [0, 0, 1, 1], [], []>} : vector<32x64xbf16>, vector<64x128xbf16>, vector<32x128xf32> -> vector<32x128xf32>
    %c0_5 = arith.constant 0 : index
    %c0_6 = arith.constant 0 : index
    %6 = vector.load %arg4[%c0_5, %c0_6] : memref<1x128xf32, #tpu.memory_space<vmem>>, vector<1x128xf32>
    %7 = vector.broadcast %6 : vector<1x128xf32> to vector<32x128xf32>
    %8 = arith.addf %5, %7 : vector<32x128xf32>
    %9 = arith.truncf %8 : vector<32x128xf32> to vector<32x128xbf16>
    %c0_7 = arith.constant 0 : index
    %c0_8 = arith.constant 0 : index
    %10 = vector.load %arg5[%c0_7, %c0_8] : memref<128x128xf32, #tpu.memory_space<vmem>>, vector<128x128xf32>
    %11 = arith.truncf %10 : vector<128x128xf32> to vector<128x128xbf16>
    %cst_9 = arith.constant dense<0.000000e+00> : vector<32x128xf32>
    %12 = tpu.matmul %9, %11, %cst_9 {dimension_numbers = #tpu.dot_dimension_numbers<[1], [0], [0], [1], [0, 0, 1, 1], [], []>} : vector<32x128xbf16>, vector<128x128xbf16>, vector<32x128xf32> -> vector<32x128xf32>
    %13 = arith.truncf %12 : vector<32x128xf32> to vector<32x128xbf16>
    %c0_10 = arith.constant 0 : index
    %c0_11 = arith.constant 0 : index
    %14 = vector.load %arg6[%c0_10, %c0_11] : memref<128x16xf32, #tpu.memory_space<vmem>>, vector<128x16xf32>
    %15 = arith.truncf %14 : vector<128x16xf32> to vector<128x16xbf16>
    %cst_12 = arith.constant dense<0.000000e+00> : vector<32x16xf32>
    %16 = tpu.matmul %13, %15, %cst_12 {dimension_numbers = #tpu.dot_dimension_numbers<[1], [0], [0], [1], [0, 0, 1, 1], [], []>} : vector<32x128xbf16>, vector<128x16xbf16>, vector<32x16xf32> -> vector<32x16xf32>
    %17 = vector.extract_strided_slice %16 {offsets = [0, 0], sizes = [32, 1], strides = [1, 1]} : vector<32x16xf32> to vector<32x1xf32>
    %18 = vector.extract_strided_slice %16 {offsets = [0, 8], sizes = [32, 1], strides = [1, 1]} : vector<32x16xf32> to vector<32x1xf32>
    %19 = tpu.transpose %17, [1, 0] : vector<32x1xf32> -> vector<1x32xf32>
    %20 = vector.broadcast %18 : vector<32x1xf32> to vector<32x32xf32>
    %21 = vector.broadcast %19 : vector<1x32xf32> to vector<32x32xf32>
    %22 = arith.addf %20, %21 : vector<32x32xf32>
    %cst_13 = arith.constant 0.000000e+00 : f32
    %23 = vector.broadcast %cst_13 : f32 to vector<32x32xf32>
    %24 = arith.cmpf ogt, %22, %23 : vector<32x32xf32>
    %cst_14 = arith.constant 2.000000e-01 : f32
    %25 = vector.broadcast %cst_14 : f32 to vector<32x32xf32>
    %26 = arith.mulf %25, %22 : vector<32x32xf32>
    %27 = arith.select %24, %22, %26 : vector<32x32xi1>, vector<32x32xf32>
    %28 = arith.addf %27, %0 : vector<32x32xf32>
    %cst_15 = arith.constant dense<0xFF800000> : vector<32xf32>
    %29 = vector.multi_reduction <maximumf>, %28, %cst_15 [1] : vector<32x32xf32> to vector<32xf32>
    %30 = vector.shape_cast %29 : vector<32xf32> to vector<32x1xf32>
    %31 = vector.broadcast %30 : vector<32x1xf32> to vector<32x32xf32>
    %32 = arith.subf %28, %31 : vector<32x32xf32>
    %33 = math.exp %32 : vector<32x32xf32>
    %cst_16 = arith.constant dense<0.000000e+00> : vector<32xf32>
    %34 = vector.multi_reduction <add>, %33, %cst_16 [1] : vector<32x32xf32> to vector<32xf32>
    %35 = vector.shape_cast %34 : vector<32xf32> to vector<32x1xf32>
    %36 = tpu.reciprocal %35 {approx = true} : vector<32x1xf32> -> vector<32x1xf32>
    %37 = vector.broadcast %36 : vector<32x1xf32> to vector<32x32xf32>
    %38 = arith.mulf %33, %37 : vector<32x32xf32>
    %39 = arith.truncf %38 : vector<32x32xf32> to vector<32x32xbf16>
    %40 = vector.extract_strided_slice %13 {offsets = [0, 0], sizes = [32, 16], strides = [1, 1]} : vector<32x128xbf16> to vector<32x16xbf16>
    %cst_17 = arith.constant dense<0.000000e+00> : vector<32x16xf32>
    %41 = tpu.matmul %39, %40, %cst_17 {dimension_numbers = #tpu.dot_dimension_numbers<[1], [0], [0], [1], [0, 0, 1, 1], [], []>} : vector<32x32xbf16>, vector<32x16xbf16>, vector<32x16xf32> -> vector<32x16xf32>
    %c0_18 = arith.constant 0 : index
    %c0_19 = arith.constant 0 : index
    %42 = vector.load %arg31[%c0_18, %c0_19] : memref<32x128xf32, #tpu.memory_space<vmem>>, vector<32x16xf32>
    tpu.vector_store %arg31[%c0_18, %c0_19], %41 {strides = array<i32>} : memref<32x128xf32, #tpu.memory_space<vmem>>, vector<32x16xf32>,
    %43 = vector.extract_strided_slice %16 {offsets = [0, 1], sizes = [32, 1], strides = [1, 1]} : vector<32x16xf32> to vector<32x1xf32>
    %44 = vector.extract_strided_slice %16 {offsets = [0, 9], sizes = [32, 1], strides = [1, 1]} : vector<32x16xf32> to vector<32x1xf32>
    %45 = tpu.transpose %43, [1, 0] : vector<32x1xf32> -> vector<1x32xf32>
    %46 = vector.broadcast %44 : vector<32x1xf32> to vector<32x32xf32>
    %47 = vector.broadcast %45 : vector<1x32xf32> to vector<32x32xf32>
    %48 = arith.addf %46, %47 : vector<32x32xf32>
    %cst_20 = arith.constant 0.000000e+00 : f32
    %49 = vector.broadcast %cst_20 : f32 to vector<32x32xf32>
    %50 = arith.cmpf ogt, %48, %49 : vector<32x32xf32>
    %cst_21 = arith.constant 2.000000e-01 : f32
    %51 = vector.broadcast %cst_21 : f32 to vector<32x32xf32>
    %52 = arith.mulf %51, %48 : vector<32x32xf32>
    %53 = arith.select %50, %48, %52 : vector<32x32xi1>, vector<32x32xf32>
    %54 = arith.addf %53, %0 : vector<32x32xf32>
    %cst_22 = arith.constant dense<0xFF800000> : vector<32xf32>
    %55 = vector.multi_reduction <maximumf>, %54, %cst_22 [1] : vector<32x32xf32> to vector<32xf32>
    %56 = vector.shape_cast %55 : vector<32xf32> to vector<32x1xf32>
    %57 = vector.broadcast %56 : vector<32x1xf32> to vector<32x32xf32>
    %58 = arith.subf %54, %57 : vector<32x32xf32>
    %59 = math.exp %58 : vector<32x32xf32>
    %cst_23 = arith.constant dense<0.000000e+00> : vector<32xf32>
    %60 = vector.multi_reduction <add>, %59, %cst_23 [1] : vector<32x32xf32> to vector<32xf32>
    %61 = vector.shape_cast %60 : vector<32xf32> to vector<32x1xf32>
    %62 = tpu.reciprocal %61 {approx = true} : vector<32x1xf32> -> vector<32x1xf32>
    %63 = vector.broadcast %62 : vector<32x1xf32> to vector<32x32xf32>
    %64 = arith.mulf %59, %63 : vector<32x32xf32>
    %65 = arith.truncf %64 : vector<32x32xf32> to vector<32x32xbf16>
    %66 = vector.extract_strided_slice %13 {offsets = [0, 16], sizes = [32, 16], strides = [1, 1]} : vector<32x128xbf16> to vector<32x16xbf16>
    %cst_24 = arith.constant dense<0.000000e+00> : vector<32x16xf32>
    %67 = tpu.matmul %65, %66, %cst_24 {dimension_numbers = #tpu.dot_dimension_numbers<[1], [0], [0], [1], [0, 0, 1, 1], [], []>} : vector<32x32xbf16>, vector<32x16xbf16>, vector<32x16xf32> -> vector<32x16xf32>
    %c0_25 = arith.constant 0 : index
    %c16 = arith.constant 16 : index
    %68 = vector.load %arg31[%c0_25, %c16] : memref<32x128xf32, #tpu.memory_space<vmem>>, vector<32x16xf32>
    tpu.vector_store %arg31[%c0_25, %c16], %67 {strides = array<i32>} : memref<32x128xf32, #tpu.memory_space<vmem>>, vector<32x16xf32>,
    %69 = vector.extract_strided_slice %16 {offsets = [0, 2], sizes = [32, 1], strides = [1, 1]} : vector<32x16xf32> to vector<32x1xf32>
    %70 = vector.extract_strided_slice %16 {offsets = [0, 10], sizes = [32, 1], strides = [1, 1]} : vector<32x16xf32> to vector<32x1xf32>
    %71 = tpu.transpose %69, [1, 0] : vector<32x1xf32> -> vector<1x32xf32>
    %72 = vector.broadcast %70 : vector<32x1xf32> to vector<32x32xf32>
    %73 = vector.broadcast %71 : vector<1x32xf32> to vector<32x32xf32>
    %74 = arith.addf %72, %73 : vector<32x32xf32>
    %cst_26 = arith.constant 0.000000e+00 : f32
    %75 = vector.broadcast %cst_26 : f32 to vector<32x32xf32>
    %76 = arith.cmpf ogt, %74, %75 : vector<32x32xf32>
    %cst_27 = arith.constant 2.000000e-01 : f32
    %77 = vector.broadcast %cst_27 : f32 to vector<32x32xf32>
    %78 = arith.mulf %77, %74 : vector<32x32xf32>
    %79 = arith.select %76, %74, %78 : vector<32x32xi1>, vector<32x32xf32>
    %80 = arith.addf %79, %0 : vector<32x32xf32>
    %cst_28 = arith.constant dense<0xFF800000> : vector<32xf32>
    %81 = vector.multi_reduction <maximumf>, %80, %cst_28 [1] : vector<32x32xf32> to vector<32xf32>
    %82 = vector.shape_cast %81 : vector<32xf32> to vector<32x1xf32>
    %83 = vector.broadcast %82 : vector<32x1xf32> to vector<32x32xf32>
    %84 = arith.subf %80, %83 : vector<32x32xf32>
    %85 = math.exp %84 : vector<32x32xf32>
    %cst_29 = arith.constant dense<0.000000e+00> : vector<32xf32>
    %86 = vector.multi_reduction <add>, %85, %cst_29 [1] : vector<32x32xf32> to vector<32xf32>
    %87 = vector.shape_cast %86 : vector<32xf32> to vector<32x1xf32>
    %88 = tpu.reciprocal %87 {approx = true} : vector<32x1xf32> -> vector<32x1xf32>
    %89 = vector.broadcast %88 : vector<32x1xf32> to vector<32x32xf32>
    %90 = arith.mulf %85, %89 : vector<32x32xf32>
    %91 = arith.truncf %90 : vector<32x32xf32> to vector<32x32xbf16>
    %92 = vector.extract_strided_slice %13 {offsets = [0, 32], sizes = [32, 16], strides = [1, 1]} : vector<32x128xbf16> to vector<32x16xbf16>
    %cst_30 = arith.constant dense<0.000000e+00> : vector<32x16xf32>
    %93 = tpu.matmul %91, %92, %cst_30 {dimension_numbers = #tpu.dot_dimension_numbers<[1], [0], [0], [1], [0, 0, 1, 1], [], []>} : vector<32x32xbf16>, vector<32x16xbf16>, vector<32x16xf32> -> vector<32x16xf32>
    %c0_31 = arith.constant 0 : index
    %c32 = arith.constant 32 : index
    %94 = vector.load %arg31[%c0_31, %c32] : memref<32x128xf32, #tpu.memory_space<vmem>>, vector<32x16xf32>
    tpu.vector_store %arg31[%c0_31, %c32], %93 {strides = array<i32>} : memref<32x128xf32, #tpu.memory_space<vmem>>, vector<32x16xf32>,
    %95 = vector.extract_strided_slice %16 {offsets = [0, 3], sizes = [32, 1], strides = [1, 1]} : vector<32x16xf32> to vector<32x1xf32>
    %96 = vector.extract_strided_slice %16 {offsets = [0, 11], sizes = [32, 1], strides = [1, 1]} : vector<32x16xf32> to vector<32x1xf32>
    %97 = tpu.transpose %95, [1, 0] : vector<32x1xf32> -> vector<1x32xf32>
    %98 = vector.broadcast %96 : vector<32x1xf32> to vector<32x32xf32>
    %99 = vector.broadcast %97 : vector<1x32xf32> to vector<32x32xf32>
    %100 = arith.addf %98, %99 : vector<32x32xf32>
    %cst_32 = arith.constant 0.000000e+00 : f32
    %101 = vector.broadcast %cst_32 : f32 to vector<32x32xf32>
    %102 = arith.cmpf ogt, %100, %101 : vector<32x32xf32>
    %cst_33 = arith.constant 2.000000e-01 : f32
    %103 = vector.broadcast %cst_33 : f32 to vector<32x32xf32>
    %104 = arith.mulf %103, %100 : vector<32x32xf32>
    %105 = arith.select %102, %100, %104 : vector<32x32xi1>, vector<32x32xf32>
    %106 = arith.addf %105, %0 : vector<32x32xf32>
    %cst_34 = arith.constant dense<0xFF800000> : vector<32xf32>
    %107 = vector.multi_reduction <maximumf>, %106, %cst_34 [1] : vector<32x32xf32> to vector<32xf32>
    %108 = vector.shape_cast %107 : vector<32xf32> to vector<32x1xf32>
    %109 = vector.broadcast %108 : vector<32x1xf32> to vector<32x32xf32>
    %110 = arith.subf %106, %109 : vector<32x32xf32>
    %111 = math.exp %110 : vector<32x32xf32>
    %cst_35 = arith.constant dense<0.000000e+00> : vector<32xf32>
    %112 = vector.multi_reduction <add>, %111, %cst_35 [1] : vector<32x32xf32> to vector<32xf32>
    %113 = vector.shape_cast %112 : vector<32xf32> to vector<32x1xf32>
    %114 = tpu.reciprocal %113 {approx = true} : vector<32x1xf32> -> vector<32x1xf32>
    %115 = vector.broadcast %114 : vector<32x1xf32> to vector<32x32xf32>
    %116 = arith.mulf %111, %115 : vector<32x32xf32>
    %117 = arith.truncf %116 : vector<32x32xf32> to vector<32x32xbf16>
    %118 = vector.extract_strided_slice %13 {offsets = [0, 48], sizes = [32, 16], strides = [1, 1]} : vector<32x128xbf16> to vector<32x16xbf16>
    %cst_36 = arith.constant dense<0.000000e+00> : vector<32x16xf32>
    %119 = tpu.matmul %117, %118, %cst_36 {dimension_numbers = #tpu.dot_dimension_numbers<[1], [0], [0], [1], [0, 0, 1, 1], [], []>} : vector<32x32xbf16>, vector<32x16xbf16>, vector<32x16xf32> -> vector<32x16xf32>
    %c0_37 = arith.constant 0 : index
    %c48 = arith.constant 48 : index
    %120 = vector.load %arg31[%c0_37, %c48] : memref<32x128xf32, #tpu.memory_space<vmem>>, vector<32x16xf32>
    tpu.vector_store %arg31[%c0_37, %c48], %119 {strides = array<i32>} : memref<32x128xf32, #tpu.memory_space<vmem>>, vector<32x16xf32>,
    %121 = vector.extract_strided_slice %16 {offsets = [0, 4], sizes = [32, 1], strides = [1, 1]} : vector<32x16xf32> to vector<32x1xf32>
    %122 = vector.extract_strided_slice %16 {offsets = [0, 12], sizes = [32, 1], strides = [1, 1]} : vector<32x16xf32> to vector<32x1xf32>
    %123 = tpu.transpose %121, [1, 0] : vector<32x1xf32> -> vector<1x32xf32>
    %124 = vector.broadcast %122 : vector<32x1xf32> to vector<32x32xf32>
    %125 = vector.broadcast %123 : vector<1x32xf32> to vector<32x32xf32>
    %126 = arith.addf %124, %125 : vector<32x32xf32>
    %cst_38 = arith.constant 0.000000e+00 : f32
    %127 = vector.broadcast %cst_38 : f32 to vector<32x32xf32>
    %128 = arith.cmpf ogt, %126, %127 : vector<32x32xf32>
    %cst_39 = arith.constant 2.000000e-01 : f32
    %129 = vector.broadcast %cst_39 : f32 to vector<32x32xf32>
    %130 = arith.mulf %129, %126 : vector<32x32xf32>
    %131 = arith.select %128, %126, %130 : vector<32x32xi1>, vector<32x32xf32>
    %132 = arith.addf %131, %0 : vector<32x32xf32>
    %cst_40 = arith.constant dense<0xFF800000> : vector<32xf32>
    %133 = vector.multi_reduction <maximumf>, %132, %cst_40 [1] : vector<32x32xf32> to vector<32xf32>
    %134 = vector.shape_cast %133 : vector<32xf32> to vector<32x1xf32>
    %135 = vector.broadcast %134 : vector<32x1xf32> to vector<32x32xf32>
    %136 = arith.subf %132, %135 : vector<32x32xf32>
    %137 = math.exp %136 : vector<32x32xf32>
    %cst_41 = arith.constant dense<0.000000e+00> : vector<32xf32>
    %138 = vector.multi_reduction <add>, %137, %cst_41 [1] : vector<32x32xf32> to vector<32xf32>
    %139 = vector.shape_cast %138 : vector<32xf32> to vector<32x1xf32>
    %140 = tpu.reciprocal %139 {approx = true} : vector<32x1xf32> -> vector<32x1xf32>
    %141 = vector.broadcast %140 : vector<32x1xf32> to vector<32x32xf32>
    %142 = arith.mulf %137, %141 : vector<32x32xf32>
    %143 = arith.truncf %142 : vector<32x32xf32> to vector<32x32xbf16>
    %144 = vector.extract_strided_slice %13 {offsets = [0, 64], sizes = [32, 16], strides = [1, 1]} : vector<32x128xbf16> to vector<32x16xbf16>
    %cst_42 = arith.constant dense<0.000000e+00> : vector<32x16xf32>
    %145 = tpu.matmul %143, %144, %cst_42 {dimension_numbers = #tpu.dot_dimension_numbers<[1], [0], [0], [1], [0, 0, 1, 1], [], []>} : vector<32x32xbf16>, vector<32x16xbf16>, vector<32x16xf32> -> vector<32x16xf32>
    %c0_43 = arith.constant 0 : index
    %c64 = arith.constant 64 : index
    %146 = vector.load %arg31[%c0_43, %c64] : memref<32x128xf32, #tpu.memory_space<vmem>>, vector<32x16xf32>
    tpu.vector_store %arg31[%c0_43, %c64], %145 {strides = array<i32>} : memref<32x128xf32, #tpu.memory_space<vmem>>, vector<32x16xf32>,
    %147 = vector.extract_strided_slice %16 {offsets = [0, 5], sizes = [32, 1], strides = [1, 1]} : vector<32x16xf32> to vector<32x1xf32>
    %148 = vector.extract_strided_slice %16 {offsets = [0, 13], sizes = [32, 1], strides = [1, 1]} : vector<32x16xf32> to vector<32x1xf32>
    %149 = tpu.transpose %147, [1, 0] : vector<32x1xf32> -> vector<1x32xf32>
    %150 = vector.broadcast %148 : vector<32x1xf32> to vector<32x32xf32>
    %151 = vector.broadcast %149 : vector<1x32xf32> to vector<32x32xf32>
    %152 = arith.addf %150, %151 : vector<32x32xf32>
    %cst_44 = arith.constant 0.000000e+00 : f32
    %153 = vector.broadcast %cst_44 : f32 to vector<32x32xf32>
    %154 = arith.cmpf ogt, %152, %153 : vector<32x32xf32>
    %cst_45 = arith.constant 2.000000e-01 : f32
    %155 = vector.broadcast %cst_45 : f32 to vector<32x32xf32>
    %156 = arith.mulf %155, %152 : vector<32x32xf32>
    %157 = arith.select %154, %152, %156 : vector<32x32xi1>, vector<32x32xf32>
    %158 = arith.addf %157, %0 : vector<32x32xf32>
    %cst_46 = arith.constant dense<0xFF800000> : vector<32xf32>
    %159 = vector.multi_reduction <maximumf>, %158, %cst_46 [1] : vector<32x32xf32> to vector<32xf32>
    %160 = vector.shape_cast %159 : vector<32xf32> to vector<32x1xf32>
    %161 = vector.broadcast %160 : vector<32x1xf32> to vector<32x32xf32>
    %162 = arith.subf %158, %161 : vector<32x32xf32>
    %163 = math.exp %162 : vector<32x32xf32>
    %cst_47 = arith.constant dense<0.000000e+00> : vector<32xf32>
    %164 = vector.multi_reduction <add>, %163, %cst_47 [1] : vector<32x32xf32> to vector<32xf32>
    %165 = vector.shape_cast %164 : vector<32xf32> to vector<32x1xf32>
    %166 = tpu.reciprocal %165 {approx = true} : vector<32x1xf32> -> vector<32x1xf32>
    %167 = vector.broadcast %166 : vector<32x1xf32> to vector<32x32xf32>
    %168 = arith.mulf %163, %167 : vector<32x32xf32>
    %169 = arith.truncf %168 : vector<32x32xf32> to vector<32x32xbf16>
    %170 = vector.extract_strided_slice %13 {offsets = [0, 80], sizes = [32, 16], strides = [1, 1]} : vector<32x128xbf16> to vector<32x16xbf16>
    %cst_48 = arith.constant dense<0.000000e+00> : vector<32x16xf32>
    %171 = tpu.matmul %169, %170, %cst_48 {dimension_numbers = #tpu.dot_dimension_numbers<[1], [0], [0], [1], [0, 0, 1, 1], [], []>} : vector<32x32xbf16>, vector<32x16xbf16>, vector<32x16xf32> -> vector<32x16xf32>
    %c0_49 = arith.constant 0 : index
    %c80 = arith.constant 80 : index
    %172 = vector.load %arg31[%c0_49, %c80] : memref<32x128xf32, #tpu.memory_space<vmem>>, vector<32x16xf32>
    tpu.vector_store %arg31[%c0_49, %c80], %171 {strides = array<i32>} : memref<32x128xf32, #tpu.memory_space<vmem>>, vector<32x16xf32>,
    %173 = vector.extract_strided_slice %16 {offsets = [0, 6], sizes = [32, 1], strides = [1, 1]} : vector<32x16xf32> to vector<32x1xf32>
    %174 = vector.extract_strided_slice %16 {offsets = [0, 14], sizes = [32, 1], strides = [1, 1]} : vector<32x16xf32> to vector<32x1xf32>
    %175 = tpu.transpose %173, [1, 0] : vector<32x1xf32> -> vector<1x32xf32>
    %176 = vector.broadcast %174 : vector<32x1xf32> to vector<32x32xf32>
    %177 = vector.broadcast %175 : vector<1x32xf32> to vector<32x32xf32>
    %178 = arith.addf %176, %177 : vector<32x32xf32>
    %cst_50 = arith.constant 0.000000e+00 : f32
    %179 = vector.broadcast %cst_50 : f32 to vector<32x32xf32>
    %180 = arith.cmpf ogt, %178, %179 : vector<32x32xf32>
    %cst_51 = arith.constant 2.000000e-01 : f32
    %181 = vector.broadcast %cst_51 : f32 to vector<32x32xf32>
    %182 = arith.mulf %181, %178 : vector<32x32xf32>
    %183 = arith.select %180, %178, %182 : vector<32x32xi1>, vector<32x32xf32>
    %184 = arith.addf %183, %0 : vector<32x32xf32>
    %cst_52 = arith.constant dense<0xFF800000> : vector<32xf32>
    %185 = vector.multi_reduction <maximumf>, %184, %cst_52 [1] : vector<32x32xf32> to vector<32xf32>
    %186 = vector.shape_cast %185 : vector<32xf32> to vector<32x1xf32>
    %187 = vector.broadcast %186 : vector<32x1xf32> to vector<32x32xf32>
    %188 = arith.subf %184, %187 : vector<32x32xf32>
    %189 = math.exp %188 : vector<32x32xf32>
    %cst_53 = arith.constant dense<0.000000e+00> : vector<32xf32>
    %190 = vector.multi_reduction <add>, %189, %cst_53 [1] : vector<32x32xf32> to vector<32xf32>
    %191 = vector.shape_cast %190 : vector<32xf32> to vector<32x1xf32>
    %192 = tpu.reciprocal %191 {approx = true} : vector<32x1xf32> -> vector<32x1xf32>
    %193 = vector.broadcast %192 : vector<32x1xf32> to vector<32x32xf32>
    %194 = arith.mulf %189, %193 : vector<32x32xf32>
    %195 = arith.truncf %194 : vector<32x32xf32> to vector<32x32xbf16>
    %196 = vector.extract_strided_slice %13 {offsets = [0, 96], sizes = [32, 16], strides = [1, 1]} : vector<32x128xbf16> to vector<32x16xbf16>
    %cst_54 = arith.constant dense<0.000000e+00> : vector<32x16xf32>
    %197 = tpu.matmul %195, %196, %cst_54 {dimension_numbers = #tpu.dot_dimension_numbers<[1], [0], [0], [1], [0, 0, 1, 1], [], []>} : vector<32x32xbf16>, vector<32x16xbf16>, vector<32x16xf32> -> vector<32x16xf32>
    %c0_55 = arith.constant 0 : index
    %c96 = arith.constant 96 : index
    %198 = vector.load %arg31[%c0_55, %c96] : memref<32x128xf32, #tpu.memory_space<vmem>>, vector<32x16xf32>
    tpu.vector_store %arg31[%c0_55, %c96], %197 {strides = array<i32>} : memref<32x128xf32, #tpu.memory_space<vmem>>, vector<32x16xf32>,
    %199 = vector.extract_strided_slice %16 {offsets = [0, 7], sizes = [32, 1], strides = [1, 1]} : vector<32x16xf32> to vector<32x1xf32>
    %200 = vector.extract_strided_slice %16 {offsets = [0, 15], sizes = [32, 1], strides = [1, 1]} : vector<32x16xf32> to vector<32x1xf32>
    %201 = tpu.transpose %199, [1, 0] : vector<32x1xf32> -> vector<1x32xf32>
    %202 = vector.broadcast %200 : vector<32x1xf32> to vector<32x32xf32>
    %203 = vector.broadcast %201 : vector<1x32xf32> to vector<32x32xf32>
    %204 = arith.addf %202, %203 : vector<32x32xf32>
    %cst_56 = arith.constant 0.000000e+00 : f32
    %205 = vector.broadcast %cst_56 : f32 to vector<32x32xf32>
    %206 = arith.cmpf ogt, %204, %205 : vector<32x32xf32>
    %cst_57 = arith.constant 2.000000e-01 : f32
    %207 = vector.broadcast %cst_57 : f32 to vector<32x32xf32>
    %208 = arith.mulf %207, %204 : vector<32x32xf32>
    %209 = arith.select %206, %204, %208 : vector<32x32xi1>, vector<32x32xf32>
    %210 = arith.addf %209, %0 : vector<32x32xf32>
    %cst_58 = arith.constant dense<0xFF800000> : vector<32xf32>
    %211 = vector.multi_reduction <maximumf>, %210, %cst_58 [1] : vector<32x32xf32> to vector<32xf32>
    %212 = vector.shape_cast %211 : vector<32xf32> to vector<32x1xf32>
    %213 = vector.broadcast %212 : vector<32x1xf32> to vector<32x32xf32>
    %214 = arith.subf %210, %213 : vector<32x32xf32>
    %215 = math.exp %214 : vector<32x32xf32>
    %cst_59 = arith.constant dense<0.000000e+00> : vector<32xf32>
    %216 = vector.multi_reduction <add>, %215, %cst_59 [1] : vector<32x32xf32> to vector<32xf32>
    %217 = vector.shape_cast %216 : vector<32xf32> to vector<32x1xf32>
    %218 = tpu.reciprocal %217 {approx = true} : vector<32x1xf32> -> vector<32x1xf32>
    %219 = vector.broadcast %218 : vector<32x1xf32> to vector<32x32xf32>
    %220 = arith.mulf %215, %219 : vector<32x32xf32>
    %221 = arith.truncf %220 : vector<32x32xf32> to vector<32x32xbf16>
    %222 = vector.extract_strided_slice %13 {offsets = [0, 112], sizes = [32, 16], strides = [1, 1]} : vector<32x128xbf16> to vector<32x16xbf16>
    %cst_60 = arith.constant dense<0.000000e+00> : vector<32x16xf32>
    %223 = tpu.matmul %221, %222, %cst_60 {dimension_numbers = #tpu.dot_dimension_numbers<[1], [0], [0], [1], [0, 0, 1, 1], [], []>} : vector<32x32xbf16>, vector<32x16xbf16>, vector<32x16xf32> -> vector<32x16xf32>
    %c0_61 = arith.constant 0 : index
    %c112 = arith.constant 112 : index
    %224 = vector.load %arg31[%c0_61, %c112] : memref<32x128xf32, #tpu.memory_space<vmem>>, vector<32x16xf32>
    tpu.vector_store %arg31[%c0_61, %c112], %223 {strides = array<i32>} : memref<32x128xf32, #tpu.memory_space<vmem>>, vector<32x16xf32>,
    %c0_62 = arith.constant 0 : index
    %c0_63 = arith.constant 0 : index
    %225 = vector.load %arg31[%c0_62, %c0_63] : memref<32x128xf32, #tpu.memory_space<vmem>>, vector<32x128xf32>
    %226 = arith.truncf %225 : vector<32x128xf32> to vector<32x128xbf16>
    %c0_64 = arith.constant 0 : index
    %c0_65 = arith.constant 0 : index
    %227 = vector.load %arg7[%c0_64, %c0_65] : memref<128x128xf32, #tpu.memory_space<vmem>>, vector<128x128xf32>
    %228 = arith.truncf %227 : vector<128x128xf32> to vector<128x128xbf16>
    %cst_66 = arith.constant dense<0.000000e+00> : vector<32x128xf32>
    %229 = tpu.matmul %226, %228, %cst_66 {dimension_numbers = #tpu.dot_dimension_numbers<[1], [0], [0], [1], [0, 0, 1, 1], [], []>} : vector<32x128xbf16>, vector<128x128xbf16>, vector<32x128xf32> -> vector<32x128xf32>
    %c0_67 = arith.constant 0 : index
    %c0_68 = arith.constant 0 : index
    %230 = vector.load %arg8[%c0_67, %c0_68] : memref<1x128xf32, #tpu.memory_space<vmem>>, vector<1x128xf32>
    %231 = vector.broadcast %230 : vector<1x128xf32> to vector<32x128xf32>
    %232 = arith.addf %229, %231 : vector<32x128xf32>
    %cst_69 = arith.constant dense<0.000000e+00> : vector<32xf32>
    %233 = vector.multi_reduction <add>, %232, %cst_69 [1] : vector<32x128xf32> to vector<32xf32>
    %234 = vector.shape_cast %233 : vector<32xf32> to vector<32x1xf32>
    %cst_70 = arith.constant 1.280000e+02 : f32
    %235 = vector.broadcast %cst_70 : f32 to vector<32x1xf32>
    %236 = arith.divf %234, %235 : vector<32x1xf32>
    %237 = vector.broadcast %236 : vector<32x1xf32> to vector<32x128xf32>
    %238 = arith.subf %232, %237 : vector<32x128xf32>
    %239 = arith.mulf %238, %238 : vector<32x128xf32>
    %cst_71 = arith.constant dense<0.000000e+00> : vector<32xf32>
    %240 = vector.multi_reduction <add>, %239, %cst_71 [1] : vector<32x128xf32> to vector<32xf32>
    %241 = vector.shape_cast %240 : vector<32xf32> to vector<32x1xf32>
    %cst_72 = arith.constant 1.280000e+02 : f32
    %242 = vector.broadcast %cst_72 : f32 to vector<32x1xf32>
    %243 = arith.divf %241, %242 : vector<32x1xf32>
    %cst_73 = arith.constant 9.99999974E-6 : f32
    %244 = vector.broadcast %cst_73 : f32 to vector<32x1xf32>
    %245 = arith.addf %243, %244 : vector<32x1xf32>
    %246 = math.rsqrt %245 : vector<32x1xf32>
    %247 = vector.broadcast %246 : vector<32x1xf32> to vector<32x128xf32>
    %248 = arith.mulf %238, %247 : vector<32x128xf32>
    %c0_74 = arith.constant 0 : index
    %c0_75 = arith.constant 0 : index
    %249 = vector.load %arg9[%c0_74, %c0_75] : memref<1x128xf32, #tpu.memory_space<vmem>>, vector<1x128xf32>
    %250 = vector.broadcast %249 : vector<1x128xf32> to vector<32x128xf32>
    %251 = arith.mulf %248, %250 : vector<32x128xf32>
    %c0_76 = arith.constant 0 : index
    %c0_77 = arith.constant 0 : index
    %252 = vector.load %arg10[%c0_76, %c0_77] : memref<1x128xf32, #tpu.memory_space<vmem>>, vector<1x128xf32>
    %253 = vector.broadcast %252 : vector<1x128xf32> to vector<32x128xf32>
    %254 = arith.addf %251, %253 : vector<32x128xf32>
    %255 = arith.truncf %254 : vector<32x128xf32> to vector<32x128xbf16>
    %c0_78 = arith.constant 0 : index
    %c0_79 = arith.constant 0 : index
    %256 = vector.load %arg13[%c0_78, %c0_79] : memref<128x128xf32, #tpu.memory_space<vmem>>, vector<128x128xf32>
    %257 = arith.truncf %256 : vector<128x128xf32> to vector<128x128xbf16>
    %cst_80 = arith.constant dense<0.000000e+00> : vector<32x128xf32>
    %258 = tpu.matmul %255, %257, %cst_80 {dimension_numbers = #tpu.dot_dimension_numbers<[1], [0], [0], [1], [0, 0, 1, 1], [], []>} : vector<32x128xbf16>, vector<128x128xbf16>, vector<32x128xf32> -> vector<32x128xf32>
    %259 = arith.truncf %258 : vector<32x128xf32> to vector<32x128xbf16>
    %c0_81 = arith.constant 0 : index
    %c0_82 = arith.constant 0 : index
    %260 = vector.load %arg14[%c0_81, %c0_82] : memref<128x16xf32, #tpu.memory_space<vmem>>, vector<128x16xf32>
    %261 = arith.truncf %260 : vector<128x16xf32> to vector<128x16xbf16>
    %cst_83 = arith.constant dense<0.000000e+00> : vector<32x16xf32>
    %262 = tpu.matmul %259, %261, %cst_83 {dimension_numbers = #tpu.dot_dimension_numbers<[1], [0], [0], [1], [0, 0, 1, 1], [], []>} : vector<32x128xbf16>, vector<128x16xbf16>, vector<32x16xf32> -> vector<32x16xf32>
    %263 = vector.extract_strided_slice %262 {offsets = [0, 0], sizes = [32, 1], strides = [1, 1]} : vector<32x16xf32> to vector<32x1xf32>
    %264 = vector.extract_strided_slice %262 {offsets = [0, 8], sizes = [32, 1], strides = [1, 1]} : vector<32x16xf32> to vector<32x1xf32>
    %265 = tpu.transpose %263, [1, 0] : vector<32x1xf32> -> vector<1x32xf32>
    %266 = vector.broadcast %264 : vector<32x1xf32> to vector<32x32xf32>
    %267 = vector.broadcast %265 : vector<1x32xf32> to vector<32x32xf32>
    %268 = arith.addf %266, %267 : vector<32x32xf32>
    %cst_84 = arith.constant 0.000000e+00 : f32
    %269 = vector.broadcast %cst_84 : f32 to vector<32x32xf32>
    %270 = arith.cmpf ogt, %268, %269 : vector<32x32xf32>
    %cst_85 = arith.constant 2.000000e-01 : f32
    %271 = vector.broadcast %cst_85 : f32 to vector<32x32xf32>
    %272 = arith.mulf %271, %268 : vector<32x32xf32>
    %273 = arith.select %270, %268, %272 : vector<32x32xi1>, vector<32x32xf32>
    %274 = arith.addf %273, %0 : vector<32x32xf32>
    %cst_86 = arith.constant dense<0xFF800000> : vector<32xf32>
    %275 = vector.multi_reduction <maximumf>, %274, %cst_86 [1] : vector<32x32xf32> to vector<32xf32>
    %276 = vector.shape_cast %275 : vector<32xf32> to vector<32x1xf32>
    %277 = vector.broadcast %276 : vector<32x1xf32> to vector<32x32xf32>
    %278 = arith.subf %274, %277 : vector<32x32xf32>
    %279 = math.exp %278 : vector<32x32xf32>
    %cst_87 = arith.constant dense<0.000000e+00> : vector<32xf32>
    %280 = vector.multi_reduction <add>, %279, %cst_87 [1] : vector<32x32xf32> to vector<32xf32>
    %281 = vector.shape_cast %280 : vector<32xf32> to vector<32x1xf32>
    %282 = tpu.reciprocal %281 {approx = true} : vector<32x1xf32> -> vector<32x1xf32>
    %283 = vector.broadcast %282 : vector<32x1xf32> to vector<32x32xf32>
    %284 = arith.mulf %279, %283 : vector<32x32xf32>
    %285 = arith.truncf %284 : vector<32x32xf32> to vector<32x32xbf16>
    %286 = vector.extract_strided_slice %259 {offsets = [0, 0], sizes = [32, 16], strides = [1, 1]} : vector<32x128xbf16> to vector<32x16xbf16>
    %cst_88 = arith.constant dense<0.000000e+00> : vector<32x16xf32>
    %287 = tpu.matmul %285, %286, %cst_88 {dimension_numbers = #tpu.dot_dimension_numbers<[1], [0], [0], [1], [0, 0, 1, 1], [], []>} : vector<32x32xbf16>, vector<32x16xbf16>, vector<32x16xf32> -> vector<32x16xf32>
    %c0_89 = arith.constant 0 : index
    %c0_90 = arith.constant 0 : index
    %288 = vector.load %arg31[%c0_89, %c0_90] : memref<32x128xf32, #tpu.memory_space<vmem>>, vector<32x16xf32>
    tpu.vector_store %arg31[%c0_89, %c0_90], %287 {strides = array<i32>} : memref<32x128xf32, #tpu.memory_space<vmem>>, vector<32x16xf32>,
    %289 = vector.extract_strided_slice %262 {offsets = [0, 1], sizes = [32, 1], strides = [1, 1]} : vector<32x16xf32> to vector<32x1xf32>
    %290 = vector.extract_strided_slice %262 {offsets = [0, 9], sizes = [32, 1], strides = [1, 1]} : vector<32x16xf32> to vector<32x1xf32>
    %291 = tpu.transpose %289, [1, 0] : vector<32x1xf32> -> vector<1x32xf32>
    %292 = vector.broadcast %290 : vector<32x1xf32> to vector<32x32xf32>
    %293 = vector.broadcast %291 : vector<1x32xf32> to vector<32x32xf32>
    %294 = arith.addf %292, %293 : vector<32x32xf32>
    %cst_91 = arith.constant 0.000000e+00 : f32
    %295 = vector.broadcast %cst_91 : f32 to vector<32x32xf32>
    %296 = arith.cmpf ogt, %294, %295 : vector<32x32xf32>
    %cst_92 = arith.constant 2.000000e-01 : f32
    %297 = vector.broadcast %cst_92 : f32 to vector<32x32xf32>
    %298 = arith.mulf %297, %294 : vector<32x32xf32>
    %299 = arith.select %296, %294, %298 : vector<32x32xi1>, vector<32x32xf32>
    %300 = arith.addf %299, %0 : vector<32x32xf32>
    %cst_93 = arith.constant dense<0xFF800000> : vector<32xf32>
    %301 = vector.multi_reduction <maximumf>, %300, %cst_93 [1] : vector<32x32xf32> to vector<32xf32>
    %302 = vector.shape_cast %301 : vector<32xf32> to vector<32x1xf32>
    %303 = vector.broadcast %302 : vector<32x1xf32> to vector<32x32xf32>
    %304 = arith.subf %300, %303 : vector<32x32xf32>
    %305 = math.exp %304 : vector<32x32xf32>
    %cst_94 = arith.constant dense<0.000000e+00> : vector<32xf32>
    %306 = vector.multi_reduction <add>, %305, %cst_94 [1] : vector<32x32xf32> to vector<32xf32>
    %307 = vector.shape_cast %306 : vector<32xf32> to vector<32x1xf32>
    %308 = tpu.reciprocal %307 {approx = true} : vector<32x1xf32> -> vector<32x1xf32>
    %309 = vector.broadcast %308 : vector<32x1xf32> to vector<32x32xf32>
    %310 = arith.mulf %305, %309 : vector<32x32xf32>
    %311 = arith.truncf %310 : vector<32x32xf32> to vector<32x32xbf16>
    %312 = vector.extract_strided_slice %259 {offsets = [0, 16], sizes = [32, 16], strides = [1, 1]} : vector<32x128xbf16> to vector<32x16xbf16>
    %cst_95 = arith.constant dense<0.000000e+00> : vector<32x16xf32>
    %313 = tpu.matmul %311, %312, %cst_95 {dimension_numbers = #tpu.dot_dimension_numbers<[1], [0], [0], [1], [0, 0, 1, 1], [], []>} : vector<32x32xbf16>, vector<32x16xbf16>, vector<32x16xf32> -> vector<32x16xf32>
    %c0_96 = arith.constant 0 : index
    %c16_97 = arith.constant 16 : index
    %314 = vector.load %arg31[%c0_96, %c16_97] : memref<32x128xf32, #tpu.memory_space<vmem>>, vector<32x16xf32>
    tpu.vector_store %arg31[%c0_96, %c16_97], %313 {strides = array<i32>} : memref<32x128xf32, #tpu.memory_space<vmem>>, vector<32x16xf32>,
    %315 = vector.extract_strided_slice %262 {offsets = [0, 2], sizes = [32, 1], strides = [1, 1]} : vector<32x16xf32> to vector<32x1xf32>
    %316 = vector.extract_strided_slice %262 {offsets = [0, 10], sizes = [32, 1], strides = [1, 1]} : vector<32x16xf32> to vector<32x1xf32>
    %317 = tpu.transpose %315, [1, 0] : vector<32x1xf32> -> vector<1x32xf32>
    %318 = vector.broadcast %316 : vector<32x1xf32> to vector<32x32xf32>
    %319 = vector.broadcast %317 : vector<1x32xf32> to vector<32x32xf32>
    %320 = arith.addf %318, %319 : vector<32x32xf32>
    %cst_98 = arith.constant 0.000000e+00 : f32
    %321 = vector.broadcast %cst_98 : f32 to vector<32x32xf32>
    %322 = arith.cmpf ogt, %320, %321 : vector<32x32xf32>
    %cst_99 = arith.constant 2.000000e-01 : f32
    %323 = vector.broadcast %cst_99 : f32 to vector<32x32xf32>
    %324 = arith.mulf %323, %320 : vector<32x32xf32>
    %325 = arith.select %322, %320, %324 : vector<32x32xi1>, vector<32x32xf32>
    %326 = arith.addf %325, %0 : vector<32x32xf32>
    %cst_100 = arith.constant dense<0xFF800000> : vector<32xf32>
    %327 = vector.multi_reduction <maximumf>, %326, %cst_100 [1] : vector<32x32xf32> to vector<32xf32>
    %328 = vector.shape_cast %327 : vector<32xf32> to vector<32x1xf32>
    %329 = vector.broadcast %328 : vector<32x1xf32> to vector<32x32xf32>
    %330 = arith.subf %326, %329 : vector<32x32xf32>
    %331 = math.exp %330 : vector<32x32xf32>
    %cst_101 = arith.constant dense<0.000000e+00> : vector<32xf32>
    %332 = vector.multi_reduction <add>, %331, %cst_101 [1] : vector<32x32xf32> to vector<32xf32>
    %333 = vector.shape_cast %332 : vector<32xf32> to vector<32x1xf32>
    %334 = tpu.reciprocal %333 {approx = true} : vector<32x1xf32> -> vector<32x1xf32>
    %335 = vector.broadcast %334 : vector<32x1xf32> to vector<32x32xf32>
    %336 = arith.mulf %331, %335 : vector<32x32xf32>
    %337 = arith.truncf %336 : vector<32x32xf32> to vector<32x32xbf16>
    %338 = vector.extract_strided_slice %259 {offsets = [0, 32], sizes = [32, 16], strides = [1, 1]} : vector<32x128xbf16> to vector<32x16xbf16>
    %cst_102 = arith.constant dense<0.000000e+00> : vector<32x16xf32>
    %339 = tpu.matmul %337, %338, %cst_102 {dimension_numbers = #tpu.dot_dimension_numbers<[1], [0], [0], [1], [0, 0, 1, 1], [], []>} : vector<32x32xbf16>, vector<32x16xbf16>, vector<32x16xf32> -> vector<32x16xf32>
    %c0_103 = arith.constant 0 : index
    %c32_104 = arith.constant 32 : index
    %340 = vector.load %arg31[%c0_103, %c32_104] : memref<32x128xf32, #tpu.memory_space<vmem>>, vector<32x16xf32>
    tpu.vector_store %arg31[%c0_103, %c32_104], %339 {strides = array<i32>} : memref<32x128xf32, #tpu.memory_space<vmem>>, vector<32x16xf32>,
    %341 = vector.extract_strided_slice %262 {offsets = [0, 3], sizes = [32, 1], strides = [1, 1]} : vector<32x16xf32> to vector<32x1xf32>
    %342 = vector.extract_strided_slice %262 {offsets = [0, 11], sizes = [32, 1], strides = [1, 1]} : vector<32x16xf32> to vector<32x1xf32>
    %343 = tpu.transpose %341, [1, 0] : vector<32x1xf32> -> vector<1x32xf32>
    %344 = vector.broadcast %342 : vector<32x1xf32> to vector<32x32xf32>
    %345 = vector.broadcast %343 : vector<1x32xf32> to vector<32x32xf32>
    %346 = arith.addf %344, %345 : vector<32x32xf32>
    %cst_105 = arith.constant 0.000000e+00 : f32
    %347 = vector.broadcast %cst_105 : f32 to vector<32x32xf32>
    %348 = arith.cmpf ogt, %346, %347 : vector<32x32xf32>
    %cst_106 = arith.constant 2.000000e-01 : f32
    %349 = vector.broadcast %cst_106 : f32 to vector<32x32xf32>
    %350 = arith.mulf %349, %346 : vector<32x32xf32>
    %351 = arith.select %348, %346, %350 : vector<32x32xi1>, vector<32x32xf32>
    %352 = arith.addf %351, %0 : vector<32x32xf32>
    %cst_107 = arith.constant dense<0xFF800000> : vector<32xf32>
    %353 = vector.multi_reduction <maximumf>, %352, %cst_107 [1] : vector<32x32xf32> to vector<32xf32>
    %354 = vector.shape_cast %353 : vector<32xf32> to vector<32x1xf32>
    %355 = vector.broadcast %354 : vector<32x1xf32> to vector<32x32xf32>
    %356 = arith.subf %352, %355 : vector<32x32xf32>
    %357 = math.exp %356 : vector<32x32xf32>
    %cst_108 = arith.constant dense<0.000000e+00> : vector<32xf32>
    %358 = vector.multi_reduction <add>, %357, %cst_108 [1] : vector<32x32xf32> to vector<32xf32>
    %359 = vector.shape_cast %358 : vector<32xf32> to vector<32x1xf32>
    %360 = tpu.reciprocal %359 {approx = true} : vector<32x1xf32> -> vector<32x1xf32>
    %361 = vector.broadcast %360 : vector<32x1xf32> to vector<32x32xf32>
    %362 = arith.mulf %357, %361 : vector<32x32xf32>
    %363 = arith.truncf %362 : vector<32x32xf32> to vector<32x32xbf16>
    %364 = vector.extract_strided_slice %259 {offsets = [0, 48], sizes = [32, 16], strides = [1, 1]} : vector<32x128xbf16> to vector<32x16xbf16>
    %cst_109 = arith.constant dense<0.000000e+00> : vector<32x16xf32>
    %365 = tpu.matmul %363, %364, %cst_109 {dimension_numbers = #tpu.dot_dimension_numbers<[1], [0], [0], [1], [0, 0, 1, 1], [], []>} : vector<32x32xbf16>, vector<32x16xbf16>, vector<32x16xf32> -> vector<32x16xf32>
    %c0_110 = arith.constant 0 : index
    %c48_111 = arith.constant 48 : index
    %366 = vector.load %arg31[%c0_110, %c48_111] : memref<32x128xf32, #tpu.memory_space<vmem>>, vector<32x16xf32>
    tpu.vector_store %arg31[%c0_110, %c48_111], %365 {strides = array<i32>} : memref<32x128xf32, #tpu.memory_space<vmem>>, vector<32x16xf32>,
    %367 = vector.extract_strided_slice %262 {offsets = [0, 4], sizes = [32, 1], strides = [1, 1]} : vector<32x16xf32> to vector<32x1xf32>
    %368 = vector.extract_strided_slice %262 {offsets = [0, 12], sizes = [32, 1], strides = [1, 1]} : vector<32x16xf32> to vector<32x1xf32>
    %369 = tpu.transpose %367, [1, 0] : vector<32x1xf32> -> vector<1x32xf32>
    %370 = vector.broadcast %368 : vector<32x1xf32> to vector<32x32xf32>
    %371 = vector.broadcast %369 : vector<1x32xf32> to vector<32x32xf32>
    %372 = arith.addf %370, %371 : vector<32x32xf32>
    %cst_112 = arith.constant 0.000000e+00 : f32
    %373 = vector.broadcast %cst_112 : f32 to vector<32x32xf32>
    %374 = arith.cmpf ogt, %372, %373 : vector<32x32xf32>
    %cst_113 = arith.constant 2.000000e-01 : f32
    %375 = vector.broadcast %cst_113 : f32 to vector<32x32xf32>
    %376 = arith.mulf %375, %372 : vector<32x32xf32>
    %377 = arith.select %374, %372, %376 : vector<32x32xi1>, vector<32x32xf32>
    %378 = arith.addf %377, %0 : vector<32x32xf32>
    %cst_114 = arith.constant dense<0xFF800000> : vector<32xf32>
    %379 = vector.multi_reduction <maximumf>, %378, %cst_114 [1] : vector<32x32xf32> to vector<32xf32>
    %380 = vector.shape_cast %379 : vector<32xf32> to vector<32x1xf32>
    %381 = vector.broadcast %380 : vector<32x1xf32> to vector<32x32xf32>
    %382 = arith.subf %378, %381 : vector<32x32xf32>
    %383 = math.exp %382 : vector<32x32xf32>
    %cst_115 = arith.constant dense<0.000000e+00> : vector<32xf32>
    %384 = vector.multi_reduction <add>, %383, %cst_115 [1] : vector<32x32xf32> to vector<32xf32>
    %385 = vector.shape_cast %384 : vector<32xf32> to vector<32x1xf32>
    %386 = tpu.reciprocal %385 {approx = true} : vector<32x1xf32> -> vector<32x1xf32>
    %387 = vector.broadcast %386 : vector<32x1xf32> to vector<32x32xf32>
    %388 = arith.mulf %383, %387 : vector<32x32xf32>
    %389 = arith.truncf %388 : vector<32x32xf32> to vector<32x32xbf16>
    %390 = vector.extract_strided_slice %259 {offsets = [0, 64], sizes = [32, 16], strides = [1, 1]} : vector<32x128xbf16> to vector<32x16xbf16>
    %cst_116 = arith.constant dense<0.000000e+00> : vector<32x16xf32>
    %391 = tpu.matmul %389, %390, %cst_116 {dimension_numbers = #tpu.dot_dimension_numbers<[1], [0], [0], [1], [0, 0, 1, 1], [], []>} : vector<32x32xbf16>, vector<32x16xbf16>, vector<32x16xf32> -> vector<32x16xf32>
    %c0_117 = arith.constant 0 : index
    %c64_118 = arith.constant 64 : index
    %392 = vector.load %arg31[%c0_117, %c64_118] : memref<32x128xf32, #tpu.memory_space<vmem>>, vector<32x16xf32>
    tpu.vector_store %arg31[%c0_117, %c64_118], %391 {strides = array<i32>} : memref<32x128xf32, #tpu.memory_space<vmem>>, vector<32x16xf32>,
    %393 = vector.extract_strided_slice %262 {offsets = [0, 5], sizes = [32, 1], strides = [1, 1]} : vector<32x16xf32> to vector<32x1xf32>
    %394 = vector.extract_strided_slice %262 {offsets = [0, 13], sizes = [32, 1], strides = [1, 1]} : vector<32x16xf32> to vector<32x1xf32>
    %395 = tpu.transpose %393, [1, 0] : vector<32x1xf32> -> vector<1x32xf32>
    %396 = vector.broadcast %394 : vector<32x1xf32> to vector<32x32xf32>
    %397 = vector.broadcast %395 : vector<1x32xf32> to vector<32x32xf32>
    %398 = arith.addf %396, %397 : vector<32x32xf32>
    %cst_119 = arith.constant 0.000000e+00 : f32
    %399 = vector.broadcast %cst_119 : f32 to vector<32x32xf32>
    %400 = arith.cmpf ogt, %398, %399 : vector<32x32xf32>
    %cst_120 = arith.constant 2.000000e-01 : f32
    %401 = vector.broadcast %cst_120 : f32 to vector<32x32xf32>
    %402 = arith.mulf %401, %398 : vector<32x32xf32>
    %403 = arith.select %400, %398, %402 : vector<32x32xi1>, vector<32x32xf32>
    %404 = arith.addf %403, %0 : vector<32x32xf32>
    %cst_121 = arith.constant dense<0xFF800000> : vector<32xf32>
    %405 = vector.multi_reduction <maximumf>, %404, %cst_121 [1] : vector<32x32xf32> to vector<32xf32>
    %406 = vector.shape_cast %405 : vector<32xf32> to vector<32x1xf32>
    %407 = vector.broadcast %406 : vector<32x1xf32> to vector<32x32xf32>
    %408 = arith.subf %404, %407 : vector<32x32xf32>
    %409 = math.exp %408 : vector<32x32xf32>
    %cst_122 = arith.constant dense<0.000000e+00> : vector<32xf32>
    %410 = vector.multi_reduction <add>, %409, %cst_122 [1] : vector<32x32xf32> to vector<32xf32>
    %411 = vector.shape_cast %410 : vector<32xf32> to vector<32x1xf32>
    %412 = tpu.reciprocal %411 {approx = true} : vector<32x1xf32> -> vector<32x1xf32>
    %413 = vector.broadcast %412 : vector<32x1xf32> to vector<32x32xf32>
    %414 = arith.mulf %409, %413 : vector<32x32xf32>
    %415 = arith.truncf %414 : vector<32x32xf32> to vector<32x32xbf16>
    %416 = vector.extract_strided_slice %259 {offsets = [0, 80], sizes = [32, 16], strides = [1, 1]} : vector<32x128xbf16> to vector<32x16xbf16>
    %cst_123 = arith.constant dense<0.000000e+00> : vector<32x16xf32>
    %417 = tpu.matmul %415, %416, %cst_123 {dimension_numbers = #tpu.dot_dimension_numbers<[1], [0], [0], [1], [0, 0, 1, 1], [], []>} : vector<32x32xbf16>, vector<32x16xbf16>, vector<32x16xf32> -> vector<32x16xf32>
    %c0_124 = arith.constant 0 : index
    %c80_125 = arith.constant 80 : index
    %418 = vector.load %arg31[%c0_124, %c80_125] : memref<32x128xf32, #tpu.memory_space<vmem>>, vector<32x16xf32>
    tpu.vector_store %arg31[%c0_124, %c80_125], %417 {strides = array<i32>} : memref<32x128xf32, #tpu.memory_space<vmem>>, vector<32x16xf32>,
    %419 = vector.extract_strided_slice %262 {offsets = [0, 6], sizes = [32, 1], strides = [1, 1]} : vector<32x16xf32> to vector<32x1xf32>
    %420 = vector.extract_strided_slice %262 {offsets = [0, 14], sizes = [32, 1], strides = [1, 1]} : vector<32x16xf32> to vector<32x1xf32>
    %421 = tpu.transpose %419, [1, 0] : vector<32x1xf32> -> vector<1x32xf32>
    %422 = vector.broadcast %420 : vector<32x1xf32> to vector<32x32xf32>
    %423 = vector.broadcast %421 : vector<1x32xf32> to vector<32x32xf32>
    %424 = arith.addf %422, %423 : vector<32x32xf32>
    %cst_126 = arith.constant 0.000000e+00 : f32
    %425 = vector.broadcast %cst_126 : f32 to vector<32x32xf32>
    %426 = arith.cmpf ogt, %424, %425 : vector<32x32xf32>
    %cst_127 = arith.constant 2.000000e-01 : f32
    %427 = vector.broadcast %cst_127 : f32 to vector<32x32xf32>
    %428 = arith.mulf %427, %424 : vector<32x32xf32>
    %429 = arith.select %426, %424, %428 : vector<32x32xi1>, vector<32x32xf32>
    %430 = arith.addf %429, %0 : vector<32x32xf32>
    %cst_128 = arith.constant dense<0xFF800000> : vector<32xf32>
    %431 = vector.multi_reduction <maximumf>, %430, %cst_128 [1] : vector<32x32xf32> to vector<32xf32>
    %432 = vector.shape_cast %431 : vector<32xf32> to vector<32x1xf32>
    %433 = vector.broadcast %432 : vector<32x1xf32> to vector<32x32xf32>
    %434 = arith.subf %430, %433 : vector<32x32xf32>
    %435 = math.exp %434 : vector<32x32xf32>
    %cst_129 = arith.constant dense<0.000000e+00> : vector<32xf32>
    %436 = vector.multi_reduction <add>, %435, %cst_129 [1] : vector<32x32xf32> to vector<32xf32>
    %437 = vector.shape_cast %436 : vector<32xf32> to vector<32x1xf32>
    %438 = tpu.reciprocal %437 {approx = true} : vector<32x1xf32> -> vector<32x1xf32>
    %439 = vector.broadcast %438 : vector<32x1xf32> to vector<32x32xf32>
    %440 = arith.mulf %435, %439 : vector<32x32xf32>
    %441 = arith.truncf %440 : vector<32x32xf32> to vector<32x32xbf16>
    %442 = vector.extract_strided_slice %259 {offsets = [0, 96], sizes = [32, 16], strides = [1, 1]} : vector<32x128xbf16> to vector<32x16xbf16>
    %cst_130 = arith.constant dense<0.000000e+00> : vector<32x16xf32>
    %443 = tpu.matmul %441, %442, %cst_130 {dimension_numbers = #tpu.dot_dimension_numbers<[1], [0], [0], [1], [0, 0, 1, 1], [], []>} : vector<32x32xbf16>, vector<32x16xbf16>, vector<32x16xf32> -> vector<32x16xf32>
    %c0_131 = arith.constant 0 : index
    %c96_132 = arith.constant 96 : index
    %444 = vector.load %arg31[%c0_131, %c96_132] : memref<32x128xf32, #tpu.memory_space<vmem>>, vector<32x16xf32>
    tpu.vector_store %arg31[%c0_131, %c96_132], %443 {strides = array<i32>} : memref<32x128xf32, #tpu.memory_space<vmem>>, vector<32x16xf32>,
    %445 = vector.extract_strided_slice %262 {offsets = [0, 7], sizes = [32, 1], strides = [1, 1]} : vector<32x16xf32> to vector<32x1xf32>
    %446 = vector.extract_strided_slice %262 {offsets = [0, 15], sizes = [32, 1], strides = [1, 1]} : vector<32x16xf32> to vector<32x1xf32>
    %447 = tpu.transpose %445, [1, 0] : vector<32x1xf32> -> vector<1x32xf32>
    %448 = vector.broadcast %446 : vector<32x1xf32> to vector<32x32xf32>
    %449 = vector.broadcast %447 : vector<1x32xf32> to vector<32x32xf32>
    %450 = arith.addf %448, %449 : vector<32x32xf32>
    %cst_133 = arith.constant 0.000000e+00 : f32
    %451 = vector.broadcast %cst_133 : f32 to vector<32x32xf32>
    %452 = arith.cmpf ogt, %450, %451 : vector<32x32xf32>
    %cst_134 = arith.constant 2.000000e-01 : f32
    %453 = vector.broadcast %cst_134 : f32 to vector<32x32xf32>
    %454 = arith.mulf %453, %450 : vector<32x32xf32>
    %455 = arith.select %452, %450, %454 : vector<32x32xi1>, vector<32x32xf32>
    %456 = arith.addf %455, %0 : vector<32x32xf32>
    %cst_135 = arith.constant dense<0xFF800000> : vector<32xf32>
    %457 = vector.multi_reduction <maximumf>, %456, %cst_135 [1] : vector<32x32xf32> to vector<32xf32>
    %458 = vector.shape_cast %457 : vector<32xf32> to vector<32x1xf32>
    %459 = vector.broadcast %458 : vector<32x1xf32> to vector<32x32xf32>
    %460 = arith.subf %456, %459 : vector<32x32xf32>
    %461 = math.exp %460 : vector<32x32xf32>
    %cst_136 = arith.constant dense<0.000000e+00> : vector<32xf32>
    %462 = vector.multi_reduction <add>, %461, %cst_136 [1] : vector<32x32xf32> to vector<32xf32>
    %463 = vector.shape_cast %462 : vector<32xf32> to vector<32x1xf32>
    %464 = tpu.reciprocal %463 {approx = true} : vector<32x1xf32> -> vector<32x1xf32>
    %465 = vector.broadcast %464 : vector<32x1xf32> to vector<32x32xf32>
    %466 = arith.mulf %461, %465 : vector<32x32xf32>
    %467 = arith.truncf %466 : vector<32x32xf32> to vector<32x32xbf16>
    %468 = vector.extract_strided_slice %259 {offsets = [0, 112], sizes = [32, 16], strides = [1, 1]} : vector<32x128xbf16> to vector<32x16xbf16>
    %cst_137 = arith.constant dense<0.000000e+00> : vector<32x16xf32>
    %469 = tpu.matmul %467, %468, %cst_137 {dimension_numbers = #tpu.dot_dimension_numbers<[1], [0], [0], [1], [0, 0, 1, 1], [], []>} : vector<32x32xbf16>, vector<32x16xbf16>, vector<32x16xf32> -> vector<32x16xf32>
    %c0_138 = arith.constant 0 : index
    %c112_139 = arith.constant 112 : index
    %470 = vector.load %arg31[%c0_138, %c112_139] : memref<32x128xf32, #tpu.memory_space<vmem>>, vector<32x16xf32>
    tpu.vector_store %arg31[%c0_138, %c112_139], %469 {strides = array<i32>} : memref<32x128xf32, #tpu.memory_space<vmem>>, vector<32x16xf32>,
    %c0_140 = arith.constant 0 : index
    %c0_141 = arith.constant 0 : index
    %471 = vector.load %arg31[%c0_140, %c0_141] : memref<32x128xf32, #tpu.memory_space<vmem>>, vector<32x128xf32>
    %472 = arith.truncf %471 : vector<32x128xf32> to vector<32x128xbf16>
    %c0_142 = arith.constant 0 : index
    %c0_143 = arith.constant 0 : index
    %473 = vector.load %arg15[%c0_142, %c0_143] : memref<128x128xf32, #tpu.memory_space<vmem>>, vector<128x128xf32>
    %474 = arith.truncf %473 : vector<128x128xf32> to vector<128x128xbf16>
    %cst_144 = arith.constant dense<0.000000e+00> : vector<32x128xf32>
    %475 = tpu.matmul %472, %474, %cst_144 {dimension_numbers = #tpu.dot_dimension_numbers<[1], [0], [0], [1], [0, 0, 1, 1], [], []>} : vector<32x128xbf16>, vector<128x128xbf16>, vector<32x128xf32> -> vector<32x128xf32>
    %c0_145 = arith.constant 0 : index
    %c0_146 = arith.constant 0 : index
    %476 = vector.load %arg16[%c0_145, %c0_146] : memref<1x128xf32, #tpu.memory_space<vmem>>, vector<1x128xf32>
    %477 = vector.broadcast %476 : vector<1x128xf32> to vector<32x128xf32>
    %478 = arith.addf %475, %477 : vector<32x128xf32>
    %cst_147 = arith.constant dense<0.000000e+00> : vector<32xf32>
    %479 = vector.multi_reduction <add>, %478, %cst_147 [1] : vector<32x128xf32> to vector<32xf32>
    %480 = vector.shape_cast %479 : vector<32xf32> to vector<32x1xf32>
    %cst_148 = arith.constant 1.280000e+02 : f32
    %481 = vector.broadcast %cst_148 : f32 to vector<32x1xf32>
    %482 = arith.divf %480, %481 : vector<32x1xf32>
    %483 = vector.broadcast %482 : vector<32x1xf32> to vector<32x128xf32>
    %484 = arith.subf %478, %483 : vector<32x128xf32>
    %485 = arith.mulf %484, %484 : vector<32x128xf32>
    %cst_149 = arith.constant dense<0.000000e+00> : vector<32xf32>
    %486 = vector.multi_reduction <add>, %485, %cst_149 [1] : vector<32x128xf32> to vector<32xf32>
    %487 = vector.shape_cast %486 : vector<32xf32> to vector<32x1xf32>
    %cst_150 = arith.constant 1.280000e+02 : f32
    %488 = vector.broadcast %cst_150 : f32 to vector<32x1xf32>
    %489 = arith.divf %487, %488 : vector<32x1xf32>
    %cst_151 = arith.constant 9.99999974E-6 : f32
    %490 = vector.broadcast %cst_151 : f32 to vector<32x1xf32>
    %491 = arith.addf %489, %490 : vector<32x1xf32>
    %492 = math.rsqrt %491 : vector<32x1xf32>
    %493 = vector.broadcast %492 : vector<32x1xf32> to vector<32x128xf32>
    %494 = arith.mulf %484, %493 : vector<32x128xf32>
    %c0_152 = arith.constant 0 : index
    %c0_153 = arith.constant 0 : index
    %495 = vector.load %arg17[%c0_152, %c0_153] : memref<1x128xf32, #tpu.memory_space<vmem>>, vector<1x128xf32>
    %496 = vector.broadcast %495 : vector<1x128xf32> to vector<32x128xf32>
    %497 = arith.mulf %494, %496 : vector<32x128xf32>
    %c0_154 = arith.constant 0 : index
    %c0_155 = arith.constant 0 : index
    %498 = vector.load %arg18[%c0_154, %c0_155] : memref<1x128xf32, #tpu.memory_space<vmem>>, vector<1x128xf32>
    %499 = vector.broadcast %498 : vector<1x128xf32> to vector<32x128xf32>
    %500 = arith.addf %497, %499 : vector<32x128xf32>
    %c0_156 = arith.constant 0 : index
    %c0_157 = arith.constant 0 : index
    %501 = vector.load %arg19[%c0_156, %c0_157] : memref<128x128xf32, #tpu.memory_space<vmem>>, vector<128x128xf32>
    %502 = arith.truncf %501 : vector<128x128xf32> to vector<128x128xbf16>
    %cst_158 = arith.constant dense<0.000000e+00> : vector<32x128xf32>
    %503 = tpu.matmul %255, %502, %cst_158 {dimension_numbers = #tpu.dot_dimension_numbers<[1], [0], [0], [1], [0, 0, 1, 1], [], []>} : vector<32x128xbf16>, vector<128x128xbf16>, vector<32x128xf32> -> vector<32x128xf32>
    %504 = arith.addf %500, %503 : vector<32x128xf32>
    %c0_159 = arith.constant 0 : index
    %c0_160 = arith.constant 0 : index
    %505 = vector.load %arg20[%c0_159, %c0_160] : memref<1x128xf32, #tpu.memory_space<vmem>>, vector<1x128xf32>
    %506 = vector.broadcast %505 : vector<1x128xf32> to vector<32x128xf32>
    %507 = arith.addf %504, %506 : vector<32x128xf32>
    %508 = arith.truncf %507 : vector<32x128xf32> to vector<32x128xbf16>
    %c0_161 = arith.constant 0 : index
    %c0_162 = arith.constant 0 : index
    %509 = vector.load %arg21[%c0_161, %c0_162] : memref<128x64xf32, #tpu.memory_space<vmem>>, vector<128x64xf32>
    %510 = arith.truncf %509 : vector<128x64xf32> to vector<128x64xbf16>
    %cst_163 = arith.constant dense<0.000000e+00> : vector<32x64xf32>
    %511 = tpu.matmul %508, %510, %cst_163 {dimension_numbers = #tpu.dot_dimension_numbers<[1], [0], [0], [1], [0, 0, 1, 1], [], []>} : vector<32x128xbf16>, vector<128x64xbf16>, vector<32x64xf32> -> vector<32x64xf32>
    %c0_164 = arith.constant 0 : index
    %c0_165 = arith.constant 0 : index
    %512 = vector.load %arg22[%c0_164, %c0_165] : memref<1x64xf32, #tpu.memory_space<vmem>>, vector<1x64xf32>
    %513 = vector.broadcast %512 : vector<1x64xf32> to vector<32x64xf32>
    %514 = arith.addf %511, %513 : vector<32x64xf32>
    %cst_166 = arith.constant 0.000000e+00 : f32
    %515 = vector.broadcast %cst_166 : f32 to vector<32x64xf32>
    %516 = arith.maximumf %514, %515 : vector<32x64xf32>
    %517 = arith.truncf %516 : vector<32x64xf32> to vector<32x64xbf16>
    %c0_167 = arith.constant 0 : index
    %c0_168 = arith.constant 0 : index
    %518 = vector.load %arg23[%c0_167, %c0_168] : memref<64x128xf32, #tpu.memory_space<vmem>>, vector<64x128xf32>
    %519 = arith.truncf %518 : vector<64x128xf32> to vector<64x128xbf16>
    %cst_169 = arith.constant dense<0.000000e+00> : vector<32x128xf32>
    %520 = tpu.matmul %517, %519, %cst_169 {dimension_numbers = #tpu.dot_dimension_numbers<[1], [0], [0], [1], [0, 0, 1, 1], [], []>} : vector<32x64xbf16>, vector<64x128xbf16>, vector<32x128xf32> -> vector<32x128xf32>
    %c0_170 = arith.constant 0 : index
    %c0_171 = arith.constant 0 : index
    %521 = vector.load %arg24[%c0_170, %c0_171] : memref<1x128xf32, #tpu.memory_space<vmem>>, vector<1x128xf32>
    %522 = vector.broadcast %521 : vector<1x128xf32> to vector<32x128xf32>
    %523 = arith.addf %520, %522 : vector<32x128xf32>
    %c0_172 = arith.constant 0 : index
    %c0_173 = arith.constant 0 : index
    %524 = vector.load %arg29[%c0_172, %c0_173] : memref<32x128xf32, #tpu.memory_space<vmem>>, vector<32x128xf32>
    tpu.vector_store %arg29[%c0_172, %c0_173], %523 {strides = array<i32>} : memref<32x128xf32, #tpu.memory_space<vmem>>, vector<32x128xf32>,
    %cst_174 = arith.constant dense<0.000000e+00> : vector<128xf32>
    %525 = vector.multi_reduction <add>, %507, %cst_174 [0] : vector<32x128xf32> to vector<128xf32>
    %526 = vector.shape_cast %525 : vector<128xf32> to vector<1x128xf32>
    %cst_175 = arith.constant 3.200000e+01 : f32
    %527 = vector.broadcast %cst_175 : f32 to vector<1x128xf32>
    %528 = arith.divf %526, %527 : vector<1x128xf32>
    %c0_176 = arith.constant 0 : index
    %c0_177 = arith.constant 0 : index
    %529 = vector.load %arg25[%c0_176, %c0_177] : memref<128x32xf32, #tpu.memory_space<vmem>>, vector<128x32xf32>
    %cst_178 = arith.constant dense<0.000000e+00> : vector<1x32xf32>
    %530 = tpu.matmul %528, %529, %cst_178 {dimension_numbers = #tpu.dot_dimension_numbers<[1], [0], [0], [1], [0, 0, 1, 1], [], []>} : vector<1x128xf32>, vector<128x32xf32>, vector<1x32xf32> -> vector<1x32xf32>
    %c0_179 = arith.constant 0 : index
    %c0_180 = arith.constant 0 : index
    %531 = vector.load %arg26[%c0_179, %c0_180] : memref<1x32xf32, #tpu.memory_space<vmem>>, vector<1x32xf32>
    %532 = arith.addf %530, %531 : vector<1x32xf32>
    %cst_181 = arith.constant 0.000000e+00 : f32
    %533 = vector.broadcast %cst_181 : f32 to vector<1x32xf32>
    %534 = arith.maximumf %532, %533 : vector<1x32xf32>
    %c0_182 = arith.constant 0 : index
    %c0_183 = arith.constant 0 : index
    %535 = vector.load %arg27[%c0_182, %c0_183] : memref<32x1xf32, #tpu.memory_space<vmem>>, vector<32x1xf32>
    %cst_184 = arith.constant dense<0.000000e+00> : vector<1x1xf32>
    %536 = tpu.matmul %534, %535, %cst_184 {dimension_numbers = #tpu.dot_dimension_numbers<[1], [0], [0], [1], [0, 0, 1, 1], [], []>} : vector<1x32xf32>, vector<32x1xf32>, vector<1x1xf32> -> vector<1x1xf32>
    %c0_185 = arith.constant 0 : index
    %c0_186 = arith.constant 0 : index
    %537 = vector.load %arg28[%c0_185, %c0_186] : memref<1x1xf32, #tpu.memory_space<vmem>>, vector<1x1xf32>
    %538 = arith.addf %536, %537 : vector<1x1xf32>
    %539 = arith.negf %538 : vector<1x1xf32>
    %540 = math.exp %539 : vector<1x1xf32>
    %cst_187 = arith.constant 1.000000e+00 : f32
    %541 = vector.broadcast %cst_187 : f32 to vector<1x1xf32>
    %542 = arith.addf %541, %540 : vector<1x1xf32>
    %543 = arith.divf %541, %542 : vector<1x1xf32>
    %c0_188 = arith.constant 0 : index
    %c0_189 = arith.constant 0 : index
    %544 = vector.load %arg30[%c0_188, %c0_189] : memref<1x1xf32, #tpu.memory_space<vmem>>, vector<1x1xf32>
    tpu.vector_store %arg30[%c0_188, %c0_189], %543 {strides = array<i32>} : memref<1x1xf32, #tpu.memory_space<vmem>>, vector<1x1xf32>,
    return
  }
  func.func @transform_0(%arg0: i32) -> (i32, i32) {
    %c0_i32 = arith.constant 0 : i32
    %c0_i32_0 = arith.constant 0 : i32
    %c0_i32_1 = arith.constant 0 : i32
    return %c0_i32, %c0_i32_0 : i32, i32
  }
  func.func @transform_1(%arg0: i32) -> (i32, i32) {
    %c0_i32 = arith.constant 0 : i32
    %c0_i32_0 = arith.constant 0 : i32
    %c0_i32_1 = arith.constant 0 : i32
    return %c0_i32, %c0_i32_0 : i32, i32
  }
  func.func @transform_2(%arg0: i32) -> (i32, i32) {
    %c0_i32 = arith.constant 0 : i32
    %c0_i32_0 = arith.constant 0 : i32
    %c0_i32_1 = arith.constant 0 : i32
    return %c0_i32, %c0_i32_0 : i32, i32
  }
  func.func @transform_3(%arg0: i32) -> (i32, i32) {
    %c0_i32 = arith.constant 0 : i32
    %c0_i32_0 = arith.constant 0 : i32
    %c0_i32_1 = arith.constant 0 : i32
    return %c0_i32, %c0_i32_0 : i32, i32
  }
  func.func @transform_4(%arg0: i32) -> (i32, i32) {
    %c0_i32 = arith.constant 0 : i32
    %c0_i32_0 = arith.constant 0 : i32
    %c0_i32_1 = arith.constant 0 : i32
    return %c0_i32, %c0_i32_0 : i32, i32
  }
  func.func @transform_5(%arg0: i32) -> (i32, i32) {
    %c0_i32 = arith.constant 0 : i32
    %c0_i32_0 = arith.constant 0 : i32
    %c0_i32_1 = arith.constant 0 : i32
    return %c0_i32, %c0_i32_0 : i32, i32
  }
  func.func @transform_6(%arg0: i32) -> (i32, i32) {
    %c0_i32 = arith.constant 0 : i32
    %c0_i32_0 = arith.constant 0 : i32
    %c0_i32_1 = arith.constant 0 : i32
    return %c0_i32, %c0_i32_0 : i32, i32
  }
  func.func @transform_7(%arg0: i32) -> (i32, i32) {
    %c0_i32 = arith.constant 0 : i32
    %c0_i32_0 = arith.constant 0 : i32
    %c0_i32_1 = arith.constant 0 : i32
    return %c0_i32, %c0_i32_0 : i32, i32
  }
  func.func @transform_8(%arg0: i32) -> (i32, i32) {
    %c0_i32 = arith.constant 0 : i32
    %c0_i32_0 = arith.constant 0 : i32
    %c0_i32_1 = arith.constant 0 : i32
    return %c0_i32, %c0_i32_0 : i32, i32
  }
  func.func @transform_9(%arg0: i32) -> (i32, i32) {
    %c0_i32 = arith.constant 0 : i32
    %c0_i32_0 = arith.constant 0 : i32
    %c0_i32_1 = arith.constant 0 : i32
    return %c0_i32, %c0_i32_0 : i32, i32
  }
  func.func @transform_10(%arg0: i32) -> (i32, i32) {
    %c0_i32 = arith.constant 0 : i32
    %c0_i32_0 = arith.constant 0 : i32
    %c0_i32_1 = arith.constant 0 : i32
    return %c0_i32, %c0_i32_0 : i32, i32
  }
  func.func @transform_11(%arg0: i32) -> (i32, i32) {
    %c0_i32 = arith.constant 0 : i32
    %c0_i32_0 = arith.constant 0 : i32
    %c0_i32_1 = arith.constant 0 : i32
    return %c0_i32, %c0_i32_0 : i32, i32
  }
  func.func @transform_12(%arg0: i32) -> (i32, i32) {
    %c0_i32 = arith.constant 0 : i32
    %c0_i32_0 = arith.constant 0 : i32
    %c0_i32_1 = arith.constant 0 : i32
    return %c0_i32, %c0_i32_0 : i32, i32
  }
  func.func @transform_13(%arg0: i32) -> (i32, i32) {
    %c0_i32 = arith.constant 0 : i32
    %c0_i32_0 = arith.constant 0 : i32
    %c0_i32_1 = arith.constant 0 : i32
    return %c0_i32, %c0_i32_0 : i32, i32
  }
  func.func @transform_14(%arg0: i32) -> (i32, i32) {
    %c0_i32 = arith.constant 0 : i32
    %c0_i32_0 = arith.constant 0 : i32
    %c0_i32_1 = arith.constant 0 : i32
    return %c0_i32, %c0_i32_0 : i32, i32
  }
  func.func @transform_15(%arg0: i32) -> (i32, i32) {
    %c0_i32 = arith.constant 0 : i32
    %c0_i32_0 = arith.constant 0 : i32
    %c0_i32_1 = arith.constant 0 : i32
    return %c0_i32, %c0_i32_0 : i32, i32
  }
  func.func @transform_16(%arg0: i32) -> (i32, i32) {
    %c0_i32 = arith.constant 0 : i32
    %c0_i32_0 = arith.constant 0 : i32
    %c0_i32_1 = arith.constant 0 : i32
    return %c0_i32, %c0_i32_0 : i32, i32
  }
  func.func @transform_17(%arg0: i32) -> (i32, i32) {
    %c0_i32 = arith.constant 0 : i32
    %c0_i32_0 = arith.constant 0 : i32
    %c0_i32_1 = arith.constant 0 : i32
    return %c0_i32, %c0_i32_0 : i32, i32
  }
  func.func @transform_18(%arg0: i32) -> (i32, i32) {
    %c0_i32 = arith.constant 0 : i32
    %c0_i32_0 = arith.constant 0 : i32
    %c0_i32_1 = arith.constant 0 : i32
    return %c0_i32, %c0_i32_0 : i32, i32
  }
  func.func @transform_19(%arg0: i32) -> (i32, i32) {
    %c0_i32 = arith.constant 0 : i32
    %c0_i32_0 = arith.constant 0 : i32
    %c0_i32_1 = arith.constant 0 : i32
    return %c0_i32, %c0_i32_0 : i32, i32
  }
  func.func @transform_20(%arg0: i32) -> (i32, i32) {
    %c0_i32 = arith.constant 0 : i32
    %c0_i32_0 = arith.constant 0 : i32
    %c0_i32_1 = arith.constant 0 : i32
    return %c0_i32, %c0_i32_0 : i32, i32
  }
  func.func @transform_21(%arg0: i32) -> (i32, i32) {
    %c0_i32 = arith.constant 0 : i32
    %c0_i32_0 = arith.constant 0 : i32
    %c0_i32_1 = arith.constant 0 : i32
    return %c0_i32, %c0_i32_0 : i32, i32
  }
  func.func @transform_22(%arg0: i32) -> (i32, i32) {
    %c0_i32 = arith.constant 0 : i32
    %c0_i32_0 = arith.constant 0 : i32
    %c0_i32_1 = arith.constant 0 : i32
    return %c0_i32, %c0_i32_0 : i32, i32
  }
  func.func @transform_23(%arg0: i32) -> (i32, i32) {
    %c0_i32 = arith.constant 0 : i32
    %c0_i32_0 = arith.constant 0 : i32
    %c0_i32_1 = arith.constant 0 : i32
    return %c0_i32, %c0_i32_0 : i32, i32
  }
  func.func @transform_24(%arg0: i32) -> (i32, i32) {
    %c0_i32 = arith.constant 0 : i32
    %c0_i32_0 = arith.constant 0 : i32
    %c0_i32_1 = arith.constant 0 : i32
    return %c0_i32, %c0_i32_0 : i32, i32
  }
  func.func @transform_25(%arg0: i32) -> (i32, i32) {
    %c0_i32 = arith.constant 0 : i32
    %c0_i32_0 = arith.constant 0 : i32
    %c0_i32_1 = arith.constant 0 : i32
    return %c0_i32, %c0_i32_0 : i32, i32
  }
  func.func @transform_26(%arg0: i32) -> (i32, i32) {
    %c0_i32 = arith.constant 0 : i32
    %c0_i32_0 = arith.constant 0 : i32
    %c0_i32_1 = arith.constant 0 : i32
    return %c0_i32, %c0_i32_0 : i32, i32
  }
  func.func @transform_27(%arg0: i32) -> (i32, i32) {
    %c0_i32 = arith.constant 0 : i32
    %c0_i32_0 = arith.constant 0 : i32
    %c0_i32_1 = arith.constant 0 : i32
    return %c0_i32, %c0_i32_0 : i32, i32
  }
  func.func @transform_28(%arg0: i32) -> (i32, i32) {
    %c0_i32 = arith.constant 0 : i32
    %c0_i32_0 = arith.constant 0 : i32
    %c0_i32_1 = arith.constant 0 : i32
    return %c0_i32, %c0_i32_0 : i32, i32
  }
  func.func @transform_29(%arg0: i32) -> (i32, i32) {
    %c0_i32 = arith.constant 0 : i32
    %c0_i32_0 = arith.constant 0 : i32
    %c0_i32_1 = arith.constant 0 : i32
    return %c0_i32, %c0_i32_0 : i32, i32
  }
}

</mosaic_0001>

<bundles_post_ra>
// kernel: floorplan_gnn_forward.1
= control target key start
LH: loop header
LB: loop body
LE: loop exit
PB: predicated region body
PF: predicated region fallthrough
CT: control target
= control target key end

     0   :  { %s5919_s6 = smov 1   ;;  %s5920_s10 = smov 2   ;;  %s7882_s0 = inlined_call_operand.smem [shape: u32[30], index: -1, kind: input, shape index: {}] }
   0x1   :  { %s5989_s5 = sld [smem:[%s7882_s0]]   ;;  %s5921_s14 = smov 3  }
   0x2   :  { %s5994_s9 = sld [smem:[%s7882_s0 + %s5919_s6]]   ;;  %s5922_s18 = smov 4  }
   0x3   :  { %s5999_s13 = sld [smem:[%s7882_s0 + %s5920_s10]]   ;;  %s5923_s22 = smov 5  }
   0x4   :  { %s6004_s17 = sld [smem:[%s7882_s0 + %s5921_s14]]   ;;  %s5924_s26 = smov 6  }
   0x5   :  { %s6009_s21 = sld [smem:[%s7882_s0 + %s5922_s18]]   ;;  %s5925_s30 = smov 7  }
   0x6   :  { %s6014_s25 = sld [smem:[%s7882_s0 + %s5923_s22]]   ;;  %s5926_s4 = smov 8  }
   0x7   :  { %s6019_s29 = sld [smem:[%s7882_s0 + %s5924_s26]]   ;;  %s5927_s10 = smov 9  }
   0x8   :  { %s6024_s3 = sld [smem:[%s7882_s0 + %s5925_s30]]   ;;  %s5928_s15 = smov 12  }
   0x9   :  { %s6029_s8 = sld [smem:[%s7882_s0 + %s5926_s4]]   ;;  %s5929_s20 = smov 13  }
   0xa   :  { %s6034_s14 = sld [smem:[%s7882_s0 + %s5927_s10]]   ;;  %s5930_s26 = smov 14  }
   0xb   :  { %s6039_s19 = sld [smem:[%s7882_s0 + %s5928_s15]]   ;;  %s5931_s1 = smov 15  }
   0xc   :  { %s6044_s24 = sld [smem:[%s7882_s0 + %s5929_s20]]   ;;  %s5932_s7 = smov 16  }
   0xd   :  { %s6049_s30 = sld [smem:[%s7882_s0 + %s5930_s26]]   ;;  %s5933_s15 = smov 17  }
   0xe   :  { %s6054_s6 = sld [smem:[%s7882_s0 + %s5931_s1]]   ;;  %s5934_s22 = smov 18  }
   0xf   :  { %7904 = sst [smem:[#allocation25_spill]] %s6029_s8  ;;  %s5935_s28 = smov 19  }
  0x10   :  { %s6059_s12 = sld [smem:[%s7882_s0 + %s5932_s7]]   ;;  %s5936_s7 = smov 20  }
  0x11   :  { %s6064_s20 = sld [smem:[%s7882_s0 + %s5933_s15]]   ;;  %s5937_s15 = smov 21  }
  0x12   :  { %7905 = sst [smem:[#allocation26_spill]] %s6044_s24  ;;  %s5944_s10 = smov 28  }
  0x13   :  { %7906 = sst [smem:[#allocation27_spill]] %s6049_s30  ;;  %s5945_s16 = smov 29  }
  0x14   :  { %7907 = sst [smem:[#allocation28_spill]] %s6054_s6 }
  0x15   :  { %s6069_s27 = sld [smem:[%s7882_s0 + %s5934_s22]]   ;;  %s5938_s22 = smov 22  }
  0x16   :  { %7908 = sst [smem:[#allocation29_spill]] %s6059_s12 }
  0x17   :  { %7909 = sst [smem:[#allocation30_spill]] %s6064_s20 }
  0x18   :  { %s6074_s4 = sld [smem:[%s7882_s0 + %s5935_s28]]   ;;  %s5939_s28 = smov 23  }
  0x19   :  { %s6079_s12 = sld [smem:[%s7882_s0 + %s5936_s7]]   ;;  %s5940_s7 = smov 24  }
  0x1a   :  { %s6084_s20 = sld [smem:[%s7882_s0 + %s5937_s15]]   ;;  %s5941_s15 = smov 25  }
  0x1b   :  { %s6089_s6 = sld [smem:[%s7882_s0 + %s5938_s22]]   ;;  %s5942_s22 = smov 26  }
  0x1c   :  { %s6104_s30 = sld [smem:[%s7882_s0 + %s5941_s15]]  }
  0x1d   :  { %s6109_s8 = sld [smem:[%s7882_s0 + %s5942_s22]]  }
  0x1e   :  { %7910 = sst [smem:[#allocation31_spill]] %s6074_s4 }
  0x1f   :  { %7911 = sst [smem:[#allocation32_spill]] %s6079_s12 }
  0x20   :  { %s6094_s4 = sld [smem:[%s7882_s0 + %s5939_s28]]   ;;  %s5943_s28 = smov 27  }
  0x21   :  { %s6099_s12 = sld [smem:[%s7882_s0 + %s5940_s7]]  }
  0x22   :  { %7913 = sst [smem:[#allocation34_spill]] %s6104_s30 }
  0x23   :  { %s4733_s24 = sld [smem:[%s7882_s0 + %s5943_s28]]  }
  0x24   :  { %s6122_s30 = sld [smem:[%s7882_s0 + %s5945_s16]]  }
  0x27   :  { %7912 = sst [smem:[#allocation33_spill]] %s6099_s12 }
  0x28   :  { %s6117_s12 = sld [smem:[%s7882_s0 + %s5944_s10]]  }
  0x29   :  { %v65_v0 = vstv %s4733_s24 }
  0x2a   :  { %66 = vst [vmem:[#allocation3] sm:$0x1] %v65_v0 }
  0x2b   :  { %67 = vsyncpa [#allocation5], 0 }
  0x2c   :  { %68 = vsyncpa [#allocation8], 0 }
  0x2d   :  { %69 = vsyncpa [#allocation11], 0 }
  0x2e   :  { %70 = vsyncpa [#allocation14], 0 }
  0x2f   :  { %71 = vsyncpa [#allocation17], 0 }
  0x30   :  { %72 = vsyncpa [#allocation6], 0  ;;  %s5946_s22 = smov [#allocation7]   ;;  %s5947_s26 = smov [#allocation10]  }
  0x31   :  { %s90_s23 = sshll.u32 %s5946_s22, 4  ;;  %s127_s28 = sshll.u32 %s5947_s26, 4  ;;  %s91_s23 = int_to_ptr.vmem [resolvable:$true] %s90_s23  ;;  %s128_s28 = int_to_ptr.vmem [resolvable:$true] %s127_s28 }
  0x32   :  { %s5735_s1 = scalar_lea.vmem %s91_s23, 512  ;;  %p5740_p1 = scmp.lt.s32.totalorder %s91_s23, %s91_s23 }
  0x33   :  { %p5736_p0 = scmp.ne.s32.totalorder %s91_s23, %s5735_s1  ;;  %p5741_p2 = scmp.lt.s32.totalorder %s5735_s1, %s5735_s1 }
  0x35   :  { %p5742_p3 = por %p5741_p2, %p5740_p1 }
  0x37   :  { %p5743_p4 = pnand %p5742_p3, %p5736_p0 }
  0x39   :  { %5746 = shalt.err (!%p5743_p4)
}
  0x3a   :  { %s5948_s0 = smov 128   ;;  %s5949_s24 = smov 8  }
  0x3b   :  { %96 = dma.hbm_to_vmem [thread:$0]  %s5994_s9, 512, %s91_s23, [#allocation8], %s5948_s0, %s5948_s0, %s5949_s24  }
  0x3c   :  { %s5755_s2 = scalar_lea.vmem %s128_s28, 16  ;;  %s5759_s10 = scalar_lea.vmem %s128_s28, 32 }
  0x3d   :  { %p5756_p5 = scmp.ne.s32.totalorder %s128_s28, %s5755_s2  ;;  %p5760_p6 = scmp.lt.s32.totalorder %s128_s28, %s128_s28 }
  0x3e   :  { %p5761_p7 = scmp.lt.s32.totalorder %s5759_s10, %s5755_s2 }
  0x40   :  { %p5762_p8 = por %p5761_p7, %p5760_p6 }
  0x42   :  { %p5763_p9 = pnand %p5762_p8, %p5756_p5 }
  0x44   :  { %5766 = shalt.err (!%p5763_p9)
}
  0x45   :  { %130 = dma.hbm_to_vmem [thread:$0]  %s6034_s14, 16, %s128_s28, [#allocation11]  }
  0x46   :  { %s5950_s7 = smov [#allocation13]   ;;  %s5951_s16 = smov [#allocation4]  }
  0x47   :  { %s169_s11 = sshll.u32 %s5950_s7, 4  ;;  %s78_s15 = sshll.u32 %s5951_s16, 4  ;;  %s170_s11 = int_to_ptr.vmem [resolvable:$true] %s169_s11  ;;  %s79_s15 = int_to_ptr.vmem [resolvable:$true] %s78_s15 }
  0x48   :  { %s5775_s18 = scalar_lea.vmem %s170_s11, 16  ;;  %s5779_s22 = scalar_lea.vmem %s170_s11, 32 }
  0x49   :  { %p5776_p10 = scmp.ne.s32.totalorder %s170_s11, %s5775_s18  ;;  %p5780_p11 = scmp.lt.s32.totalorder %s170_s11, %s170_s11 }
  0x4a   :  { %p5781_p12 = scmp.lt.s32.totalorder %s5779_s22, %s5775_s18 }
  0x4c   :  { %p5782_p13 = por %p5781_p12, %p5780_p11 }
  0x4e   :  { %p5783_p0 = pnand %p5782_p13, %p5776_p10 }
  0x50   :  { %5786 = shalt.err (!%p5783_p0)
}
  0x51   :  { %172 = dma.hbm_to_vmem [thread:$0]  %s6084_s20, 16, %s170_s11, [#allocation14]  }
  0x52   :  { %s5795_s9 = scalar_lea.vmem %s79_s15, 512  ;;  %p5800_p2 = scmp.lt.s32.totalorder %s79_s15, %s79_s15 }
  0x53   :  { %p5796_p1 = scmp.ne.s32.totalorder %s79_s15, %s5795_s9  ;;  %p5801_p3 = scmp.lt.s32.totalorder %s5795_s9, %s5795_s9 }
  0x55   :  { %p5802_p4 = por %p5801_p3, %p5800_p2 }
  0x57   :  { %p5803_p5 = pnand %p5802_p4, %p5796_p1 }
  0x59   :  { %5806 = shalt.err (!%p5803_p5)
}
  0x5a   :  { %84 = dma.hbm_to_vmem [thread:$0]  %s5989_s5, 512, %s79_s15, [#allocation5], %s5948_s0, %s5948_s0, %s5949_s24  }
  0x5b   :  { %s5952_s14 = smov [#allocation9]   ;;  %s5953_s26 = smov [#allocation12]  }
  0x5c   :  { %s102_s23 = sshll.u32 %s5952_s14, 4  ;;  %s152_s28 = sshll.u32 %s5953_s26, 4  ;;  %s103_s23 = int_to_ptr.vmem [resolvable:$true] %s102_s23  ;;  %s153_s28 = int_to_ptr.vmem [resolvable:$true] %s152_s28 }
  0x5d   :  { %s5815_s1 = scalar_lea.vmem %s103_s23, 1024  ;;  %p5820_p7 = scmp.lt.s32.totalorder %s103_s23, %s103_s23 }
  0x5e   :  { %p5816_p6 = scmp.ne.s32.totalorder %s103_s23, %s5815_s1  ;;  %p5821_p8 = scmp.lt.s32.totalorder %s5815_s1, %s5815_s1 }
  0x60   :  { %p5822_p9 = por %p5821_p8, %p5820_p7 }
  0x62   :  { %p5823_p10 = pnand %p5822_p9, %p5816_p6 }
  0x64   :  { %5826 = shalt.err (!%p5823_p10)
}
  0x65   :  { %108 = dma.hbm_to_vmem [thread:$0]  %s5999_s13, 1024, %s103_s23, [#allocation8], %s5948_s0, %s5948_s0, %s5949_s24  }
  0x66   :  { %s5835_s20 = scalar_lea.vmem %s153_s28, 2048  ;;  %p5840_p12 = scmp.lt.s32.totalorder %s153_s28, %s153_s28 }
  0x67   :  { %p5836_p11 = scmp.ne.s32.totalorder %s153_s28, %s5835_s20  ;;  %p5841_p13 = scmp.lt.s32.totalorder %s5835_s20, %s5835_s20 }
  0x69   :  { %p5842_p0 = por %p5841_p13, %p5840_p12 }
  0x6b   :  { %p5843_p1 = pnand %p5842_p0, %p5836_p11 }
  0x6d   :  { %5846 = shalt.err (!%p5843_p1)
}
  0x6e   :  { %158 = dma.hbm_to_vmem [thread:$0]  %s6069_s27, 2048, %s153_s28, [#allocation11], %s5948_s0, %s5948_s0, %s5949_s24  }
  0x6f   :  { %s5954_s5 = smov [#allocation15]   ;;  %s5955_s10 = smov [#allocation16]  }
  0x70   :  { %s178_s2 = sshll.u32 %s5954_s5, 4  ;;  %s191_s7 = sshll.u32 %s5955_s10, 4  ;;  %s179_s2 = int_to_ptr.vmem [resolvable:$true] %s178_s2  ;;  %s192_s7 = int_to_ptr.vmem [resolvable:$true] %s191_s7 }
  0x71   :  { %s5855_s11 = scalar_lea.vmem %s179_s2, 1024  ;;  %p5860_p3 = scmp.lt.s32.totalorder %s179_s2, %s179_s2 }
  0x72   :  { %p5856_p2 = scmp.ne.s32.totalorder %s179_s2, %s5855_s11  ;;  %p5861_p4 = scmp.lt.s32.totalorder %s5855_s11, %s5855_s11 }
  0x74   :  { %p5862_p5 = por %p5861_p4, %p5860_p3 }
  0x76   :  { %p5863_p6 = pnand %p5862_p5, %p5856_p2 }
  0x78   :  { %5866 = shalt.err (!%p5863_p6)
}
  0x79   :  { %184 = dma.hbm_to_vmem [thread:$0]  %s6089_s6, 1024, %s179_s2, [#allocation14], %s5948_s0, %s5948_s0, %s5949_s24  }
  0x7a   :  { %s5875_s13 = scalar_lea.vmem %s192_s7, 16  ;;  %s5879_s27 = scalar_lea.vmem %s192_s7, 32 }
  0x7b   :  { %p5876_p7 = scmp.ne.s32.totalorder %s192_s7, %s5875_s13  ;;  %p5880_p8 = scmp.lt.s32.totalorder %s192_s7, %s192_s7 }
  0x7c   :  { %p5881_p9 = scmp.lt.s32.totalorder %s5879_s27, %s5875_s13 }
  0x7e   :  { %p5882_p10 = por %p5881_p9, %p5880_p8 }
  0x80   :  { %p5883_p11 = pnand %p5882_p10, %p5876_p7 }
  0x82   :  { %5886 = shalt.err (!%p5883_p11)
}
  0x83   :  { %194 = dma.hbm_to_vmem [thread:$0]  %s6094_s4, 16, %s192_s7, [#allocation17]  }
  0x84   :  { %5907 = dma.done.wait [#allocation5], 512  }
  0x85   :  { %5908 = vsyncadd [#allocation5], 4294966784 }
  0x86   :  { %5909 = dma.done.wait [#allocation8], 1536  }
  0x87   :  { %5910 = vsyncadd [#allocation8], 4294965760 }
  0x88   :  { %5911 = dma.done.wait [#allocation11], 2064  }
  0x89   :  { %5912 = vsyncadd [#allocation11], 4294965232 }
  0x8a   :  { %5913 = dma.done.wait [#allocation14], 1040  }
  0x8b   :  { %5914 = vsyncadd [#allocation14], 4294966256 }
  0x8c   :  { %5915 = dma.done.wait [#allocation17], 16  }
  0x8d   :  { %5916 = vsyncadd [#allocation17], 4294967280  ;;  %v244_v1 = vld [vmem:[#allocation9 + $0x30] sm:$0xff]  ;;  %v245_v2 = vld [vmem:[#allocation9 + $0x38] sm:$0xff]  ;;  %vm257_vm0 = vcmask 523264   ;;  %s5959_s6 = smov 80  }
  0x8e   :  { %v242_v3 = vld [vmem:[#allocation9 + $0x20] sm:$0xff]  ;;  %v249_v4 = vpack.c.bf16 %v245_v2, %v244_v1  ;;  %v243_v5 = vld [vmem:[#allocation9 + $0x28] sm:$0xff]  ;;  %v240_v7 = vld [vmem:[#allocation9 + $0x10] sm:$0xff]  ;;  %s5960_s4 = smov 48   ;;  %s5963_s0 = smov 126   ;;  %vm539_vm2 = vcmask 261120  }
  0x8f   :  { %v248_v6 = vpack.c.bf16 %v243_v5, %v242_v3  ;;  %v241_v8 = vld [vmem:[#allocation9 + $0x18] sm:$0xff]  ;;  %v232_v9 = vld [vmem:[#allocation4] sm:$0xff]  ;;  %v233_v10 = vld [vmem:[#allocation4 + $0x8] sm:$0xff]  ;;  %s5964_s24 = smov 127   ;;  %s5965_s16 = smov 124  }
  0x90   :  { %4962 = vmatprep.subr.bf16.mxu0 %v249_v4  ;;  %v236_v11 = vpack.c.bf16 %v233_v10, %v232_v9  ;;  %v329_v12 = vld [vmem:[%s6009_s21 + $0x70] sm:$0xff]  ;;  %v330_v13 = vld [vmem:[%s6009_s21 + $0x78] sm:$0xff]  ;;  %v327_v14 = vld [vmem:[%s6009_s21 + $0x60] sm:$0xff]  ;;  %v247_v15 = vpack.c.bf16 %v241_v8, %v240_v7  ;;  %s5966_s15 = smov 125   ;;  %s5967_s18 = smov 122  }
  0x91   :  { %4963 = vmatpush3.bf16.msra.mxu0 %v249_v4  ;;  %v238_v16 = vld [vmem:[#allocation9] sm:$0xff]  ;;  %v338_v17 = vpack.c.bf16 %v330_v13, %v329_v12  ;;  %v239_v19 = vld [vmem:[#allocation9 + $0x8] sm:$0xff]  ;;  %v326_v22 = vld [vmem:[%s6009_s21 + $0x58] sm:$0xff]  ;;  %s5968_s22 = smov 123   ;;  %s5969_s9 = smov 121  }
  0x92   :  { %4964 = vmatprep.subr.bf16.mxu0 %v248_v6  ;;  %v328_v18 = vld [vmem:[%s6009_s21 + $0x68] sm:$0xff]  ;;  %4970 = vmatprep.mubr.msk.bf16.mxu0 %vm257_vm0, %v236_v11  ;;  %v325_v21 = vld [vmem:[%s6009_s21 + $0x50] sm:$0xff]  ;;  %v246_v23 = vpack.c.bf16 %v239_v19, %v238_v16  ;;  %v323_v25 = vld [vmem:[%s6009_s21 + $0x40] sm:$0xff]  ;;  %s5976_s14 = smov 32   ;;  %s5977_s23 = smov 16  }
  0x93   :  { %v337_v20 = vpack.c.bf16 %v328_v18, %v327_v14  ;;  %4974 = vmatprep.subr.bf16.mxu1 %v338_v17  ;;  %v336_v24 = vpack.c.bf16 %v326_v22, %v325_v21  ;;  %v324_v26 = vld [vmem:[%s6009_s21 + $0x48] sm:$0xff]  ;;  %v234_v27 = vld [vmem:[#allocation4 + $0x10] sm:$0xff]  ;;  %v235_v28 = vld [vmem:[#allocation4 + $0x18] sm:$0xff]  ;;  %v7893_v21 = vmov 10   ;;  %s7927_s26 = sld [smem:[#allocation28_spill]] }
  0x94   :  { %4975 = vmatpush3.bf16.msra.mxu1 %v338_v17  ;;  %v335_v29 = vpack.c.bf16 %v324_v26, %v323_v25  ;;  %v321_v30 = vld [vmem:[%s6009_s21 + $0x30] sm:$0xff]  ;;  %v322_v31 = vld [vmem:[%s6009_s21 + $0x38] sm:$0xff]  ;;  %v237_v32 = vpack.c.bf16 %v235_v28, %v234_v27  ;;  %v319_v34 = vld [vmem:[%s6009_s21 + $0x20] sm:$0xff]  ;;  %5392 = vset.pattern.permute.xlu0 %v7893_v21  ;;  %s7928_s28 = sld [smem:[#allocation32_spill]] }
  0x95   :  { %4965 = vmatpush3.bf16.msra.mxu0 %v248_v6  ;;  %4976 = vmatprep.subr.bf16.mxu1 %v337_v20  ;;  %v334_v33 = vpack.c.bf16 %v322_v31, %v321_v30  ;;  %v320_v35 = vld [vmem:[%s6009_s21 + $0x28] sm:$0xff]  ;;  %v317_v37 = vld [vmem:[%s6009_s21 + $0x10] sm:$0xff]  ;;  %v318_v38 = vld [vmem:[%s6009_s21 + $0x18] sm:$0xff]  ;;  %v7887_v30 = vmov 9   ;;  %v7891_v31 = vmov 11   ;;  %s7929_s1 = sld [smem:[#allocation29_spill]] }
  0x96   :  { %4966 = vmatprep.subr.bf16.mxu0 %v247_v15  ;;  %v333_v36 = vpack.c.bf16 %v320_v35, %v319_v34  ;;  %v332_v39 = vpack.c.bf16 %v318_v38, %v317_v37  ;;  %v315_v40 = vld [vmem:[%s6009_s21] sm:$0xff]  ;;  %v316_v41 = vld [vmem:[%s6009_s21 + $0x8] sm:$0xff]  ;;  %v404_v43 = vld [vmem:[%s6014_s25 + $0x70] sm:$0xff]  ;;  %s5957_s21 = smov 112   ;;  %v7899_v34 = vmov 13   ;;  %v7897_v35 = vmov 14  }
  0x97   :  { %v331_v42 = vpack.c.bf16 %v316_v41, %v315_v40  ;;  %v405_v44 = vld [vmem:[%s6014_s25 + $0x78] sm:$0xff]  ;;  %v402_v45 = vld [vmem:[%s6014_s25 + $0x60] sm:$0xff]  ;;  %v403_v47 = vld [vmem:[%s6014_s25 + $0x68] sm:$0xff]  ;;  %s7930_s20 = sld [smem:[#allocation30_spill]] }
  0x98   :  { %4977 = vmatpush3.bf16.msra.mxu1 %v337_v20  ;;  %v413_v46 = vpack.c.bf16 %v405_v44, %v404_v43  ;;  %v412_v48 = vpack.c.bf16 %v403_v47, %v402_v45  ;;  %v400_v49 = vld [vmem:[%s6014_s25 + $0x50] sm:$0xff]  ;;  %v401_v50 = vld [vmem:[%s6014_s25 + $0x58] sm:$0xff]  ;;  %v398_v52 = vld [vmem:[%s6014_s25 + $0x40] sm:$0xff]  ;;  %v7895_v20 = vmov 8   ;;  %s7931_s5 = sld [smem:[#allocation31_spill]] }
  0x99   :  { %4967 = vmatpush3.bf16.msra.mxu0 %v247_v15  ;;  %4978 = vmatprep.subr.bf16.mxu1 %v336_v24  ;;  %v411_v51 = vpack.c.bf16 %v401_v50, %v400_v49  ;;  %v399_v53 = vld [vmem:[%s6014_s25 + $0x48] sm:$0xff]  ;;  %v396_v55 = vld [vmem:[%s6014_s25 + $0x30] sm:$0xff]  ;;  %v397_v56 = vld [vmem:[%s6014_s25 + $0x38] sm:$0xff]  ;;  %s7932_s2 = sld [smem:[#allocation33_spill]] }
  0x9a   :  { %4968 = vmatprep.subr.bf16.mxu0 %v246_v23  ;;  %v410_v54 = vpack.c.bf16 %v399_v53, %v398_v52  ;;  %v409_v57 = vpack.c.bf16 %v397_v56, %v396_v55  ;;  %v394_v58 = vld [vmem:[%s6014_s25 + $0x20] sm:$0xff]  ;;  %v395_v59 = vld [vmem:[%s6014_s25 + $0x28] sm:$0xff]  ;;  %v392_v8 = vld [vmem:[%s6014_s25 + $0x10] sm:$0xff]  ;;  %5382 = vset.pattern.permute.xlu1 %v7895_v20  ;;  %s7933_s10 = sld [smem:[#allocation34_spill]] }
  0x9b   :  { %v408_v60 = vpack.c.bf16 %v395_v59, %v394_v58  ;;  %v4736_v0 = vld [vmem:[%s6004_s17] ss:$0 sm:$0xff]  ;;  %v393_v9 = vld [vmem:[%s6014_s25 + $0x18] sm:$0xff]  ;;  %v391_v12 = vld [vmem:[%s6014_s25 + $0x8] sm:$0xff]  ;;  %s5956_s17 = smov 96  }
  0x9c   :  { %4979 = vmatpush3.bf16.msra.mxu1 %v336_v24  ;;  %v407_v10 = vpack.c.bf16 %v393_v9, %v392_v8  ;;  %v390_v11 = vld [vmem:[%s6014_s25] sm:$0xff]  ;;  %s5958_s25 = smov 64  }
  0x9d   :  { %4969 = vmatpush3.bf16.msra.mxu0 %v246_v23  ;;  %4980 = vmatprep.subr.bf16.mxu1 %v335_v29  ;;  %v406_v13 = vpack.c.bf16 %v391_v12, %v390_v11 }
  0x9e   :  { %4994 = vmatprep.subr.bf16.mxu0 %v413_v46 }
  0xa0   :  { %4971 = vmatmul.mubr.msk.bf16.vlgmr.msra.gmra.mxu0 %vm257_vm0, %v237_v32  ;;  %4981 = vmatpush3.bf16.msra.mxu1 %v335_v29  ;;  %v7901_v32 = vmov 12  }
  0xa1   :  { %4982 = vmatprep.subr.bf16.mxu1 %v334_v33  ;;  %4995 = vmatpush3.bf16.msra.mxu0 %v413_v46 }
  0xa2   :  { %4996 = vmatprep.subr.bf16.mxu0 %v412_v48 }
  0xa4   :  { %4983 = vmatpush3.bf16.msra.mxu1 %v334_v33 }
  0xa5   :  { %4984 = vmatprep.subr.bf16.mxu1 %v333_v36  ;;  %4997 = vmatpush3.bf16.msra.mxu0 %v412_v48 }
  0xa6   :  { %4998 = vmatprep.subr.bf16.mxu0 %v411_v51 }
  0xa8   :  { %4985 = vmatpush3.bf16.msra.mxu1 %v333_v36  ;;  %v7889_v36 = vmov 15  }
  0xa9   :  { %4986 = vmatprep.subr.bf16.mxu1 %v332_v39  ;;  %4999 = vmatpush3.bf16.msra.mxu0 %v411_v51 }
  0xaa   :  { %5000 = vmatprep.subr.bf16.mxu0 %v410_v54 }
  0xac   :  { %4987 = vmatpush3.bf16.msra.mxu1 %v332_v39 }
  0xad   :  { %4988 = vmatprep.subr.bf16.mxu1 %v331_v42  ;;  %5001 = vmatpush3.bf16.msra.mxu0 %v410_v54 }
  0xae   :  { %5002 = vmatprep.subr.bf16.mxu0 %v409_v57 }
  0xb0   :  { %4989 = vmatpush3.bf16.msra.mxu1 %v331_v42 }
  0xb1   :  { %5003 = vmatpush3.bf16.msra.mxu0 %v409_v57 }
  0xb2   :  { %5004 = vmatprep.subr.bf16.mxu0 %v408_v60 }
  0xb5   :  { %5005 = vmatpush3.bf16.msra.mxu0 %v408_v60 }
  0xb6   :  { %5006 = vmatprep.subr.bf16.mxu0 %v407_v10 }
  0xb9   :  { %5007 = vmatpush3.bf16.msra.mxu0 %v407_v10 }
  0xba   :  { %5008 = vmatprep.subr.bf16.mxu0 %v406_v13 }
  0xbd   :  { %5009 = vmatpush3.bf16.msra.mxu0 %v406_v13 }
 0x160   :  { %v4972_v61 = vpop.f32.mrf.mxu0 }
 0x161   :  { %v307_v5 = vadd.f32 %v4972_v61, %v4736_v0 }
 0x162   :  { %v298_v62 = vpop.f32.mrf.mxu0 }
 0x163   :  { %v299_v3 = vadd.f32 %v4736_v0, %v298_v62 }
 0x164   :  { %v4973_v63 = vpop.f32.mrf.mxu0 }
 0x165   :  { %v310_v1 = vadd.f32 %v4973_v63, %v4736_v0 }
 0x166   :  { %v301_v2 = vpop.f32.mrf.mxu0 }
 0x167   :  { %v302_v4 = vadd.f32 %v4736_v0, %v301_v2  ;;  %v314_v7 = vpack.c.bf16 %v310_v1, %v307_v5 }
 0x169   :  { %v313_v6 = vpack.c.bf16 %v302_v4, %v299_v3 }
 0x16b   :  { %4990 = vmatprep.mubr.bf16.mxu1 %v313_v6 }
 0x16c   :  { %4991 = vmatmul.mubr.bf16.vlgmr.msra.gmra.mxu1 %v314_v7 }
 0x22c   :  { %v4992_v14 = vpop.f32.mrf.mxu1 }
 0x22e   :  { %v373_v15 = vpop.f32.mrf.mxu1 }
 0x230   :  { %v4993_v16 = vpop.f32.mrf.mxu1 }
 0x231   :  { %v6182_v17 = vpack.c.bf16 %v4993_v16, %v4992_v14 }
 0x232   :  { %v376_v18 = vpop.f32.mrf.mxu1 }
 0x233   :  { %v6184_v19 = vpack.c.bf16 %v376_v18, %v373_v15  ;;  %992 = vrot.lane.b32.xlu0 %v6182_v17, %s5956_s17  ;;  %780 = vrot.lane.b32.xlu1 %v6182_v17, %s5957_s21 }
 0x234   :  { %5014 = vmatprep.subr.bf16.mxu1 %v6182_v17 }
 0x235   :  { %5015 = vmatpush3.bf16.msra.mxu1 %v6182_v17  ;;  %5010 = vmatprep.mubr.bf16.mxu0 %v6184_v19 }
 0x236   :  { %5016 = vmatprep.subr.bf16.mxu1 %v6184_v19  ;;  %5011 = vmatmul.mubr.bf16.vlgmr.msra.gmra.mxu0 %v6182_v17 }
 0x237   :  { %1416 = vrot.lane.b32.xlu0 %v6182_v17, %s5958_s25  ;;  %1204 = vrot.lane.b32.xlu1 %v6182_v17, %s5959_s6 }
 0x239   :  { %5017 = vmatpush3.bf16.msra.mxu1 %v6184_v19 }
 0x23b   :  { %1628 = vrot.lane.b32.xlu0 %v6182_v17, %s5960_s4  ;;  %1414 = vrot.lane.b32.xlu1 %v6184_v19, %s5958_s25 }
 0x23f   :  { %778 = vrot.lane.b32.xlu0 %v6184_v19, %s5957_s21 }
 0x243   :  { %990 = vrot.lane.b32.xlu0 %v6184_v19, %s5956_s17 }
 0x247   :  { %1202 = vrot.lane.b32.xlu0 %v6184_v19, %s5959_s6 }
 0x24b   :  { %1626 = vrot.lane.b32.xlu0 %v6184_v19, %s5960_s4 }
 0x2a5   :  { %v993_v22 = vpop.permute.xlu0 %992  ;;  %v6214_v23 = vpop.permute.xlu1 %780 }
 0x2a6   :  { %5022 = vmatprep.subr.bf16.mxu1 %v6214_v23  ;;  %5030 = vmatprep.subr.bf16.mxu0 %v993_v22 }
 0x2a7   :  { %5031 = vmatpush3.bf16.msra.mxu0 %v993_v22 }
 0x2a9   :  { %v6217_v24 = vpop.permute.xlu0 %1416  ;;  %v6327_v39 = vpop.permute.xlu1 %1204 }
 0x2ad   :  { %v6219_v25 = vpop.permute.xlu0 %1628  ;;  %v6334_v41 = vpop.permute.xlu1 %1414 }
 0x2b1   :  { %v6221_v26 = vpop.permute.xlu0 %778 }
 0x2b5   :  { %v991_v27 = vpop.permute.xlu0 %990 }
 0x2b6   :  { %5032 = vmatprep.subr.bf16.mxu0 %v991_v27 }
 0x2b7   :  { %5033 = vmatpush3.bf16.msra.mxu0 %v991_v27 }
 0x2b8   :  { %5046 = vmatprep.subr.bf16.mxu0 %v6217_v24 }
 0x2b9   :  { %v6323_v38 = vpop.permute.xlu0 %1202 }
 0x2bd   :  { %v6331_v40 = vpop.permute.xlu0 %1626 }
 0x2f6   :  { %v6224_v28 = vpop.f32.mrf.mxu0 }
 0x2f7   :  { %864 = vrot.lane.b32.xlu0 %v6224_v28, %s5963_s0  ;;  %650 = vrot.lane.b32.xlu1 %v6224_v28, %s5964_s24 }
 0x2f8   :  { %v6238_v29 = vpop.f32.mrf.mxu0 }
 0x2fa   :  { %v6261_v33 = vpop.f32.mrf.mxu0 }
 0x2fb   :  { %1288 = vrot.lane.b32.xlu0 %v6224_v28, %s5965_s16  ;;  %1076 = vrot.lane.b32.xlu1 %v6224_v28, %s5966_s15 }
 0x2fc   :  { %v6287_v37 = vpop.f32.mrf.mxu0 }
 0x2ff   :  { %1712 = vrot.lane.b32.xlu0 %v6224_v28, %s5967_s18  ;;  %1500 = vrot.lane.b32.xlu1 %v6224_v28, %s5968_s22 }
 0x303   :  { %1924 = vrot.lane.b32.xlu1 %v6224_v28, %s5969_s9  ;;  %646 = vrot.lane.b32.xlu0 %v6238_v29, %s5964_s24 }
 0x307   :  { %507 = vperm.xlu1 %5382, %v6224_v28   ;;  %860 = vrot.lane.b32.xlu0 %v6238_v29, %s5963_s0 }
 0x30b   :  { %5383 = vset.pattern.permute.xlu1 %v7887_v30  ;;  %1284 = vrot.lane.b32.xlu0 %v6238_v29, %s5965_s16 }
 0x30c   :  { %699 = vperm.xlu1 %5383, %v6224_v28  }
 0x30f   :  { %1708 = vrot.lane.b32.xlu0 %v6238_v29, %s5967_s18 }
 0x310   :  { %5384 = vset.pattern.permute.xlu1 %v7893_v21 }
 0x311   :  { %913 = vperm.xlu1 %5384, %v6224_v28  }
 0x313   :  { %905 = vperm.xlu0 %5392, %v6238_v29  }
 0x315   :  { %5385 = vset.pattern.permute.xlu1 %v7891_v31 }
 0x316   :  { %1125 = vperm.xlu1 %5385, %v6224_v28  }
 0x317   :  { %5394 = vset.pattern.permute.xlu0 %v7901_v32 }
 0x318   :  { %1329 = vperm.xlu0 %5394, %v6238_v29  }
 0x31a   :  { %5386 = vset.pattern.permute.xlu1 %v7901_v32 }
 0x31b   :  { %1337 = vperm.xlu1 %5386, %v6224_v28  }
 0x31c   :  { %866 = vrot.lane.b32.xlu0 %v6261_v33, %s5963_s0 }
 0x31d   :  { %5398 = vset.pattern.permute.xlu0 %v7895_v20 }
 0x31f   :  { %5387 = vset.pattern.permute.xlu1 %v7899_v34 }
 0x320   :  { %1549 = vperm.xlu1 %5387, %v6224_v28   ;;  %1290 = vrot.lane.b32.xlu0 %v6261_v33, %s5965_s16 }
 0x324   :  { %5388 = vset.pattern.permute.xlu1 %v7897_v35  ;;  %512 = vperm.xlu0 %5398, %v6261_v33  }
 0x325   :  { %1761 = vperm.xlu1 %5388, %v6224_v28  }
 0x328   :  { %1926 = vrot.lane.b32.xlu0 %v6261_v33, %s5969_s9 }
 0x329   :  { %5389 = vset.pattern.permute.xlu1 %v7889_v36  ;;  %5400 = vset.pattern.permute.xlu0 %v7893_v21 }
 0x32a   :  { %1973 = vperm.xlu1 %5389, %v6224_v28  }
 0x32c   :  { %917 = vperm.xlu0 %5400, %v6261_v33  }
 0x32e   :  { %1072 = vrot.lane.b32.xlu1 %v6238_v29, %s5966_s15 }
 0x32f   :  { %5390 = vset.pattern.permute.xlu1 %v7895_v20 }
 0x330   :  { %5402 = vset.pattern.permute.xlu0 %v7901_v32 }
 0x331   :  { %1341 = vperm.xlu0 %5402, %v6261_v33  }
 0x332   :  { %1496 = vrot.lane.b32.xlu1 %v6238_v29, %s5968_s22 }
 0x335   :  { %648 = vrot.lane.b32.xlu0 %v6287_v37, %s5964_s24 }
 0x336   :  { %1920 = vrot.lane.b32.xlu1 %v6238_v29, %s5969_s9  ;;  %5406 = vset.pattern.permute.xlu0 %v7895_v20 }
 0x339   :  { %862 = vrot.lane.b32.xlu0 %v6287_v37, %s5963_s0 }
 0x33a   :  { %497 = vperm.xlu1 %5390, %v6238_v29  }
 0x33d   :  { %1286 = vrot.lane.b32.xlu0 %v6287_v37, %s5965_s16 }
 0x33e   :  { %5391 = vset.pattern.permute.xlu1 %v7887_v30 }
 0x33f   :  { %691 = vperm.xlu1 %5391, %v6238_v29  }
 0x341   :  { %1710 = vrot.lane.b32.xlu0 %v6287_v37, %s5967_s18 }
 0x343   :  { %5393 = vset.pattern.permute.xlu1 %v7891_v31 }
 0x344   :  { %1117 = vperm.xlu1 %5393, %v6238_v29  }
 0x345   :  { %502 = vperm.xlu0 %5406, %v6287_v37  }
 0x348   :  { %5395 = vset.pattern.permute.xlu1 %v7899_v34 }
 0x349   :  { %1541 = vperm.xlu1 %5395, %v6238_v29   ;;  %5407 = vset.pattern.permute.xlu0 %v7887_v30 }
 0x34a   :  { %695 = vperm.xlu0 %5407, %v6287_v37  }
 0x34d   :  { %5396 = vset.pattern.permute.xlu1 %v7897_v35 }
 0x34e   :  { %1753 = vperm.xlu1 %5396, %v6238_v29   ;;  %5409 = vset.pattern.permute.xlu0 %v7891_v31 }
 0x34f   :  { %1121 = vperm.xlu0 %5409, %v6287_v37  }
 0x352   :  { %5397 = vset.pattern.permute.xlu1 %v7889_v36 }
 0x353   :  { %1965 = vperm.xlu1 %5397, %v6238_v29   ;;  %5411 = vset.pattern.permute.xlu0 %v7899_v34 }
 0x354   :  { %1545 = vperm.xlu0 %5411, %v6287_v37  }
 0x357   :  { %652 = vrot.lane.b32.xlu1 %v6261_v33, %s5964_s24 }
 0x358   :  { %5399 = vset.pattern.permute.xlu1 %v7887_v30 }
 0x35b   :  { %1078 = vrot.lane.b32.xlu1 %v6261_v33, %s5966_s15 }
 0x35f   :  { %1502 = vrot.lane.b32.xlu1 %v6261_v33, %s5968_s22 }
 0x363   :  { %1714 = vrot.lane.b32.xlu1 %v6261_v33, %s5967_s18 }
 0x367   :  { %703 = vperm.xlu1 %5399, %v6261_v33  }
 0x369   :  { %v865_v42 = vpop.permute.xlu0 %864  ;;  %v6337_v43 = vpop.permute.xlu1 %650 }
 0x36b   :  { %5401 = vset.pattern.permute.xlu1 %v7891_v31 }
 0x36c   :  { %1129 = vperm.xlu1 %5401, %v6261_v33  }
 0x36d   :  { %v6340_v44 = vpop.permute.xlu0 %1288  ;;  %v6344_v45 = vpop.permute.xlu1 %1076 }
 0x370   :  { %5403 = vset.pattern.permute.xlu1 %v7899_v34 }
 0x371   :  { %1553 = vperm.xlu1 %5403, %v6261_v33   ;;  %v6346_v46 = vpop.permute.xlu0 %1712  ;;  %v6352_v47 = vpop.permute.xlu1 %1500 }
 0x372   :  { %463 = vxpose.xlu0.b32.start [1/4] (short) (narrow) %v6238_v29, 8 }
 0x375   :  { %5404 = vset.pattern.permute.xlu1 %v7897_v35  ;;  %v647_v48 = vpop.permute.xlu0 %646  ;;  %v6357_v49 = vpop.permute.xlu1 %1924 }
 0x376   :  { %1765 = vperm.xlu1 %5404, %v6261_v33   ;;  %464 = vxpose.xlu0.b32.cont [2/4] (short) (narrow) %v6287_v37, 8 }
 0x379   :  { %v861_v50 = vpop.permute.xlu0 %860 }
 0x37a   :  { %5405 = vset.pattern.permute.xlu1 %v7889_v36  ;;  %465 = vxpose.xlu0.b32.cont [3/4] (short) (narrow) %v6224_v28, 8 }
 0x37b   :  { %1977 = vperm.xlu1 %5405, %v6261_v33  }
 0x37d   :  { %v1285_v52 = vpop.permute.xlu0 %1284 }
 0x37e   :  { %466 = vxpose.xlu0.b32.end [4/4] (short) (narrow) %v6261_v33, 8 }
 0x37f   :  { %1074 = vrot.lane.b32.xlu1 %v6287_v37, %s5966_s15 }
 0x380   :  { %5408 = vset.pattern.permute.xlu1 %v7893_v21 }
 0x381   :  { %v6371_v54 = vpop.permute.xlu0 %1708 }
 0x382   :  { %v6363_v51 = vpop.permute.xlu1 %507  ;;  %872 = vxpose.xlu0.b32.start [1/4] (short) (narrow) %v861_v50, 8 }
 0x383   :  { %1498 = vrot.lane.b32.xlu1 %v6287_v37, %s5968_s22 }
 0x387   :  { %v6367_v53 = vpop.permute.xlu1 %699  ;;  %1922 = vrot.lane.b32.xlu1 %v6287_v37, %s5969_s9 }
 0x38b   :  { %909 = vperm.xlu1 %5408, %v6287_v37  }
 0x38c   :  { %v6374_v55 = vpop.permute.xlu1 %913 }
 0x38e   :  { %v6376_v56 = vpop.permute.xlu0 %905 }
 0x38f   :  { %5410 = vset.pattern.permute.xlu1 %v7901_v32 }
 0x390   :  { %1333 = vperm.xlu1 %5410, %v6287_v37  }
 0x391   :  { %v6380_v57 = vpop.permute.xlu1 %1125 }
 0x393   :  { %v6382_v58 = vpop.permute.xlu0 %1329 }
 0x394   :  { %5412 = vset.pattern.permute.xlu1 %v7897_v35 }
 0x395   :  { %1757 = vperm.xlu1 %5412, %v6287_v37  }
 0x396   :  { %v6386_v59 = vpop.permute.xlu1 %1337 }
 0x397   :  { %v867_v60 = vpop.permute.xlu0 %866 }
 0x399   :  { %5413 = vset.pattern.permute.xlu1 %v7889_v36 }
 0x39a   :  { %1969 = vperm.xlu1 %5413, %v6287_v37  }
 0x39b   :  { %v6390_v61 = vpop.permute.xlu1 %1549  ;;  %v1291_v62 = vpop.permute.xlu0 %1290 }
 0x39f   :  { %v6392_v63 = vpop.permute.xlu0 %512 }
 0x3a0   :  { %v6394_v0 = vpop.permute.xlu1 %1761 }
 0x3a3   :  { %v1927_v1 = vpop.permute.xlu0 %1926 }
 0x3a5   :  { %v6396_v2 = vpop.permute.xlu1 %1973 }
 0x3a7   :  { %v6398_v3 = vpop.permute.xlu0 %917 }
 0x3a9   :  { %v1073_v4 = vpop.permute.xlu1 %1072 }
 0x3ac   :  { %v6400_v5 = vpop.permute.xlu0 %1341 }
 0x3ad   :  { %v1497_v6 = vpop.permute.xlu1 %1496 }
 0x3b0   :  { %v649_v7 = vpop.permute.xlu0 %648 }
 0x3b1   :  { %v1921_v8 = vpop.permute.xlu1 %1920 }
 0x3b4   :  { %v863_v9 = vpop.permute.xlu0 %862 }
 0x3b5   :  { %v6402_v10 = vpop.permute.xlu1 %497  ;;  %873 = vxpose.xlu0.b32.cont [2/4] (short) (narrow) %v863_v9, 8 }
 0x3b8   :  { %v1287_v50 = vpop.permute.xlu0 %1286 }
 0x3b9   :  { %874 = vxpose.xlu0.b32.cont [3/4] (short) (narrow) %v865_v42, 8 }
 0x3ba   :  { %v6404_v11 = vpop.permute.xlu1 %691 }
 0x3bd   :  { %875 = vxpose.xlu0.b32.end [4/4] (short) (narrow) %v867_v60, 8  ;;  %v1711_v60 = vpop.permute.xlu0 %1710 }
 0x3bf   :  { %v6406_v12 = vpop.permute.xlu1 %1117 }
 0x3c1   :  { %1084 = vxpose.xlu0.b32.start [1/4] (short) (narrow) %v1073_v4, 8 }
 0x3c3   :  { %658 = vxpose.xlu1.b32.start [1/4] (short) (narrow) %v647_v48, 8 }
 0x3c4   :  { %v6408_v13 = vpop.permute.xlu1 %1541 }
 0x3c7   :  { %659 = vxpose.xlu1.b32.cont [2/4] (short) (narrow) %v649_v7, 8 }
 0x3c9   :  { %v6410_v14 = vpop.permute.xlu1 %1753 }
 0x3cb   :  { %660 = vxpose.xlu1.b32.cont [3/4] (short) (narrow) %v6337_v43, 8 }
 0x3ce   :  { %v6413_v15 = vpop.permute.xlu1 %1965 }
 0x3d2   :  { %v653_v16 = vpop.permute.xlu1 %652 }
 0x3d3   :  { %661 = vxpose.xlu1.b32.end [4/4] (short) (narrow) %v653_v16, 8 }
 0x3d6   :  { %v1079_v18 = vpop.permute.xlu1 %1078 }
 0x3d7   :  { %1508 = vxpose.xlu1.b32.start [1/4] (short) (narrow) %v1497_v6, 8  ;;  %v503_v6 = vpop.permute.xlu0 %502 }
 0x3da   :  { %v1503_v22 = vpop.permute.xlu1 %1502 }
 0x3db   :  { %v696_v7 = vpop.permute.xlu0 %695 }
 0x3de   :  { %v1715_v27 = vpop.permute.xlu1 %1714 }
 0x3e2   :  { %v6415_v28 = vpop.permute.xlu1 %703 }
 0x3e7   :  { %v6417_v29 = vpop.permute.xlu1 %1129 }
 0x3ec   :  { %v6419_v33 = vpop.permute.xlu1 %1553 }
 0x3f1   :  { %v6421_v37 = vpop.permute.xlu1 %1765 }
 0x3f6   :  { %v6423_v42 = vpop.permute.xlu1 %1977 }
 0x3fa   :  { %v1075_v48 = vpop.permute.xlu1 %1074 }
 0x3fb   :  { %1085 = vxpose.xlu0.b32.cont [2/4] (short) (narrow) %v1075_v48, 8 }
 0x3fe   :  { %v1499_v43 = vpop.permute.xlu1 %1498 }
 0x3ff   :  { %1509 = vxpose.xlu1.b32.cont [2/4] (short) (narrow) %v1499_v43, 8  ;;  %1086 = vxpose.xlu0.b32.cont [3/4] (short) (narrow) %v6344_v45, 8  ;;  %v6430_v45 = vpop.permute.xlu0 %1121 }
 0x402   :  { %v1923_v4 = vpop.permute.xlu1 %1922 }
 0x403   :  { %1510 = vxpose.xlu1.b32.cont [3/4] (short) (narrow) %v6352_v47, 8  ;;  %1087 = vxpose.xlu0.b32.end [4/4] (short) (narrow) %v1079_v18, 8  ;;  %v515_v47 = vlaneseq  ;;  %v6443_v18 = vld [vmem:[#allocation7 + $0x8] sm:$0xff] }
 0x407   :  { %1511 = vxpose.xlu1.b32.end [4/4] (short) (narrow) %v1503_v22, 8  ;;  %1296 = vxpose.xlu0.b32.start [1/4] (short) (narrow) %v1285_v52, 8  ;;  %v516_v52 = vshrl.u32 %v515_v47, 7 }
 0x409   :  { %v6435_v9 = vsub.s32 0, %v516_v52 }
 0x40b   :  { %1932 = vxpose.xlu1.b32.start [1/4] (short) (narrow) %v1921_v8, 8  ;;  %1297 = vxpose.xlu0.b32.cont [2/4] (short) (narrow) %v1287_v50, 8  ;;  %v6433_v8 = vpop.permute.xlu0 %1545 }
 0x40f   :  { %1933 = vxpose.xlu1.b32.cont [2/4] (short) (narrow) %v1923_v4, 8  ;;  %1298 = vxpose.xlu0.b32.cont [3/4] (short) (narrow) %v6340_v44, 8  ;;  %v479_v44 = vpop.trf.xlu0 }
 0x413   :  { %1934 = vxpose.xlu1.b32.cont [3/4] (short) (narrow) %v6357_v49, 8  ;;  %1299 = vxpose.xlu0.b32.end [4/4] (short) (narrow) %v1291_v62, 8  ;;  %v518_v49 = vrot.slane %v479_v44, %v6435_v9  ;;  %v6438_v62 = vpop.permute.xlu1 %909 }
 0x415   :  { %v519_v52 = vadd.f32 %v518_v49, %v6402_v10 }
 0x417   :  { %1935 = vxpose.xlu1.b32.end [4/4] (short) (narrow) %v1927_v1, 8  ;;  %1720 = vxpose.xlu0.b32.start [1/4] (short) (narrow) %v6371_v54, 8  ;;  %v520_v1 = vadd.f32 %v518_v49, %v503_v6  ;;  %v6440_v54 = vpop.permute.xlu1 %1333  ;;  %vm523_vm6 = vcmp.gt.f32.partialorder %v519_v52, 0.0 }
 0x419   :  { %v528_v16 = vmul.f32 0.2, %v520_v1  ;;  %vm524_vm1 = vcmp.gt.f32.partialorder %v520_v1, 0.0 }
 0x41b   :  { %1721 = vxpose.xlu0.b32.cont [2/4] (short) (narrow) %v1711_v60, 8  ;;  %v6445_v22 = vpop.permute.xlu1 %1757  ;;  %v521_v60 = vadd.f32 %v518_v49, %v6363_v51 }
 0x41d   :  { %v529_v47 = vmul.f32 0.2, %v521_v60  ;;  %vm525_vm3 = vcmp.gt.f32.partialorder %v521_v60, 0.0 }
 0x41f   :  { %1722 = vxpose.xlu0.b32.cont [3/4] (short) (narrow) %v6346_v46, 8  ;;  %v532_v46 = vsel %vm524_vm1, %v520_v1, %v528_v16  ;;  %v6452_v43 = vpop.permute.xlu1 %1969  ;;  %v533_v51 = vsel %vm525_vm3, %v521_v60, %v529_v47 }
 0x423   :  { %1723 = vxpose.xlu0.b32.end [4/4] (short) (narrow) %v1715_v27, 8  ;;  %v6448_v27 = vadd.f32 %v532_v46, %v6443_v18 }
 0x425   :  { %v543_v48 = vsel %vm539_vm2, %v6448_v27, -inf }
 0x42d   :  { %v888_v50 = vpop.trf.xlu0 }
 0x42e   :  { %v6456_v4 = vrot.slane %v888_v50, %v6435_v9  ;;  %v522_v50 = vadd.f32 %v518_v49, %v6392_v63 }
 0x430   :  { %v924_v46 = vadd.f32 %v6456_v4, %v6376_v56  ;;  %v530_v49 = vmul.f32 0.2, %v522_v50  ;;  %vm526_vm8 = vcmp.gt.f32.partialorder %v522_v50, 0.0 }
 0x432   :  { %v932_v21 = vmul.f32 0.2, %v924_v46  ;;  %vm928_vm7 = vcmp.gt.f32.partialorder %v924_v46, 0.0 }
 0x435   :  { %5415 = vset.pattern.permute.xlu1 %v7887_v30  ;;  %v527_v30 = vmul.f32 0.2, %v519_v52 }
 0x437   :  { %v531_v63 = vsel %vm523_vm6, %v519_v52, %v527_v30  ;;  %v6488_v30 = vld [vmem:[#allocation7 + $0x18] sm:$0xff] }
 0x43e   :  { %544 = vmax.xlane.f32.xlu1 %v543_v48  ;;  %v6464_v48 = vld [vmem:[#allocation7 + $0x10] sm:$0xff] }
 0x43f   :  { %v6475_v60 = vadd.f32 %v533_v51, %v6464_v48 }
 0x443   :  { %v674_v6 = vpop.trf.xlu1 }
 0x444   :  { %v709_v44 = vrot.slane %v674_v6, %v6435_v9  ;;  %v6467_v6 = vld [vmem:[#allocation7] sm:$0xff] }
 0x445   :  { %v6486_v51 = vadd.f32 %v531_v63, %v6467_v6 }
 0x446   :  { %v710_v1 = vadd.f32 %v709_v44, %v6404_v11  ;;  %v712_v16 = vadd.f32 %v709_v44, %v6367_v53  ;;  %v926_v53 = vadd.f32 %v6456_v4, %v6374_v55  ;;  %v711_v47 = vadd.f32 %v709_v44, %v696_v7 }
 0x447   :  { %v936_v55 = vsel %vm928_vm7, %v924_v46, %v932_v21  ;;  %v534_v7 = vsel %vm526_vm8, %v522_v50, %v530_v49  ;;  %v540_v63 = vsel %vm539_vm2, %v6486_v51, -inf }
 0x448   :  { %vm714_vm4 = vcmp.gt.f32.partialorder %v710_v1, 0.0  ;;  %v718_v36 = vmul.f32 0.2, %v710_v1  ;;  %vm716_vm5 = vcmp.gt.f32.partialorder %v712_v16, 0.0  ;;  %v720_v10 = vmul.f32 0.2, %v712_v16 }
 0x449   :  { %vm930_vm9 = vcmp.gt.f32.partialorder %v926_v53, 0.0  ;;  %v719_v52 = vmul.f32 0.2, %v711_v47  ;;  %v6494_v21 = vadd.f32 %v936_v55, %v6467_v6  ;;  %vm715_vm10 = vcmp.gt.f32.partialorder %v711_v47, 0.0 }
 0x44a   :  { %v722_v31 = vsel %vm714_vm4, %v710_v1, %v718_v36  ;;  %v724_v11 = vsel %vm716_vm5, %v712_v16, %v720_v10  ;;  %v546_v16 = vsel %vm539_vm2, %v6475_v60, -inf  ;;  %v713_v10 = vadd.f32 %v709_v44, %v6415_v28 }
 0x44b   :  { %v6472_v56 = vadd.f32 %v722_v31, %v6467_v6  ;;  %v6481_v1 = vadd.f32 %v724_v11, %v6464_v48  ;;  %v934_v31 = vmul.f32 0.2, %v926_v53  ;;  %v723_v50 = vsel %vm715_vm10, %v711_v47, %v719_v52 }
 0x44c   :  { %5414 = vset.pattern.permute.xlu0 %v7895_v20  ;;  %v721_v49 = vmul.f32 0.2, %v713_v10  ;;  %v925_v28 = vadd.f32 %v6456_v4, %v6438_v62  ;;  %v944_v44 = vsel %vm539_vm2, %v6494_v21, -inf  ;;  %vm717_vm11 = vcmp.gt.f32.partialorder %v713_v10, 0.0 }
 0x44d   :  { %v730_v36 = vsel %vm539_vm2, %v6472_v56, -inf  ;;  %v736_v11 = vsel %vm539_vm2, %v6481_v1, -inf  ;;  %v938_v46 = vsel %vm930_vm9, %v926_v53, %v934_v31  ;;  %v6511_v31 = vadd.f32 %v723_v50, %v6443_v18 }
 0x44e   :  { %731 = vmax.xlane.f32.xlu1 %v730_v36  ;;  %v6499_v36 = vadd.f32 %v534_v7, %v6488_v30  ;;  %v6506_v55 = vadd.f32 %v938_v46, %v6464_v48  ;;  %v725_v47 = vsel %vm717_vm11, %v713_v10, %v721_v49  ;;  %v927_v62 = vadd.f32 %v6456_v4, %v6398_v3 }
 0x44f   :  { %vm929_vm12 = vcmp.gt.f32.partialorder %v925_v28, 0.0  ;;  %v733_v52 = vsel %vm539_vm2, %v6511_v31, -inf }
 0x450   :  { %547 = vmax.xlane.f32.xlu0 %v546_v16  ;;  %v549_v53 = vsel %vm539_vm2, %v6499_v36, -inf  ;;  %v933_v16 = vmul.f32 0.2, %v925_v28  ;;  %v950_v7 = vsel %vm539_vm2, %v6506_v55, -inf  ;;  %vm931_vm13 = vcmp.gt.f32.partialorder %v927_v62, 0.0 }
 0x452   :  { %737 = vmax.xlane.f32.xlu1 %v736_v11  ;;  %v6520_v11 = vadd.f32 %v725_v47, %v6488_v30  ;;  %v937_v46 = vsel %vm929_vm12, %v925_v28, %v933_v16 }
 0x453   :  { %v6525_v3 = vadd.f32 %v937_v46, %v6443_v18 }
 0x454   :  { %541 = vmax.xlane.f32.xlu0 %v540_v63  ;;  %v935_v63 = vmul.f32 0.2, %v927_v62  ;;  %v739_v10 = vsel %vm539_vm2, %v6520_v11, -inf }
 0x455   :  { %v947_v50 = vsel %vm539_vm2, %v6525_v3, -inf }
 0x456   :  { %945 = vmax.xlane.f32.xlu1 %v944_v44  ;;  %v939_v4 = vsel %vm931_vm13, %v927_v62, %v935_v63 }
 0x457   :  { %v6530_v49 = vadd.f32 %v939_v4, %v6488_v30 }
 0x458   :  { %550 = vmax.xlane.f32.xlu0 %v549_v53 }
 0x459   :  { %v953_v28 = vsel %vm539_vm2, %v6530_v49, -inf }
 0x45a   :  { %951 = vmax.xlane.f32.xlu1 %v950_v7 }
 0x45c   :  { %734 = vmax.xlane.f32.xlu0 %v733_v52 }
 0x460   :  { %740 = vmax.xlane.f32.xlu0 %v739_v10 }
 0x464   :  { %948 = vmax.xlane.f32.xlu0 %v947_v50 }
 0x468   :  { %954 = vmax.xlane.f32.xlu0 %v953_v28 }
 0x473   :  { %v1100_v44 = vpop.trf.xlu0 }
 0x474   :  { %v1135_v53 = vrot.slane %v1100_v44, %v6435_v9 }
 0x476   :  { %v1136_v47 = vadd.f32 %v1135_v53, %v6406_v12  ;;  %v1137_v16 = vadd.f32 %v1135_v53, %v6430_v45  ;;  %v1138_v62 = vadd.f32 %v1135_v53, %v6380_v57  ;;  %v1139_v7 = vadd.f32 %v1135_v53, %v6417_v29 }
 0x477   :  { %v1524_v44 = vpop.trf.xlu1 }
 0x478   :  { %vm1140_vm14 = vcmp.gt.f32.partialorder %v1136_v47, 0.0  ;;  %v1144_v52 = vmul.f32 0.2, %v1136_v47  ;;  %vm1141_vm15 = vcmp.gt.f32.partialorder %v1137_v16, 0.0  ;;  %v1145_v46 = vmul.f32 0.2, %v1137_v16 }
 0x479   :  { %vm1142_vm1 = vcmp.gt.f32.partialorder %v1138_v62, 0.0  ;;  %v1146_v63 = vmul.f32 0.2, %v1138_v62  ;;  %vm1143_vm3 = vcmp.gt.f32.partialorder %v1139_v7, 0.0  ;;  %v1147_v4 = vmul.f32 0.2, %v1139_v7 }
 0x47a   :  { %v1148_v10 = vsel %vm1140_vm14, %v1136_v47, %v1144_v52  ;;  %v1149_v28 = vsel %vm1141_vm15, %v1137_v16, %v1145_v46  ;;  %v1559_v16 = vrot.slane %v1524_v44, %v6435_v9 }
 0x47b   :  { %v6540_v50 = vadd.f32 %v1148_v10, %v6467_v6  ;;  %v1150_v12 = vsel %vm1142_vm1, %v1138_v62, %v1146_v63  ;;  %v6543_v45 = vadd.f32 %v1149_v28, %v6443_v18  ;;  %v1151_v57 = vsel %vm1143_vm3, %v1139_v7, %v1147_v4 }
 0x47c   :  { %v6548_v53 = vadd.f32 %v1150_v12, %v6464_v48  ;;  %v6553_v52 = vadd.f32 %v1151_v57, %v6488_v30  ;;  %v1560_v63 = vadd.f32 %v1559_v16, %v6408_v13  ;;  %v1561_v10 = vadd.f32 %v1559_v16, %v6433_v8 }
 0x47d   :  { %v1156_v29 = vsel %vm539_vm2, %v6540_v50, -inf  ;;  %v1159_v47 = vsel %vm539_vm2, %v6543_v45, -inf  ;;  %v1562_v28 = vadd.f32 %v1559_v16, %v6390_v61  ;;  %v1563_v13 = vadd.f32 %v1559_v16, %v6419_v33 }
 0x47e   :  { %1157 = vmax.xlane.f32.xlu1 %v1156_v29  ;;  %1160 = vmax.xlane.f32.xlu0 %v1159_v47  ;;  %v1162_v62 = vsel %vm539_vm2, %v6548_v53, -inf  ;;  %v1165_v7 = vsel %vm539_vm2, %v6553_v52, -inf  ;;  %vm1564_vm4 = vcmp.gt.f32.partialorder %v1560_v63, 0.0  ;;  %v1568_v47 = vmul.f32 0.2, %v1560_v63 }
 0x47f   :  { %vm1565_vm5 = vcmp.gt.f32.partialorder %v1561_v10, 0.0  ;;  %vm1566_vm10 = vcmp.gt.f32.partialorder %v1562_v28, 0.0  ;;  %v1571_v33 = vmul.f32 0.2, %v1563_v13  ;;  %vm1567_vm11 = vcmp.gt.f32.partialorder %v1563_v13, 0.0 }
 0x482   :  { %1163 = vmax.xlane.f32.xlu1 %v1162_v62  ;;  %1166 = vmax.xlane.f32.xlu0 %v1165_v7 }
 0x483   :  { %v1312_v46 = vpop.trf.xlu0 }
 0x484   :  { %v1347_v4 = vrot.slane %v1312_v46, %v6435_v9  ;;  %v1569_v46 = vmul.f32 0.2, %v1561_v10 }
 0x486   :  { %v1348_v12 = vadd.f32 %v1347_v4, %v6382_v58  ;;  %v1349_v44 = vadd.f32 %v1347_v4, %v6440_v54  ;;  %v1350_v57 = vadd.f32 %v1347_v4, %v6386_v59  ;;  %v1351_v29 = vadd.f32 %v1347_v4, %v6400_v5 }
 0x487   :  { %v1570_v54 = vmul.f32 0.2, %v1562_v28  ;;  %v1948_v20 = vpop.trf.xlu1 }
 0x488   :  { %vm1352_vm6 = vcmp.gt.f32.partialorder %v1348_v12, 0.0  ;;  %v1356_v62 = vmul.f32 0.2, %v1348_v12  ;;  %vm1353_vm7 = vcmp.gt.f32.partialorder %v1349_v44, 0.0  ;;  %v1357_v8 = vmul.f32 0.2, %v1349_v44 }
 0x489   :  { %vm1354_vm8 = vcmp.gt.f32.partialorder %v1350_v57, 0.0  ;;  %v1358_v7 = vmul.f32 0.2, %v1350_v57  ;;  %vm1355_vm9 = vcmp.gt.f32.partialorder %v1351_v29, 0.0  ;;  %v1359_v58 = vmul.f32 0.2, %v1351_v29 }
 0x48a   :  { %v1360_v61 = vsel %vm1352_vm6, %v1348_v12, %v1356_v62  ;;  %v1361_v5 = vsel %vm1353_vm7, %v1349_v44, %v1357_v8  ;;  %v1572_v62 = vsel %vm1564_vm4, %v1560_v63, %v1568_v47  ;;  %v1573_v8 = vsel %vm1565_vm5, %v1561_v10, %v1569_v46 }
 0x48b   :  { %v6570_v59 = vadd.f32 %v1360_v61, %v6467_v6  ;;  %v1362_v4 = vsel %vm1354_vm8, %v1350_v57, %v1358_v7  ;;  %v6573_v35 = vadd.f32 %v1361_v5, %v6443_v18  ;;  %v1363_v34 = vsel %vm1355_vm9, %v1351_v29, %v1359_v58 }
 0x48c   :  { %v6578_v12 = vadd.f32 %v1362_v4, %v6464_v48  ;;  %v6584_v57 = vadd.f32 %v1363_v34, %v6488_v30  ;;  %v1574_v29 = vsel %vm1566_vm10, %v1562_v28, %v1570_v54  ;;  %v1983_v7 = vrot.slane %v1948_v20, %v6435_v9 }
 0x48d   :  { %v1368_v16 = vsel %vm539_vm2, %v6570_v59, -inf  ;;  %v1371_v44 = vsel %vm539_vm2, %v6573_v35, -inf  ;;  %v1575_v61 = vsel %vm1567_vm11, %v1563_v13, %v1571_v33  ;;  %v6591_v63 = vadd.f32 %v1572_v62, %v6467_v6 }
 0x48e   :  { %1369 = vmax.xlane.f32.xlu1 %v1368_v16  ;;  %1372 = vmax.xlane.f32.xlu0 %v1371_v44  ;;  %v1374_v58 = vsel %vm539_vm2, %v6578_v12, -inf  ;;  %v6594_v47 = vadd.f32 %v1573_v8, %v6443_v18  ;;  %v6597_v5 = vadd.f32 %v1574_v29, %v6464_v48  ;;  %v1377_v34 = vsel %vm539_vm2, %v6584_v57, -inf }
 0x48f   :  { %v6602_v10 = vadd.f32 %v1575_v61, %v6488_v30  ;;  %v1984_v28 = vadd.f32 %v1983_v7, %v6413_v15  ;;  %v1580_v46 = vsel %vm539_vm2, %v6591_v63, -inf  ;;  %v1985_v33 = vadd.f32 %v1983_v7, %v6452_v43 }
 0x490   :  { %v1583_v54 = vsel %vm539_vm2, %v6594_v47, -inf  ;;  %v1586_v4 = vsel %vm539_vm2, %v6597_v5, -inf  ;;  %v1986_v61 = vadd.f32 %v1983_v7, %v6396_v2  ;;  %vm641_vm6 = vcmask 130048  }
 0x491   :  { %v1589_v8 = vsel %vm539_vm2, %v6602_v10, -inf  ;;  %vm1988_vm12 = vcmp.gt.f32.partialorder %v1984_v28, 0.0  ;;  %v1992_v29 = vmul.f32 0.2, %v1984_v28  ;;  %vm1989_vm3 = vcmp.gt.f32.partialorder %v1985_v33, 0.0 }
 0x492   :  { %1375 = vmax.xlane.f32.xlu1 %v1374_v58  ;;  %1378 = vmax.xlane.f32.xlu0 %v1377_v34  ;;  %vm1990_vm4 = vcmp.gt.f32.partialorder %v1986_v61, 0.0  ;;  %vm855_vm7 = vcmask 261248   ;;  %vm1067_vm8 = vcmask 392448   ;;  %vm1279_vm9 = vcmask 523648  }
 0x493   :  { %v1736_v20 = vpop.trf.xlu0  ;;  %vm1491_vm10 = vcmask 654848   ;;  %vm1703_vm11 = vcmask 786048  }
 0x494   :  { %v1771_v13 = vrot.slane %v1736_v20, %v6435_v9  ;;  %v1987_v20 = vadd.f32 %v1983_v7, %v6423_v42  ;;  %v1996_v7 = vsel %vm1988_vm12, %v1984_v28, %v1992_v29  ;;  %vm1915_vm12 = vcmask 917248  }
 0x496   :  { %1581 = vmax.xlane.f32.xlu1 %v1580_v46  ;;  %v1772_v16 = vadd.f32 %v1771_v13, %v6410_v14  ;;  %v1773_v62 = vadd.f32 %v1771_v13, %v6445_v22  ;;  %v1774_v15 = vadd.f32 %v1771_v13, %v6394_v0  ;;  %v1775_v44 = vadd.f32 %v1771_v13, %v6421_v37 }
 0x497   :  { %1584 = vmax.xlane.f32.xlu0 %v1583_v54  ;;  %v1993_v37 = vmul.f32 0.2, %v1985_v33  ;;  %vm1991_vm5 = vcmp.gt.f32.partialorder %v1987_v20, 0.0 }
 0x498   :  { %vm1776_vm13 = vcmp.gt.f32.partialorder %v1772_v16, 0.0  ;;  %v1780_v58 = vmul.f32 0.2, %v1772_v16  ;;  %vm1777_vm14 = vcmp.gt.f32.partialorder %v1773_v62, 0.0  ;;  %v1781_v43 = vmul.f32 0.2, %v1773_v62 }
 0x499   :  { %vm1778_vm15 = vcmp.gt.f32.partialorder %v1774_v15, 0.0  ;;  %v1782_v14 = vmul.f32 0.2, %v1774_v15  ;;  %vm1779_vm1 = vcmp.gt.f32.partialorder %v1775_v44, 0.0  ;;  %v1783_v22 = vmul.f32 0.2, %v1775_v44 }
 0x49a   :  { %1587 = vmax.xlane.f32.xlu1 %v1586_v4  ;;  %v1784_v0 = vsel %vm1776_vm13, %v1772_v16, %v1780_v58  ;;  %v1785_v34 = vsel %vm1777_vm14, %v1773_v62, %v1781_v43  ;;  %v1994_v62 = vmul.f32 0.2, %v1986_v61  ;;  %v6641_v58 = vadd.f32 %v1996_v7, %v6467_v6 }
 0x49b   :  { %1590 = vmax.xlane.f32.xlu0 %v1589_v8  ;;  %v6622_v13 = vadd.f32 %v1784_v0, %v6467_v6  ;;  %v6625_v2 = vadd.f32 %v1785_v34, %v6443_v18  ;;  %v1786_v46 = vsel %vm1778_vm15, %v1774_v15, %v1782_v14  ;;  %v1787_v54 = vsel %vm1779_vm1, %v1775_v44, %v1783_v22 }
 0x49c   :  { %v6632_v16 = vadd.f32 %v1786_v46, %v6464_v48  ;;  %v6635_v42 = vadd.f32 %v1787_v54, %v6488_v30  ;;  %v1997_v15 = vsel %vm1989_vm3, %v1985_v33, %v1993_v37  ;;  %v1995_v44 = vmul.f32 0.2, %v1987_v20 }
 0x49d   :  { %v1792_v32 = vsel %vm539_vm2, %v6622_v13, -inf  ;;  %v1795_v4 = vsel %vm539_vm2, %v6625_v2, -inf  ;;  %v6646_v43 = vadd.f32 %v1997_v15, %v6443_v18  ;;  %v1998_v28 = vsel %vm1990_vm4, %v1986_v61, %v1994_v62 }
 0x49e   :  { %1793 = vmax.xlane.f32.xlu1 %v1792_v32  ;;  %v1798_v8 = vsel %vm539_vm2, %v6632_v16, -inf  ;;  %v1801_v32 = vsel %vm539_vm2, %v6635_v42, -inf  ;;  %v1999_v29 = vsel %vm1991_vm5, %v1987_v20, %v1995_v44  ;;  %v2004_v33 = vsel %vm539_vm2, %v6641_v58, -inf }
 0x49f   :  { %1796 = vmax.xlane.f32.xlu0 %v1795_v4  ;;  %v6651_v14 = vadd.f32 %v1998_v28, %v6464_v48  ;;  %v2007_v6 = vsel %vm539_vm2, %v6646_v43, -inf  ;;  %v6656_v22 = vadd.f32 %v1999_v29, %v6488_v30  ;;  %vm2127_vm13 = vcmask 1048448  }
 0x4a1   :  { %v2010_v18 = vsel %vm539_vm2, %v6651_v14, -inf  ;;  %v2013_v61 = vsel %vm539_vm2, %v6656_v22, -inf }
 0x4a2   :  { %1799 = vmax.xlane.f32.xlu1 %v1798_v8 }
 0x4a3   :  { %1802 = vmax.xlane.f32.xlu0 %v1801_v32 }
 0x4a6   :  { %2005 = vmax.xlane.f32.xlu1 %v2004_v33 }
 0x4a7   :  { %2008 = vmax.xlane.f32.xlu0 %v2007_v6 }
 0x4aa   :  { %2011 = vmax.xlane.f32.xlu1 %v2010_v18 }
 0x4ab   :  { %2014 = vmax.xlane.f32.xlu0 %v2013_v61 }
 0x4bb   :  { %1840 = vrot.lane.b32.xlu1 %v6182_v17, %s5976_s14 }
 0x4c1   :  { %2052 = vrot.lane.b32.xlu0 %v6182_v17, %s5977_s23 }
 0x4c7   :  { %v545_v48 = vpop.xlane.xlu1 %544 }
 0x4c8   :  { %v553_v7 = vsub.f32 %v6448_v27, %v545_v48 }
 0x4d7   :  { %v732_v30 = vpop.xlane.xlu1 %731 }
 0x4d8   :  { %v742_v20 = vsub.f32 %v6472_v56, %v732_v30 }
 0x4d9   :  { %v548_v0 = vpop.xlane.xlu0 %547 }
 0x4da   :  { %v554_v34 = vsub.f32 %v6475_v60, %v548_v0  ;;  %v746_v15 = vmul.f32 1.442695, %v742_v20  ;;  %v558_v60 = vmul.f32 1.442695, %v553_v7 }
 0x4db   :  { %v738_v37 = vpop.xlane.xlu1 %737 }
 0x4dc   :  { %v560_v46 = vmul.f32 1.442695, %v554_v34  ;;  %v744_v44 = vsub.f32 %v6481_v1, %v738_v37 }
 0x4dd   :  { %v542_v54 = vpop.xlane.xlu0 %541 }
 0x4de   :  { %5447 = vpow2.f32 %v560_v46  ;;  %v552_v4 = vsub.f32 %v6486_v51, %v542_v54  ;;  %v750_v56 = vmul.f32 1.442695, %v744_v44 }
 0x4df   :  { %v946_v62 = vpop.xlane.xlu1 %945 }
 0x4e0   :  { %v556_v17 = vmul.f32 1.442695, %v552_v4  ;;  %v956_v28 = vsub.f32 %v6494_v21, %v946_v62 }
 0x4e1   :  { %v551_v8 = vpop.xlane.xlu0 %550 }
 0x4e2   :  { %5449 = vpow2.f32 %v556_v17  ;;  %v555_v32 = vsub.f32 %v6499_v36, %v551_v8  ;;  %v960_v51 = vmul.f32 1.442695, %v956_v28 }
 0x4e3   :  { %5451 = vpow2.f32 %v746_v15  ;;  %v952_v33 = vpop.xlane.xlu1 %951 }
 0x4e4   :  { %v562_v29 = vmul.f32 1.442695, %v555_v32  ;;  %v958_v1 = vsub.f32 %v6506_v55, %v952_v33 }
 0x4e5   :  { %v735_v6 = vpop.xlane.xlu0 %734 }
 0x4e6   :  { %5453 = vpow2.f32 %v562_v29  ;;  %v743_v27 = vsub.f32 %v6511_v31, %v735_v6  ;;  %v964_v21 = vmul.f32 1.442695, %v958_v1 }
 0x4e7   :  { %5455 = vpow2.f32 %v558_v60 }
 0x4e8   :  { %5457 = vpow2.f32 %v750_v56  ;;  %v748_v18 = vmul.f32 1.442695, %v743_v27 }
 0x4e9   :  { %v741_v61 = vpop.xlane.xlu0 %740  ;;  %5459 = vpow2.f32 %v960_v51 }
 0x4ea   :  { %v745_v36 = vsub.f32 %v6520_v11, %v741_v61  ;;  %5461 = vpow2.f32 %v748_v18 }
 0x4eb   :  { %v6676_v48 = vpop.eup %5447  ;;  %5463 = vpow2.f32 %v964_v21 }
 0x4ec   :  { %v752_v30 = vmul.f32 1.442695, %v745_v36  ;;  %v570_v0 = vsel %vm539_vm2, %v6676_v48, 0.0 }
 0x4ed   :  { %571 = vadd.xlane.f32.xlu1 %v570_v0  ;;  %v949_v31 = vpop.xlane.xlu0 %948 }
 0x4ee   :  { %v957_v34 = vsub.f32 %v6525_v3, %v949_v31  ;;  %5465 = vpow2.f32 %v752_v30 }
 0x4ef   :  { %v6681_v37 = vpop.eup %5449 }
 0x4f0   :  { %v962_v55 = vmul.f32 1.442695, %v957_v34  ;;  %v564_v11 = vsel %vm539_vm2, %v6681_v37, 0.0  ;;  %v6685_v20 = vpop.eup %5451 }
 0x4f1   :  { %565 = vadd.xlane.f32.xlu1 %v564_v11  ;;  %v955_v46 = vpop.xlane.xlu0 %954  ;;  %v754_v62 = vsel %vm539_vm2, %v6685_v20, 0.0 }
 0x4f2   :  { %v959_v54 = vsub.f32 %v6530_v49, %v955_v46  ;;  %5467 = vpow2.f32 %v962_v55 }
 0x4f3   :  { %v6688_v4 = vpop.eup %5453 }
 0x4f4   :  { %v6690_v7 = vpop.eup %5455  ;;  %v966_v3 = vmul.f32 1.442695, %v959_v54  ;;  %v573_v15 = vsel %vm539_vm2, %v6688_v4, 0.0 }
 0x4f5   :  { %v6696_v44 = vpop.eup %5457  ;;  %755 = vadd.xlane.f32.xlu1 %v754_v62  ;;  %574 = vadd.xlane.f32.xlu0 %v573_v15  ;;  %v567_v8 = vsel %vm539_vm2, %v6690_v7, 0.0 }
 0x4f6   :  { %v6698_v17 = vpop.eup %5459  ;;  %5469 = vpow2.f32 %v966_v3  ;;  %v760_v49 = vsel %vm539_vm2, %v6696_v44, 0.0 }
 0x4f7   :  { %v6704_v32 = vpop.eup %5461  ;;  %v968_v28 = vsel %vm539_vm2, %v6698_v17, 0.0 }
 0x4f8   :  { %v6706_v60 = vpop.eup %5463  ;;  %v757_v56 = vsel %vm539_vm2, %v6704_v32, 0.0 }
 0x4f9   :  { %761 = vadd.xlane.f32.xlu1 %v760_v49  ;;  %568 = vadd.xlane.f32.xlu0 %v567_v8  ;;  %v974_v33 = vsel %vm539_vm2, %v6706_v60, 0.0 }
 0x4fb   :  { %v6712_v29 = vpop.eup %5465 }
 0x4fc   :  { %v763_v6 = vsel %vm539_vm2, %v6712_v29, 0.0 }
 0x4fd   :  { %969 = vadd.xlane.f32.xlu1 %v968_v28  ;;  %758 = vadd.xlane.f32.xlu0 %v757_v56 }
 0x4ff   :  { %v6718_v27 = vpop.eup %5467 }
 0x500   :  { %v971_v51 = vsel %vm539_vm2, %v6718_v27, 0.0 }
 0x501   :  { %975 = vadd.xlane.f32.xlu1 %v974_v33  ;;  %764 = vadd.xlane.f32.xlu0 %v763_v6 }
 0x503   :  { %v6722_v1 = vpop.eup %5469 }
 0x504   :  { %v977_v21 = vsel %vm539_vm2, %v6722_v1, 0.0 }
 0x505   :  { %972 = vadd.xlane.f32.xlu0 %v971_v51 }
 0x507   :  { %v1158_v18 = vpop.xlane.xlu1 %1157  ;;  %v1161_v36 = vpop.xlane.xlu0 %1160 }
 0x508   :  { %v1168_v61 = vsub.f32 %v6540_v50, %v1158_v18  ;;  %v1169_v30 = vsub.f32 %v6543_v45, %v1161_v36 }
 0x509   :  { %978 = vadd.xlane.f32.xlu0 %v977_v21 }
 0x50a   :  { %v1172_v0 = vmul.f32 1.442695, %v1168_v61  ;;  %v1174_v31 = vmul.f32 1.442695, %v1169_v30 }
 0x50b   :  { %v1164_v34 = vpop.xlane.xlu1 %1163  ;;  %v1167_v11 = vpop.xlane.xlu0 %1166 }
 0x50c   :  { %5471 = vpow2.f32 %v1172_v0  ;;  %v1170_v55 = vsub.f32 %v6548_v53, %v1164_v34  ;;  %v1171_v46 = vsub.f32 %v6553_v52, %v1167_v11 }
 0x50d   :  { %5473 = vpow2.f32 %v1174_v31 }
 0x50e   :  { %v1176_v54 = vmul.f32 1.442695, %v1170_v55  ;;  %v1178_v3 = vmul.f32 1.442695, %v1171_v46 }
 0x510   :  { %5475 = vpow2.f32 %v1176_v54 }
 0x511   :  { %5477 = vpow2.f32 %v1178_v3 }
 0x517   :  { %v1370_v50 = vpop.xlane.xlu1 %1369  ;;  %v1373_v15 = vpop.xlane.xlu0 %1372 }
 0x518   :  { %v1380_v62 = vsub.f32 %v6570_v59, %v1370_v50  ;;  %v1381_v49 = vsub.f32 %v6573_v35, %v1373_v15 }
 0x519   :  { %v6731_v45 = vpop.eup %5471 }
 0x51a   :  { %v6734_v8 = vpop.eup %5473  ;;  %v1384_v28 = vmul.f32 1.442695, %v1380_v62  ;;  %v1180_v53 = vsel %vm539_vm2, %v6731_v45, 0.0  ;;  %v1386_v56 = vmul.f32 1.442695, %v1381_v49 }
 0x51b   :  { %v1376_v52 = vpop.xlane.xlu1 %1375  ;;  %1181 = vadd.xlane.f32.xlu1 %v1180_v53  ;;  %v1183_v33 = vsel %vm539_vm2, %v6734_v8, 0.0  ;;  %v1379_v6 = vpop.xlane.xlu0 %1378 }
 0x51c   :  { %5479 = vpow2.f32 %v1384_v28  ;;  %v1382_v59 = vsub.f32 %v6578_v12, %v1376_v52  ;;  %1184 = vadd.xlane.f32.xlu0 %v1183_v33  ;;  %v1383_v35 = vsub.f32 %v6584_v57, %v1379_v6 }
 0x51d   :  { %v6741_v51 = vpop.eup %5475  ;;  %5481 = vpow2.f32 %v1386_v56 }
 0x51e   :  { %v6744_v18 = vpop.eup %5477  ;;  %v1388_v61 = vmul.f32 1.442695, %v1382_v59  ;;  %v1186_v36 = vsel %vm539_vm2, %v6741_v51, 0.0  ;;  %v1390_v21 = vmul.f32 1.442695, %v1383_v35 }
 0x51f   :  { %v1582_v30 = vpop.xlane.xlu1 %1581  ;;  %1187 = vadd.xlane.f32.xlu1 %v1186_v36  ;;  %v1189_v0 = vsel %vm539_vm2, %v6744_v18, 0.0 }
 0x520   :  { %5483 = vpow2.f32 %v1388_v61  ;;  %v1592_v12 = vsub.f32 %v6591_v63, %v1582_v30  ;;  %1190 = vadd.xlane.f32.xlu0 %v1189_v0  ;;  %v1585_v31 = vpop.xlane.xlu0 %1584 }
 0x521   :  { %5485 = vpow2.f32 %v1390_v21  ;;  %v1593_v57 = vsub.f32 %v6594_v47, %v1585_v31 }
 0x522   :  { %v1596_v34 = vmul.f32 1.442695, %v1592_v12 }
 0x523   :  { %v1598_v55 = vmul.f32 1.442695, %v1593_v57  ;;  %v1588_v11 = vpop.xlane.xlu1 %1587 }
 0x524   :  { %5487 = vpow2.f32 %v1596_v34  ;;  %v1594_v46 = vsub.f32 %v6597_v5, %v1588_v11  ;;  %v1591_v54 = vpop.xlane.xlu0 %1590 }
 0x525   :  { %5489 = vpow2.f32 %v1598_v55  ;;  %v1595_v3 = vsub.f32 %v6602_v10, %v1591_v54 }
 0x526   :  { %v1600_v50 = vmul.f32 1.442695, %v1594_v46 }
 0x527   :  { %v1602_v62 = vmul.f32 1.442695, %v1595_v3  ;;  %v1794_v15 = vpop.xlane.xlu1 %1793 }
 0x528   :  { %5491 = vpow2.f32 %v1600_v50  ;;  %v1804_v63 = vsub.f32 %v6622_v13, %v1794_v15  ;;  %v1797_v49 = vpop.xlane.xlu0 %1796 }
 0x529   :  { %v6755_v28 = vpop.eup %5479  ;;  %5493 = vpow2.f32 %v1602_v62  ;;  %v1805_v47 = vsub.f32 %v6625_v2, %v1797_v49 }
 0x52a   :  { %v6758_v53 = vpop.eup %5481  ;;  %v1808_v56 = vmul.f32 1.442695, %v1804_v63  ;;  %v1392_v5 = vsel %vm539_vm2, %v6755_v28, 0.0 }
 0x52b   :  { %v1810_v52 = vmul.f32 1.442695, %v1805_v47  ;;  %v1800_v10 = vpop.xlane.xlu1 %1799  ;;  %1393 = vadd.xlane.f32.xlu1 %v1392_v5  ;;  %v1395_v33 = vsel %vm539_vm2, %v6758_v53, 0.0 }
 0x52c   :  { %5495 = vpow2.f32 %v1808_v56  ;;  %v1806_v13 = vsub.f32 %v6632_v16, %v1800_v10  ;;  %1396 = vadd.xlane.f32.xlu0 %v1395_v33  ;;  %v1803_v59 = vpop.xlane.xlu0 %1802 }
 0x52d   :  { %v6765_v6 = vpop.eup %5483  ;;  %5497 = vpow2.f32 %v1810_v52  ;;  %v1807_v36 = vsub.f32 %v6635_v42, %v1803_v59 }
 0x52e   :  { %v6767_v2 = vpop.eup %5485  ;;  %v1398_v35 = vsel %vm539_vm2, %v6765_v6, 0.0  ;;  %v1812_v61 = vmul.f32 1.442695, %v1806_v13 }
 0x52f   :  { %v2006_v21 = vpop.xlane.xlu1 %2005  ;;  %1399 = vadd.xlane.f32.xlu1 %v1398_v35  ;;  %v1401_v30 = vsel %vm539_vm2, %v6767_v2, 0.0  ;;  %v1814_v55 = vmul.f32 1.442695, %v1807_v36 }
 0x530   :  { %v2016_v16 = vsub.f32 %v6641_v58, %v2006_v21  ;;  %1402 = vadd.xlane.f32.xlu0 %v1401_v30  ;;  %v2009_v0 = vpop.xlane.xlu0 %2008  ;;  %5499 = vpow2.f32 %v1812_v61 }
 0x531   :  { %v6775_v12 = vpop.eup %5487  ;;  %v2017_v42 = vsub.f32 %v6646_v43, %v2009_v0 }
 0x532   :  { %v6777_v31 = vpop.eup %5489  ;;  %v2020_v57 = vmul.f32 1.442695, %v2016_v16  ;;  %v1604_v34 = vsel %vm539_vm2, %v6775_v12, 0.0 }
 0x533   :  { %1605 = vadd.xlane.f32.xlu1 %v1604_v34  ;;  %v1607_v11 = vsel %vm539_vm2, %v6777_v31, 0.0  ;;  %v2012_v58 = vpop.xlane.xlu1 %2011  ;;  %v2022_v50 = vmul.f32 1.442695, %v2017_v42 }
 0x534   :  { %5501 = vpow2.f32 %v2020_v57  ;;  %1608 = vadd.xlane.f32.xlu0 %v1607_v11  ;;  %v2018_v62 = vsub.f32 %v6651_v14, %v2012_v58  ;;  %v2015_v15 = vpop.xlane.xlu0 %2014 }
 0x535   :  { %v6784_v46 = vpop.eup %5491  ;;  %5503 = vpow2.f32 %v1814_v55  ;;  %v2019_v56 = vsub.f32 %v6656_v22, %v2015_v15 }
 0x536   :  { %v6786_v54 = vpop.eup %5493  ;;  %v1610_v3 = vsel %vm539_vm2, %v6784_v46, 0.0  ;;  %5505 = vpow2.f32 %v2022_v50  ;;  %v2024_v47 = vmul.f32 1.442695, %v2018_v62 }
 0x537   :  { %1611 = vadd.xlane.f32.xlu1 %v1610_v3  ;;  %v1613_v43 = vsel %vm539_vm2, %v6786_v54, 0.0  ;;  %v2026_v14 = vmul.f32 1.442695, %v2019_v56  ;;  %v6830_v57 = vpop.permute.xlu1 %1840 }
 0x538   :  { %1614 = vadd.xlane.f32.xlu0 %v1613_v43  ;;  %5507 = vpow2.f32 %v2024_v47  ;;  %v6832_v55 = vpop.permute.xlu0 %2052 }
 0x539   :  { %v6793_v63 = vpop.eup %5495  ;;  %5509 = vpow2.f32 %v2026_v14 }
 0x53a   :  { %v1816_v49 = vsel %vm539_vm2, %v6793_v63, 0.0  ;;  %v6798_v5 = vpop.eup %5497 }
 0x53b   :  { %v1819_v52 = vsel %vm539_vm2, %v6798_v5, 0.0 }
 0x53c   :  { %1817 = vadd.xlane.f32.xlu0 %v1816_v49 }
 0x53d   :  { %v6802_v10 = vpop.eup %5499 }
 0x53e   :  { %v1822_v22 = vsel %vm539_vm2, %v6802_v10, 0.0 }
 0x540   :  { %1820 = vadd.xlane.f32.xlu0 %v1819_v52 }
 0x541   :  { %v6804_v33 = vpop.eup %5501 }
 0x542   :  { %v2028_v13 = vsel %vm539_vm2, %v6804_v33, 0.0  ;;  %v6810_v59 = vpop.eup %5503 }
 0x543   :  { %2029 = vadd.xlane.f32.xlu1 %v2028_v13  ;;  %v1825_v35 = vsel %vm539_vm2, %v6810_v59, 0.0  ;;  %v6814_v61 = vpop.eup %5505 }
 0x544   :  { %1823 = vadd.xlane.f32.xlu0 %v1822_v22  ;;  %v2031_v36 = vsel %vm539_vm2, %v6814_v61, 0.0 }
 0x545   :  { %v6818_v21 = vpop.eup %5507 }
 0x546   :  { %v2034_v30 = vsel %vm539_vm2, %v6818_v21, 0.0  ;;  %v6822_v16 = vpop.eup %5509 }
 0x547   :  { %v2037_v0 = vsel %vm539_vm2, %v6822_v16, 0.0 }
 0x548   :  { %1826 = vadd.xlane.f32.xlu0 %v1825_v35 }
 0x54c   :  { %2032 = vadd.xlane.f32.xlu0 %v2031_v36 }
 0x550   :  { %2035 = vadd.xlane.f32.xlu0 %v2034_v30 }
 0x554   :  { %2038 = vadd.xlane.f32.xlu0 %v2037_v0  ;;  %1838 = vrot.lane.b32.xlu1 %v6184_v19, %s5976_s14 }
 0x56a   :  { %2050 = vrot.lane.b32.xlu0 %v6184_v19, %s5977_s23 }
 0x576   :  { %v572_v34 = vpop.xlane.xlu1 %571 }
 0x57a   :  { %v566_v42 = vpop.xlane.xlu1 %565 }
 0x57e   :  { %v756_v11 = vpop.xlane.xlu1 %755  ;;  %v575_v58 = vpop.xlane.xlu0 %574 }
 0x57f   :  { %5511 = vrcp.f32 %v575_v58 }
 0x580   :  { %5513 = vrcp.f32 %v566_v42 }
 0x581   :  { %5515 = vrcp.f32 %v572_v34 }
 0x582   :  { %v762_v3 = vpop.xlane.xlu1 %761  ;;  %v569_v50 = vpop.xlane.xlu0 %568 }
 0x583   :  { %5517 = vrcp.f32 %v569_v50 }
 0x584   :  { %5519 = vrcp.f32 %v756_v11 }
 0x586   :  { %v759_v62 = vpop.xlane.xlu0 %758  ;;  %v970_v43 = vpop.xlane.xlu1 %969 }
 0x587   :  { %5521 = vrcp.f32 %v759_v62 }
 0x588   :  { %5523 = vrcp.f32 %v762_v3 }
 0x58a   :  { %v765_v19 = vpop.xlane.xlu0 %764  ;;  %v976_v49 = vpop.xlane.xlu1 %975 }
 0x58b   :  { %5525 = vrcp.f32 %v765_v19 }
 0x58c   :  { %5527 = vrcp.f32 %v970_v43  ;;  %v5512_v15 = vpop.eup %5511 }
 0x58d   :  { %v5514_v56 = vpop.eup %5513  ;;  %v583_v13 = vmul.f32 %v5512_v15, %v6688_v4 }
 0x58e   :  { %v973_v47 = vpop.xlane.xlu0 %972  ;;  %v5516_v14 = vpop.eup %5515  ;;  %v580_v35 = vmul.f32 %v5514_v56, %v6681_v37 }
 0x58f   :  { %5529 = vrcp.f32 %v973_v47  ;;  %v582_v0 = vmul.f32 %v5516_v14, %v6676_v48 }
 0x590   :  { %v5518_v52 = vpop.eup %5517  ;;  %5531 = vrcp.f32 %v976_v49 }
 0x591   :  { %v581_v36 = vmul.f32 %v5518_v52, %v6690_v7  ;;  %v5520_v30 = vpop.eup %5519  ;;  %v585_v11 = vpack.c.bf16 %v583_v13, %v582_v0 }
 0x592   :  { %v979_v22 = vpop.xlane.xlu0 %978  ;;  %v770_v58 = vmul.f32 %v5520_v30, %v6685_v20 }
 0x593   :  { %5533 = vrcp.f32 %v979_v22  ;;  %v584_v34 = vpack.c.bf16 %v581_v36, %v580_v35 }
 0x594   :  { %v5522_v42 = vpop.eup %5521 }
 0x595   :  { %5018 = vmatprep.mubr.msk.bf16.mxu1 %vm539_vm2, %v584_v34  ;;  %v771_v3 = vmul.f32 %v5522_v42, %v6704_v32  ;;  %v5524_v50 = vpop.eup %5523 }
 0x596   :  { %5019 = vmatmul.mubr.msk.bf16.vlgmr.msra.gmra.mxu1 %vm539_vm2, %v585_v11  ;;  %v772_v48 = vmul.f32 %v5524_v50, %v6696_v44 }
 0x597   :  { %5023 = vmatpush3.bf16.msra.mxu1 %v6214_v23  ;;  %v774_v37 = vpack.c.bf16 %v771_v3, %v770_v58 }
 0x598   :  { %v5526_v4 = vpop.eup %5525  ;;  %5024 = vmatprep.subr.bf16.mxu1 %v6221_v26 }
 0x599   :  { %v5528_v7 = vpop.eup %5527  ;;  %5026 = vmatprep.mubr.msk.bf16.mxu1 %vm539_vm2, %v774_v37  ;;  %v773_v62 = vmul.f32 %v5526_v4, %v6712_v29 }
 0x59a   :  { %v984_v32 = vmul.f32 %v5528_v7, %v6698_v17 }
 0x59b   :  { %5025 = vmatpush3.bf16.msra.mxu1 %v6221_v26  ;;  %v775_v20 = vpack.c.bf16 %v773_v62, %v772_v48 }
 0x59c   :  { %v5530_v43 = vpop.eup %5529  ;;  %5038 = vmatprep.subr.bf16.mxu1 %v6327_v39 }
 0x59d   :  { %v985_v23 = vmul.f32 %v5530_v43, %v6718_v27  ;;  %v5532_v19 = vpop.eup %5531 }
 0x59e   :  { %5027 = vmatmul.mubr.msk.bf16.vlgmr.msra.gmra.mxu1 %vm539_vm2, %v775_v20  ;;  %v986_v26 = vmul.f32 %v5532_v19, %v6706_v60 }
 0x59f   :  { %v988_v15 = vpack.c.bf16 %v985_v23, %v984_v32  ;;  %5039 = vmatpush3.bf16.msra.mxu1 %v6327_v39 }
 0x5a0   :  { %v5534_v49 = vpop.eup %5533  ;;  %5040 = vmatprep.subr.bf16.mxu1 %v6323_v38 }
 0x5a1   :  { %5034 = vmatprep.mubr.msk.bf16.mxu0 %vm539_vm2, %v988_v15  ;;  %v987_v44 = vmul.f32 %v5534_v49, %v6722_v1 }
 0x5a3   :  { %v989_v29 = vpack.c.bf16 %v987_v44, %v986_v26  ;;  %5041 = vmatpush3.bf16.msra.mxu1 %v6323_v38 }
 0x5a4   :  { %v1182_v17 = vpop.xlane.xlu1 %1181  ;;  %5054 = vmatprep.subr.bf16.mxu1 %v6219_v25 }
 0x5a5   :  { %5535 = vrcp.f32 %v1182_v17  ;;  %v1185_v27 = vpop.xlane.xlu0 %1184  ;;  %5035 = vmatmul.mubr.msk.bf16.vlgmr.msra.gmra.mxu0 %vm539_vm2, %v989_v29 }
 0x5a6   :  { %5537 = vrcp.f32 %v1185_v27  ;;  %5047 = vmatpush3.bf16.msra.mxu0 %v6217_v24 }
 0x5a7   :  { %5048 = vmatprep.subr.bf16.mxu0 %v6334_v41 }
 0x5a8   :  { %v1188_v39 = vpop.xlane.xlu1 %1187 }
 0x5a9   :  { %5539 = vrcp.f32 %v1188_v39  ;;  %v1191_v60 = vpop.xlane.xlu0 %1190 }
 0x5aa   :  { %5541 = vrcp.f32 %v1191_v60  ;;  %5049 = vmatpush3.bf16.msra.mxu0 %v6334_v41 }
 0x5ab   :  { %5062 = vmatprep.subr.bf16.mxu0 %v6830_v57 }
 0x5b2   :  { %v5536_v38 = vpop.eup %5535 }
 0x5b3   :  { %v5538_v1 = vpop.eup %5537  ;;  %v1196_v47 = vmul.f32 %v5536_v38, %v6731_v45 }
 0x5b4   :  { %v1394_v56 = vpop.xlane.xlu1 %1393  ;;  %v1197_v14 = vmul.f32 %v5538_v1, %v6734_v8 }
 0x5b5   :  { %5543 = vrcp.f32 %v1394_v56  ;;  %v1397_v52 = vpop.xlane.xlu0 %1396 }
 0x5b6   :  { %v5540_v24 = vpop.eup %5539  ;;  %5545 = vrcp.f32 %v1397_v52  ;;  %v1200_v13 = vpack.c.bf16 %v1197_v14, %v1196_v47 }
 0x5b7   :  { %v5542_v22 = vpop.eup %5541  ;;  %v1198_v35 = vmul.f32 %v5540_v24, %v6741_v51 }
 0x5b8   :  { %5042 = vmatprep.mubr.msk.bf16.mxu1 %vm539_vm2, %v1200_v13  ;;  %v1400_v41 = vpop.xlane.xlu1 %1399  ;;  %v1199_v36 = vmul.f32 %v5542_v22, %v6744_v18 }
 0x5b9   :  { %5547 = vrcp.f32 %v1400_v41  ;;  %v1403_v30 = vpop.xlane.xlu0 %1402 }
 0x5ba   :  { %5549 = vrcp.f32 %v1403_v30  ;;  %v1201_v45 = vpack.c.bf16 %v1199_v36, %v1198_v35 }
 0x5bc   :  { %5043 = vmatmul.mubr.msk.bf16.vlgmr.msra.gmra.mxu1 %vm539_vm2, %v1201_v45  ;;  %v1606_v8 = vpop.xlane.xlu1 %1605 }
 0x5bd   :  { %5055 = vmatpush3.bf16.msra.mxu1 %v6219_v25  ;;  %5551 = vrcp.f32 %v1606_v8  ;;  %v1609_v0 = vpop.xlane.xlu0 %1608 }
 0x5be   :  { %5056 = vmatprep.subr.bf16.mxu1 %v6331_v40  ;;  %5553 = vrcp.f32 %v1609_v0 }
 0x5c0   :  { %v1612_v51 = vpop.xlane.xlu1 %1611 }
 0x5c1   :  { %5057 = vmatpush3.bf16.msra.mxu1 %v6331_v40  ;;  %5555 = vrcp.f32 %v1612_v51  ;;  %v1615_v34 = vpop.xlane.xlu0 %1614 }
 0x5c2   :  { %v5544_v18 = vpop.eup %5543  ;;  %5070 = vmatprep.subr.bf16.mxu1 %v6832_v55  ;;  %5557 = vrcp.f32 %v1615_v34 }
 0x5c3   :  { %v5546_v42 = vpop.eup %5545  ;;  %v1408_v11 = vmul.f32 %v5544_v18, %v6755_v28 }
 0x5c4   :  { %v1409_v58 = vmul.f32 %v5546_v42, %v6758_v53 }
 0x5c5   :  { %v1818_v25 = vpop.xlane.xlu0 %1817 }
 0x5c6   :  { %v5548_v3 = vpop.eup %5547  ;;  %v1412_v50 = vpack.c.bf16 %v1409_v58, %v1408_v11  ;;  %5559 = vrcp.f32 %v1818_v25 }
 0x5c7   :  { %v5550_v37 = vpop.eup %5549  ;;  %v1410_v4 = vmul.f32 %v5548_v3, %v6765_v6 }
 0x5c8   :  { %5050 = vmatprep.mubr.msk.bf16.mxu0 %vm539_vm2, %v1412_v50  ;;  %v1411_v40 = vmul.f32 %v5550_v37, %v6767_v2 }
 0x5c9   :  { %v1821_v7 = vpop.xlane.xlu0 %1820 }
 0x5ca   :  { %v5552_v48 = vpop.eup %5551  ;;  %5561 = vrcp.f32 %v1821_v7  ;;  %v1413_v62 = vpack.c.bf16 %v1411_v40, %v1410_v4  ;;  %v2152_v40 = vld [vmem:[%s6019_s29 + $0x70] sm:$0xff]  ;;  %v2153_v7 = vld [vmem:[%s6019_s29 + $0x78] sm:$0xff] }
 0x5cb   :  { %v5554_v43 = vpop.eup %5553  ;;  %v1620_v28 = vmul.f32 %v5552_v48, %v6775_v12  ;;  %v2161_v48 = vpack.c.bf16 %v2153_v7, %v2152_v40 }
 0x5cc   :  { %5051 = vmatmul.mubr.msk.bf16.vlgmr.msra.gmra.mxu0 %vm539_vm2, %v1413_v62  ;;  %v2030_v53 = vpop.xlane.xlu1 %2029  ;;  %v1621_v20 = vmul.f32 %v5554_v43, %v6777_v31  ;;  %v2150_v43 = vld [vmem:[%s6019_s29 + $0x60] sm:$0xff] }
 0x5cd   :  { %5063 = vmatpush3.bf16.msra.mxu0 %v6830_v57  ;;  %v1824_v6 = vpop.xlane.xlu0 %1823 }
 0x5ce   :  { %v5556_v32 = vpop.eup %5555  ;;  %v1624_v23 = vpack.c.bf16 %v1621_v20, %v1620_v28  ;;  %5563 = vrcp.f32 %v1824_v6  ;;  %v2151_v28 = vld [vmem:[%s6019_s29 + $0x68] sm:$0xff]  ;;  %v2148_v20 = vld [vmem:[%s6019_s29 + $0x50] sm:$0xff]  ;;  %v2149_v6 = vld [vmem:[%s6019_s29 + $0x58] sm:$0xff] }
 0x5cf   :  { %v5558_v19 = vpop.eup %5557  ;;  %v1622_v2 = vmul.f32 %v5556_v32, %v6784_v46  ;;  %v2159_v32 = vpack.c.bf16 %v2149_v6, %v2148_v20 }
 0x5d0   :  { %5058 = vmatprep.mubr.msk.bf16.mxu1 %vm539_vm2, %v1624_v23  ;;  %v1839_v15 = vpop.permute.xlu1 %1838  ;;  %v1623_v49 = vmul.f32 %v5558_v19, %v6786_v54  ;;  %v2146_v19 = vld [vmem:[%s6019_s29 + $0x40] sm:$0xff] }
 0x5d1   :  { %v1827_v12 = vpop.xlane.xlu0 %1826  ;;  %5064 = vmatprep.subr.bf16.mxu0 %v1839_v15 }
 0x5d2   :  { %5565 = vrcp.f32 %v1827_v12  ;;  %5065 = vmatpush3.bf16.msra.mxu0 %v1839_v15  ;;  %v1625_v26 = vpack.c.bf16 %v1623_v49, %v1622_v2  ;;  %v2147_v2 = vld [vmem:[%s6019_s29 + $0x48] sm:$0xff]  ;;  %v2144_v12 = vld [vmem:[%s6019_s29 + $0x30] sm:$0xff] }
 0x5d3   :  { %5567 = vrcp.f32 %v2030_v53  ;;  %v5560_v31 = vpop.eup %5559  ;;  %5078 = vmatprep.subr.bf16.mxu0 %v2161_v48  ;;  %v2160_v53 = vpack.c.bf16 %v2151_v28, %v2150_v43  ;;  %v2158_v15 = vpack.c.bf16 %v2147_v2, %v2146_v19 }
 0x5d4   :  { %5059 = vmatmul.mubr.msk.bf16.vlgmr.msra.gmra.mxu1 %vm539_vm2, %v1625_v26  ;;  %v1832_v44 = vmul.f32 %v5560_v31, %v6793_v63  ;;  %v2145_v26 = vld [vmem:[%s6019_s29 + $0x38] sm:$0xff] }
 0x5d5   :  { %5071 = vmatpush3.bf16.msra.mxu1 %v6832_v55  ;;  %v2033_v57 = vpop.xlane.xlu0 %2032  ;;  %v2157_v31 = vpack.c.bf16 %v2145_v26, %v2144_v12 }
 0x5d6   :  { %5569 = vrcp.f32 %v2033_v57 }
 0x5d7   :  { %v5562_v46 = vpop.eup %5561 }
 0x5d8   :  { %v1833_v29 = vmul.f32 %v5562_v46, %v6798_v5  ;;  %v2142_v46 = vld [vmem:[%s6019_s29 + $0x20] sm:$0xff] }
 0x5d9   :  { %v2036_v17 = vpop.xlane.xlu0 %2035 }
 0x5da   :  { %v1836_v54 = vpack.c.bf16 %v1833_v29, %v1832_v44  ;;  %5571 = vrcp.f32 %v2036_v17  ;;  %v2143_v44 = vld [vmem:[%s6019_s29 + $0x28] sm:$0xff] }
 0x5db   :  { %v5564_v27 = vpop.eup %5563  ;;  %v2156_v29 = vpack.c.bf16 %v2143_v44, %v2142_v46 }
 0x5dc   :  { %5066 = vmatprep.mubr.msk.bf16.mxu0 %vm539_vm2, %v1836_v54  ;;  %v1834_v38 = vmul.f32 %v5564_v27, %v6802_v10  ;;  %v2140_v54 = vld [vmem:[%s6019_s29 + $0x10] sm:$0xff]  ;;  %v2141_v27 = vld [vmem:[%s6019_s29 + $0x18] sm:$0xff] }
 0x5dd   :  { %v2039_v39 = vpop.xlane.xlu0 %2038 }
 0x5de   :  { %5573 = vrcp.f32 %v2039_v39  ;;  %v2138_v39 = vld [vmem:[%s6019_s29] sm:$0xff] }
 0x5df   :  { %v5566_v60 = vpop.eup %5565 }
 0x5e0   :  { %v1835_v55 = vmul.f32 %v5566_v60, %v6810_v59  ;;  %v5568_v1 = vpop.eup %5567  ;;  %v2155_v60 = vpack.c.bf16 %v2141_v27, %v2140_v54 }
 0x5e1   :  { %v2051_v47 = vpop.permute.xlu0 %2050  ;;  %v2044_v5 = vmul.f32 %v5568_v1, %v6804_v33 }
 0x5e2   :  { %5072 = vmatprep.subr.bf16.mxu1 %v2051_v47  ;;  %v1837_v56 = vpack.c.bf16 %v1835_v55, %v1834_v38  ;;  %v2139_v38 = vld [vmem:[%s6019_s29 + $0x8] sm:$0xff]  ;;  %s7914_s29 = sld [smem:[#allocation26_spill]] }
 0x5e3   :  { %v5570_v63 = vpop.eup %5569  ;;  %5073 = vmatpush3.bf16.msra.mxu1 %v2051_v47  ;;  %v2154_v47 = vpack.c.bf16 %v2139_v38, %v2138_v39 }
 0x5e4   :  { %5067 = vmatmul.mubr.msk.bf16.vlgmr.msra.gmra.mxu0 %vm539_vm2, %v1837_v56  ;;  %v2045_v14 = vmul.f32 %v5570_v63, %v6814_v61 }
 0x5e5   :  { %5079 = vmatpush3.bf16.msra.mxu0 %v2161_v48 }
 0x5e6   :  { %v2048_v52 = vpack.c.bf16 %v2045_v14, %v2044_v5  ;;  %5080 = vmatprep.subr.bf16.mxu0 %v2160_v53 }
 0x5e7   :  { %v5572_v24 = vpop.eup %5571 }
 0x5e8   :  { %5074 = vmatprep.mubr.msk.bf16.mxu1 %vm539_vm2, %v2048_v52  ;;  %v2046_v10 = vmul.f32 %v5572_v24, %v6818_v21 }
 0x5e9   :  { %5081 = vmatpush3.bf16.msra.mxu0 %v2160_v53  ;;  %v4755_v53 = vld [vmem:[%s6024_s3] ss:$0 sm:$0xff]  ;;  %s7915_s3 = sld [smem:[#allocation25_spill]] }
 0x5ea   :  { %5082 = vmatprep.subr.bf16.mxu0 %v2159_v32 }
 0x5eb   :  { %v5574_v13 = vpop.eup %5573 }
 0x5ec   :  { %v2047_v59 = vmul.f32 %v5574_v13, %v6822_v16 }
 0x5ed   :  { %5083 = vmatpush3.bf16.msra.mxu0 %v2159_v32 }
 0x5ee   :  { %v2049_v22 = vpack.c.bf16 %v2047_v59, %v2046_v10  ;;  %5084 = vmatprep.subr.bf16.mxu0 %v2158_v15 }
 0x5f0   :  { %5075 = vmatmul.mubr.msk.bf16.vlgmr.msra.gmra.mxu1 %vm539_vm2, %v2049_v22 }
 0x5f1   :  { %5085 = vmatpush3.bf16.msra.mxu0 %v2158_v15 }
 0x5f2   :  { %5086 = vmatprep.subr.bf16.mxu0 %v2157_v31 }
 0x5f5   :  { %5087 = vmatpush3.bf16.msra.mxu0 %v2157_v31 }
 0x5f6   :  { %5088 = vmatprep.subr.bf16.mxu0 %v2156_v29 }
 0x5f9   :  { %5089 = vmatpush3.bf16.msra.mxu0 %v2156_v29 }
 0x5fa   :  { %5090 = vmatprep.subr.bf16.mxu0 %v2155_v60 }
 0x5fd   :  { %5091 = vmatpush3.bf16.msra.mxu0 %v2155_v60 }
 0x5fe   :  { %5092 = vmatprep.subr.bf16.mxu0 %v2154_v47 }
 0x601   :  { %5093 = vmatpush3.bf16.msra.mxu0 %v2154_v47  ;;  %v2301_v47 = vld [vmem:[%s6039_s19 + $0x70] sm:$0xff] }
 0x656   :  { %v5020_v35 = vpop.f32.mrf.mxu1 }
 0x657   :  { %644 = vst.msk [vmem:[#allocation2 + $0x10] sm:$0xff] %vm641_vm6, %v5020_v35 }
 0x658   :  { %v626_v41 = vpop.f32.mrf.mxu1 }
 0x659   :  { %642 = vst.msk [vmem:[#allocation2] sm:$0xff] %vm641_vm6, %v626_v41 }
 0x65a   :  { %v5021_v33 = vpop.f32.mrf.mxu1 }
 0x65b   :  { %645 = vst.msk [vmem:[#allocation2 + $0x18] sm:$0xff] %vm641_vm6, %v5021_v33 }
 0x65c   :  { %v629_v61 = vpop.f32.mrf.mxu1 }
 0x65d   :  { %643 = vst.msk [vmem:[#allocation2 + $0x8] sm:$0xff] %vm641_vm6, %v629_v61 }
 0x65e   :  { %v5028_v36 = vpop.f32.mrf.mxu1 }
 0x65f   :  { %847 = vrot.lane.b32.xlu1 %v5028_v36, %s5977_s23 }
 0x660   :  { %v824_v21 = vpop.f32.mrf.mxu1 }
 0x662   :  { %v5029_v16 = vpop.f32.mrf.mxu1 }
 0x663   :  { %849 = vrot.lane.b32.xlu0 %v5029_v16, %s5977_s23 }
 0x664   :  { %v827_v0 = vpop.f32.mrf.mxu1 }
 0x665   :  { %v5036_v30 = vpop.f32.mrf.mxu0 }
 0x666   :  { %1059 = vrot.lane.b32.xlu1 %v5036_v30, %s5976_s14 }
 0x667   :  { %v1036_v45 = vpop.f32.mrf.mxu0 }
 0x669   :  { %v5037_v8 = vpop.f32.mrf.mxu0 }
 0x66a   :  { %843 = vrot.lane.b32.xlu1 %v824_v21, %s5977_s23  ;;  %1061 = vrot.lane.b32.xlu0 %v5037_v8, %s5976_s14 }
 0x66b   :  { %v1039_v51 = vpop.f32.mrf.mxu0 }
 0x66e   :  { %1055 = vrot.lane.b32.xlu1 %v1036_v45, %s5976_s14  ;;  %845 = vrot.lane.b32.xlu0 %v827_v0, %s5977_s23 }
 0x672   :  { %1057 = vrot.lane.b32.xlu0 %v1039_v51, %s5976_s14 }
 0x67c   :  { %v5044_v34 = vpop.f32.mrf.mxu1 }
 0x67d   :  { %1271 = vrot.lane.b32.xlu1 %v5044_v34, %s5960_s4 }
 0x67e   :  { %v1248_v18 = vpop.f32.mrf.mxu1 }
 0x680   :  { %v5045_v42 = vpop.f32.mrf.mxu1 }
 0x681   :  { %1273 = vrot.lane.b32.xlu0 %v5045_v42, %s5960_s4 }
 0x682   :  { %v1251_v3 = vpop.f32.mrf.mxu1 }
 0x68c   :  { %v5052_v11 = vpop.f32.mrf.mxu0 }
 0x68d   :  { %1483 = vrot.lane.b32.xlu1 %v5052_v11, %s5958_s25 }
 0x68e   :  { %v1460_v58 = vpop.f32.mrf.mxu0 }
 0x690   :  { %v5053_v25 = vpop.f32.mrf.mxu0 }
 0x691   :  { %1267 = vrot.lane.b32.xlu1 %v1248_v18, %s5960_s4  ;;  %1485 = vrot.lane.b32.xlu0 %v5053_v25, %s5958_s25 }
 0x692   :  { %v1463_v37 = vpop.f32.mrf.mxu0 }
 0x694   :  { %v5060_v50 = vpop.f32.mrf.mxu1 }
 0x695   :  { %1479 = vrot.lane.b32.xlu1 %v1460_v58, %s5958_s25  ;;  %1269 = vrot.lane.b32.xlu0 %v1251_v3, %s5960_s4 }
 0x696   :  { %v1672_v4 = vpop.f32.mrf.mxu1 }
 0x698   :  { %v5061_v62 = vpop.f32.mrf.mxu1 }
 0x699   :  { %1481 = vrot.lane.b32.xlu0 %v1463_v37, %s5958_s25  ;;  %1695 = vrot.lane.b32.xlu1 %v5060_v50, %s5959_s6 }
 0x69a   :  { %v1675_v17 = vpop.f32.mrf.mxu1 }
 0x69d   :  { %1697 = vrot.lane.b32.xlu0 %v5061_v62, %s5959_s6 }
 0x6a4   :  { %v5068_v23 = vpop.f32.mrf.mxu0 }
 0x6a5   :  { %1907 = vrot.lane.b32.xlu1 %v5068_v23, %s5956_s17 }
 0x6a6   :  { %v1884_v49 = vpop.f32.mrf.mxu0 }
 0x6a8   :  { %v5069_v57 = vpop.f32.mrf.mxu0 }
 0x6a9   :  { %1691 = vrot.lane.b32.xlu1 %v1672_v4, %s5959_s6  ;;  %1909 = vrot.lane.b32.xlu0 %v5069_v57, %s5956_s17 }
 0x6aa   :  { %v1887_v55 = vpop.f32.mrf.mxu0 }
 0x6ad   :  { %1903 = vrot.lane.b32.xlu1 %v1884_v49, %s5956_s17  ;;  %1693 = vrot.lane.b32.xlu0 %v1675_v17, %s5959_s6 }
 0x6b0   :  { %v5076_v1 = vpop.f32.mrf.mxu1 }
 0x6b1   :  { %1905 = vrot.lane.b32.xlu0 %v1887_v55, %s5956_s17 }
 0x6b2   :  { %v2096_v56 = vpop.f32.mrf.mxu1 }
 0x6b3   :  { %2115 = vrot.lane.b32.xlu1 %v2096_v56, %s5957_s21  ;;  %v2302_v56 = vld [vmem:[%s6039_s19 + $0x78] sm:$0xff] }
 0x6b4   :  { %v5077_v63 = vpop.f32.mrf.mxu1 }
 0x6b6   :  { %v2099_v5 = vpop.f32.mrf.mxu1 }
 0x6b7   :  { %2119 = vrot.lane.b32.xlu1 %v5076_v1, %s5957_s21  ;;  %2117 = vrot.lane.b32.xlu0 %v2099_v5, %s5957_s21  ;;  %v2299_v5 = vld [vmem:[%s6039_s19 + $0x60] sm:$0xff] }
 0x6bb   :  { %2121 = vrot.lane.b32.xlu0 %v5077_v63, %s5957_s21  ;;  %v2310_v63 = vpack.c.bf16 %v2302_v56, %v2301_v47  ;;  %v4757_v56 = vld [vmem:[#allocation10] ss:$0 sm:$0xff] }
 0x6bd   :  { %5098 = vmatprep.subr.bf16.mxu1 %v2310_v63 }
 0x6be   :  { %5099 = vmatpush3.bf16.msra.mxu1 %v2310_v63 }
 0x6d1   :  { %v848_v14 = vpop.permute.xlu1 %847 }
 0x6d2   :  { %858 = vst.msk [vmem:[#allocation2 + $0x10] sm:$0xff] %vm855_vm7, %v848_v14  ;;  %v2300_v14 = vld [vmem:[%s6039_s19 + $0x68] sm:$0xff] }
 0x6d5   :  { %v850_v52 = vpop.permute.xlu0 %849 }
 0x6d6   :  { %859 = vst.msk [vmem:[#allocation2 + $0x18] sm:$0xff] %vm855_vm7, %v850_v52  ;;  %v2309_v52 = vpack.c.bf16 %v2300_v14, %v2299_v5 }
 0x6d8   :  { %v1060_v24 = vpop.permute.xlu1 %1059  ;;  %5100 = vmatprep.subr.bf16.mxu1 %v2309_v52 }
 0x6d9   :  { %1070 = vst.msk [vmem:[#allocation2 + $0x10] sm:$0xff] %vm1067_vm8, %v1060_v24  ;;  %5101 = vmatpush3.bf16.msra.mxu1 %v2309_v52  ;;  %v2297_v24 = vld [vmem:[%s6039_s19 + $0x50] sm:$0xff] }
 0x6dc   :  { %v844_v13 = vpop.permute.xlu1 %843  ;;  %v1062_v10 = vpop.permute.xlu0 %1061 }
 0x6dd   :  { %856 = vst.msk [vmem:[#allocation2] sm:$0xff] %vm855_vm7, %v844_v13  ;;  %v2298_v13 = vld [vmem:[%s6039_s19 + $0x58] sm:$0xff] }
 0x6de   :  { %1071 = vst.msk [vmem:[#allocation2 + $0x18] sm:$0xff] %vm1067_vm8, %v1062_v10  ;;  %v2308_v10 = vpack.c.bf16 %v2298_v13, %v2297_v24 }
 0x6e0   :  { %v1056_v59 = vpop.permute.xlu1 %1055  ;;  %v846_v22 = vpop.permute.xlu0 %845  ;;  %5102 = vmatprep.subr.bf16.mxu1 %v2308_v10 }
 0x6e1   :  { %1068 = vst.msk [vmem:[#allocation2] sm:$0xff] %vm1067_vm8, %v1056_v59  ;;  %v2295_v59 = vld [vmem:[%s6039_s19 + $0x40] sm:$0xff]  ;;  %5103 = vmatpush3.bf16.msra.mxu1 %v2308_v10 }
 0x6e2   :  { %857 = vst.msk [vmem:[#allocation2 + $0x8] sm:$0xff] %vm855_vm7, %v846_v22  ;;  %v2296_v22 = vld [vmem:[%s6039_s19 + $0x48] sm:$0xff] }
 0x6e4   :  { %v1058_v35 = vpop.permute.xlu0 %1057 }
 0x6e5   :  { %1069 = vst.msk [vmem:[#allocation2 + $0x8] sm:$0xff] %vm1067_vm8, %v1058_v35  ;;  %v2307_v35 = vpack.c.bf16 %v2296_v22, %v2295_v59 }
 0x6e7   :  { %5104 = vmatprep.subr.bf16.mxu1 %v2307_v35 }
 0x6e8   :  { %5105 = vmatpush3.bf16.msra.mxu1 %v2307_v35 }
 0x6ef   :  { %v1272_v41 = vpop.permute.xlu1 %1271 }
 0x6f0   :  { %1282 = vst.msk [vmem:[#allocation2 + $0x10] sm:$0xff] %vm1279_vm9, %v1272_v41  ;;  %v2293_v41 = vld [vmem:[%s6039_s19 + $0x30] sm:$0xff] }
 0x6f3   :  { %v1274_v33 = vpop.permute.xlu0 %1273 }
 0x6f4   :  { %1283 = vst.msk [vmem:[#allocation2 + $0x18] sm:$0xff] %vm1279_vm9, %v1274_v33  ;;  %v2294_v33 = vld [vmem:[%s6039_s19 + $0x38] sm:$0xff] }
 0x6ff   :  { %v1484_v61 = vpop.permute.xlu1 %1483 }
 0x700   :  { %1494 = vst.msk [vmem:[#allocation2 + $0x10] sm:$0xff] %vm1491_vm10, %v1484_v61  ;;  %v2306_v61 = vpack.c.bf16 %v2294_v33, %v2293_v41  ;;  %v2364_v33 = vld [vmem:[%s7914_s29 + $0x10] sm:$0xff] }
 0x702   :  { %5106 = vmatprep.subr.bf16.mxu1 %v2306_v61 }
 0x703   :  { %v1268_v36 = vpop.permute.xlu1 %1267  ;;  %v1486_v21 = vpop.permute.xlu0 %1485  ;;  %5107 = vmatpush3.bf16.msra.mxu1 %v2306_v61  ;;  %v2365_v61 = vld [vmem:[%s7914_s29 + $0x18] sm:$0xff] }
 0x704   :  { %1280 = vst.msk [vmem:[#allocation2] sm:$0xff] %vm1279_vm9, %v1268_v36  ;;  %v2291_v36 = vld [vmem:[%s6039_s19 + $0x20] sm:$0xff] }
 0x705   :  { %1495 = vst.msk [vmem:[#allocation2 + $0x18] sm:$0xff] %vm1491_vm10, %v1486_v21  ;;  %v2292_v21 = vld [vmem:[%s6039_s19 + $0x28] sm:$0xff] }
 0x707   :  { %v1480_v16 = vpop.permute.xlu1 %1479  ;;  %v1270_v30 = vpop.permute.xlu0 %1269 }
 0x708   :  { %1492 = vst.msk [vmem:[#allocation2] sm:$0xff] %vm1491_vm10, %v1480_v16  ;;  %v2305_v16 = vpack.c.bf16 %v2292_v21, %v2291_v36  ;;  %v2379_v36 = vpack.c.bf16 %v2365_v61, %v2364_v33  ;;  %v2363_v21 = vld [vmem:[%s7914_s29 + $0x8] sm:$0xff] }
 0x709   :  { %1281 = vst.msk [vmem:[#allocation2 + $0x8] sm:$0xff] %vm1279_vm9, %v1270_v30  ;;  %v2289_v30 = vld [vmem:[%s6039_s19 + $0x10] sm:$0xff] }
 0x70a   :  { %5108 = vmatprep.subr.bf16.mxu1 %v2305_v16 }
 0x70b   :  { %v1696_v45 = vpop.permute.xlu1 %1695  ;;  %v1482_v8 = vpop.permute.xlu0 %1481  ;;  %5109 = vmatpush3.bf16.msra.mxu1 %v2305_v16 }
 0x70c   :  { %1706 = vst.msk [vmem:[#allocation2 + $0x10] sm:$0xff] %vm1703_vm11, %v1696_v45  ;;  %v2290_v45 = vld [vmem:[%s6039_s19 + $0x18] sm:$0xff] }
 0x70d   :  { %1493 = vst.msk [vmem:[#allocation2 + $0x8] sm:$0xff] %vm1491_vm10, %v1482_v8  ;;  %v2304_v8 = vpack.c.bf16 %v2290_v45, %v2289_v30 }
 0x70f   :  { %v1698_v0 = vpop.permute.xlu0 %1697  ;;  %5110 = vmatprep.subr.bf16.mxu1 %v2304_v8 }
 0x710   :  { %1707 = vst.msk [vmem:[#allocation2 + $0x18] sm:$0xff] %vm1703_vm11, %v1698_v0  ;;  %v2287_v0 = vld [vmem:[%s6039_s19] sm:$0xff]  ;;  %5111 = vmatpush3.bf16.msra.mxu1 %v2304_v8 }
 0x717   :  { %v1908_v51 = vpop.permute.xlu1 %1907 }
 0x718   :  { %1918 = vst.msk [vmem:[#allocation2 + $0x10] sm:$0xff] %vm1915_vm12, %v1908_v51  ;;  %v2288_v51 = vld [vmem:[%s6039_s19 + $0x8] sm:$0xff]  ;;  %s7926_s19 = sld [smem:[#allocation27_spill]] }
 0x71b   :  { %v1692_v34 = vpop.permute.xlu1 %1691  ;;  %v1910_v18 = vpop.permute.xlu0 %1909 }
 0x71c   :  { %1704 = vst.msk [vmem:[#allocation2] sm:$0xff] %vm1703_vm11, %v1692_v34  ;;  %v2303_v34 = vpack.c.bf16 %v2288_v51, %v2287_v0 }
 0x71d   :  { %1919 = vst.msk [vmem:[#allocation2 + $0x18] sm:$0xff] %vm1915_vm12, %v1910_v18  ;;  %v2376_v18 = vld [vmem:[%s7914_s29 + $0x70] sm:$0xff] }
 0x71e   :  { %5112 = vmatprep.subr.bf16.mxu1 %v2303_v34 }
 0x71f   :  { %v1904_v42 = vpop.permute.xlu1 %1903  ;;  %v1694_v11 = vpop.permute.xlu0 %1693  ;;  %5113 = vmatpush3.bf16.msra.mxu1 %v2303_v34 }
 0x720   :  { %1916 = vst.msk [vmem:[#allocation2] sm:$0xff] %vm1915_vm12, %v1904_v42  ;;  %v2377_v42 = vld [vmem:[%s7914_s29 + $0x78] sm:$0xff] }
 0x721   :  { %1705 = vst.msk [vmem:[#allocation2 + $0x8] sm:$0xff] %vm1703_vm11, %v1694_v11  ;;  %v2374_v11 = vld [vmem:[%s7914_s29 + $0x60] sm:$0xff] }
 0x723   :  { %v1906_v58 = vpop.permute.xlu0 %1905 }
 0x724   :  { %1917 = vst.msk [vmem:[#allocation2 + $0x8] sm:$0xff] %vm1915_vm12, %v1906_v58  ;;  %v2385_v58 = vpack.c.bf16 %v2377_v42, %v2376_v18 }
 0x725   :  { %v2116_v25 = vpop.permute.xlu1 %2115 }
 0x726   :  { %2128 = vst.msk [vmem:[#allocation2] sm:$0xff] %vm2127_vm13, %v2116_v25  ;;  %v2375_v25 = vld [vmem:[%s7914_s29 + $0x68] sm:$0xff]  ;;  %5118 = vmatprep.subr.bf16.mxu0 %v2385_v58 }
 0x729   :  { %v2120_v3 = vpop.permute.xlu1 %2119  ;;  %v2118_v50 = vpop.permute.xlu0 %2117 }
 0x72a   :  { %2130 = vst.msk [vmem:[#allocation2 + $0x10] sm:$0xff] %vm2127_vm13, %v2120_v3  ;;  %2129 = vst.msk [vmem:[#allocation2 + $0x8] sm:$0xff] %vm2127_vm13, %v2118_v50  ;;  %v2384_v3 = vpack.c.bf16 %v2375_v25, %v2374_v11  ;;  %v2372_v50 = vld [vmem:[%s7914_s29 + $0x50] sm:$0xff] }
 0x72d   :  { %v2122_v37 = vpop.permute.xlu0 %2121  ;;  %v2132_v4 = vld [vmem:[#allocation2] sm:$0xff] }
 0x72e   :  { %2131 = vst.msk [vmem:[#allocation2 + $0x18] sm:$0xff] %vm2127_vm13, %v2122_v37  ;;  %v2373_v37 = vld [vmem:[%s7914_s29 + $0x58] sm:$0xff] }
 0x731   :  { %v2133_v40 = vld [vmem:[#allocation2 + $0x8] sm:$0xff]  ;;  %v2134_v48 = vld [vmem:[#allocation2 + $0x10] sm:$0xff] }
 0x732   :  { %v2136_v7 = vpack.c.bf16 %v2133_v40, %v2132_v4  ;;  %v2383_v4 = vpack.c.bf16 %v2373_v37, %v2372_v50  ;;  %v2370_v40 = vld [vmem:[%s7914_s29 + $0x40] sm:$0xff]  ;;  %v7917_v50 = vmov 12   ;;  %v7918_v37 = vmov 13  }
 0x734   :  { %5094 = vmatprep.mubr.bf16.mxu0 %v2136_v7  ;;  %v2371_v7 = vld [vmem:[%s7914_s29 + $0x48] sm:$0xff] }
 0x735   :  { %v2135_v62 = vld [vmem:[#allocation2 + $0x18] sm:$0xff] }
 0x736   :  { %v2137_v43 = vpack.c.bf16 %v2135_v62, %v2134_v48  ;;  %v2382_v48 = vpack.c.bf16 %v2371_v7, %v2370_v40  ;;  %v2368_v62 = vld [vmem:[%s7914_s29 + $0x30] sm:$0xff]  ;;  %v7920_v7 = vmov 8  }
 0x738   :  { %5095 = vmatmul.mubr.bf16.vlgmr.msra.gmra.mxu0 %v2137_v43  ;;  %v2369_v43 = vld [vmem:[%s7914_s29 + $0x38] sm:$0xff] }
 0x739   :  { %5119 = vmatpush3.bf16.msra.mxu0 %v2385_v58 }
 0x73a   :  { %5120 = vmatprep.subr.bf16.mxu0 %v2384_v3 }
 0x73d   :  { %5121 = vmatpush3.bf16.msra.mxu0 %v2384_v3 }
 0x73e   :  { %5122 = vmatprep.subr.bf16.mxu0 %v2383_v4 }
 0x741   :  { %5123 = vmatpush3.bf16.msra.mxu0 %v2383_v4  ;;  %v7919_v4 = vmov 14  }
 0x742   :  { %5124 = vmatprep.subr.bf16.mxu0 %v2382_v48 }
 0x745   :  { %5125 = vmatpush3.bf16.msra.mxu0 %v2382_v48  ;;  %v7921_v48 = vmov 10  }
 0x7f8   :  { %v5096_v28 = vpop.f32.mrf.mxu0 }
 0x7f9   :  { %v2212_v15 = vadd.f32 %v5096_v28, %v4755_v53  ;;  %v2381_v28 = vpack.c.bf16 %v2369_v43, %v2368_v62  ;;  %v7922_v62 = vmov 11   ;;  %v7923_v43 = vmov 15  }
 0x7fa   :  { %v2203_v20 = vpop.f32.mrf.mxu0 }
 0x7fb   :  { %v2204_v6 = vadd.f32 %v4755_v53, %v2203_v20  ;;  %v2367_v20 = vld [vmem:[%s7914_s29 + $0x28] sm:$0xff]  ;;  %5126 = vmatprep.subr.bf16.mxu0 %v2381_v28 }
 0x7fc   :  { %v5097_v32 = vpop.f32.mrf.mxu0  ;;  %5127 = vmatpush3.bf16.msra.mxu0 %v2381_v28  ;;  %v7924_v28 = vmov 9  }
 0x7fd   :  { %2218 = vadd.xlane.f32.xlu1 %v2204_v6  ;;  %v2215_v19 = vadd.f32 %v5097_v32, %v4755_v53 }
 0x7fe   :  { %v2206_v23 = vpop.f32.mrf.mxu0 }
 0x7ff   :  { %v2207_v2 = vadd.f32 %v4755_v53, %v2206_v23  ;;  %v2366_v53 = vld [vmem:[%s7914_s29 + $0x20] sm:$0xff] }
 0x801   :  { %2220 = vadd.xlane.f32.xlu0 %v2207_v2  ;;  %2224 = vadd.xlane.f32.xlu1 %v2215_v19 }
 0x805   :  { %2222 = vadd.xlane.f32.xlu0 %v2212_v15 }
 0x886   :  { %v2219_v49 = vpop.xlane.xlu1 %2218 }
 0x887   :  { %v2227_v12 = vmul.f32 0.0078125, %v2219_v49 }
 0x889   :  { %v6977_v26 = vsub.f32 %v2204_v6, %v2227_v12  ;;  %v2380_v6 = vpack.c.bf16 %v2367_v20, %v2366_v53 }
 0x88a   :  { %v2221_v31 = vpop.xlane.xlu0 %2220  ;;  %v2225_v57 = vpop.xlane.xlu1 %2224 }
 0x88b   :  { %v2228_v46 = vmul.f32 0.0078125, %v2221_v31  ;;  %v2230_v44 = vmul.f32 0.0078125, %v2225_v57  ;;  %v2235_v29 = vmul.f32 %v6977_v26, %v6977_v26  ;;  %5128 = vmatprep.subr.bf16.mxu0 %v2380_v6 }
 0x88c   :  { %5129 = vmatpush3.bf16.msra.mxu0 %v2380_v6 }
 0x88d   :  { %v6981_v17 = vsub.f32 %v2207_v2, %v2228_v46  ;;  %2239 = vadd.xlane.f32.xlu0 %v2235_v29  ;;  %v6983_v27 = vsub.f32 %v2215_v19, %v2230_v44  ;;  %5130 = vmatprep.subr.bf16.mxu0 %v2379_v36 }
 0x88e   :  { %v2223_v54 = vpop.xlane.xlu0 %2222 }
 0x88f   :  { %v2229_v39 = vmul.f32 0.0078125, %v2223_v54  ;;  %v2236_v60 = vmul.f32 %v6981_v17, %v6981_v17  ;;  %v2238_v1 = vmul.f32 %v6983_v27, %v6983_v27 }
 0x890   :  { %5131 = vmatpush3.bf16.msra.mxu0 %v2379_v36 }
 0x891   :  { %v6987_v38 = vsub.f32 %v2212_v15, %v2229_v39  ;;  %2241 = vadd.xlane.f32.xlu1 %v2236_v60  ;;  %v4756_v60 = vld [vmem:[%s7915_s3] ss:$0 sm:$0xff] }
 0x893   :  { %v2237_v55 = vmul.f32 %v6987_v38, %v6987_v38 }
 0x895   :  { %2243 = vadd.xlane.f32.xlu0 %v2237_v55  ;;  %2245 = vadd.xlane.f32.xlu1 %v2238_v1 }
 0x916   :  { %v2240_v32 = vpop.xlane.xlu0 %2239 }
 0x917   :  { %v2247_v23 = vmul.f32 0.0078125, %v2240_v32 }
 0x919   :  { %v2251_v19 = vadd.f32 1e-05, %v2247_v23 }
 0x91a   :  { %v2242_v2 = vpop.xlane.xlu1 %2241 }
 0x91b   :  { %5575 = vrsqrt.f32 %v2251_v19  ;;  %v2248_v15 = vmul.f32 0.0078125, %v2242_v2 }
 0x91d   :  { %v2252_v49 = vadd.f32 1e-05, %v2248_v15 }
 0x91e   :  { %v2244_v12 = vpop.xlane.xlu0 %2243  ;;  %v2246_v31 = vpop.xlane.xlu1 %2245 }
 0x91f   :  { %5577 = vrsqrt.f32 %v2252_v49  ;;  %v2249_v57 = vmul.f32 0.0078125, %v2244_v12  ;;  %v2250_v46 = vmul.f32 0.0078125, %v2246_v31 }
 0x921   :  { %v2253_v44 = vadd.f32 1e-05, %v2249_v57  ;;  %v2254_v29 = vadd.f32 1e-05, %v2250_v46 }
 0x923   :  { %5579 = vrsqrt.f32 %v2253_v44 }
 0x924   :  { %5581 = vrsqrt.f32 %v2254_v29 }
 0x928   :  { %v5576_v54 = vpop.eup %5575 }
 0x929   :  { %v2259_v39 = vmul.f32 %v5576_v54, %v6977_v26 }
 0x92b   :  { %v2270_v47 = vmul.f32 %v4756_v60, %v2259_v39 }
 0x92c   :  { %v5578_v55 = vpop.eup %5577 }
 0x92d   :  { %v2260_v1 = vmul.f32 %v5578_v55, %v6981_v17  ;;  %v2281_v52 = vadd.f32 %v4757_v56, %v2270_v47 }
 0x92f   :  { %v2271_v63 = vmul.f32 %v4756_v60, %v2260_v1 }
 0x930   :  { %v5580_v5 = vpop.eup %5579 }
 0x931   :  { %v5582_v14 = vpop.eup %5581  ;;  %v2282_v24 = vadd.f32 %v4757_v56, %v2271_v63  ;;  %v2261_v13 = vmul.f32 %v5580_v5, %v6987_v38  ;;  %v2362_v38 = vld [vmem:[%s7914_s29] sm:$0xff] }
 0x932   :  { %v2262_v10 = vmul.f32 %v5582_v14, %v6983_v27  ;;  %v2378_v27 = vpack.c.bf16 %v2363_v21, %v2362_v38 }
 0x933   :  { %v7026_v26 = vpack.c.bf16 %v2282_v24, %v2281_v52  ;;  %v2272_v59 = vmul.f32 %v4756_v60, %v2261_v13 }
 0x934   :  { %v2273_v22 = vmul.f32 %v4756_v60, %v2262_v10  ;;  %5132 = vmatprep.subr.bf16.mxu0 %v2378_v27 }
 0x935   :  { %5114 = vmatprep.mubr.bf16.mxu1 %v7026_v26  ;;  %v2283_v17 = vadd.f32 %v4757_v56, %v2272_v59  ;;  %5133 = vmatpush3.bf16.msra.mxu0 %v2378_v27 }
 0x936   :  { %v2284_v35 = vadd.f32 %v4757_v56, %v2273_v22 }
 0x938   :  { %v7029_v41 = vpack.c.bf16 %v2284_v35, %v2283_v17 }
 0x93a   :  { %7916 = vst [vmem:[#allocation35_spill] sm:$0xff] %v7029_v41  ;;  %5115 = vmatmul.mubr.bf16.vlgmr.msra.gmra.mxu1 %v7029_v41 }
 0x9fa   :  { %v5116_v16 = vpop.f32.mrf.mxu1 }
 0x9fc   :  { %v2345_v30 = vpop.f32.mrf.mxu1 }
 0x9fe   :  { %v5117_v45 = vpop.f32.mrf.mxu1 }
 0x9ff   :  { %v7036_v8 = vpack.c.bf16 %v5117_v45, %v5116_v16 }
 0xa00   :  { %v2348_v0 = vpop.f32.mrf.mxu1 }
 0xa01   :  { %v7038_v51 = vpack.c.bf16 %v2348_v0, %v2345_v30  ;;  %2961 = vrot.lane.b32.xlu1 %v7036_v8, %s5956_s17  ;;  %2750 = vrot.lane.b32.xlu0 %v7036_v8, %s5957_s21 }
 0xa02   :  { %5138 = vmatprep.subr.bf16.mxu1 %v7036_v8 }
 0xa03   :  { %5139 = vmatpush3.bf16.msra.mxu1 %v7036_v8  ;;  %5134 = vmatprep.mubr.bf16.mxu0 %v7038_v51 }
 0xa04   :  { %5140 = vmatprep.subr.bf16.mxu1 %v7038_v51  ;;  %5135 = vmatmul.mubr.bf16.vlgmr.msra.gmra.mxu0 %v7036_v8 }
 0xa05   :  { %3172 = vrot.lane.b32.xlu1 %v7036_v8, %s5959_s6  ;;  %3594 = vrot.lane.b32.xlu0 %v7036_v8, %s5960_s4 }
 0xa07   :  { %5141 = vmatpush3.bf16.msra.mxu1 %v7038_v51 }
 0xa09   :  { %3383 = vrot.lane.b32.xlu1 %v7036_v8, %s5958_s25  ;;  %2959 = vrot.lane.b32.xlu0 %v7038_v51, %s5956_s17 }
 0xa0d   :  { %3170 = vrot.lane.b32.xlu0 %v7038_v51, %s5959_s6  ;;  %2748 = vrot.lane.b32.xlu1 %v7038_v51, %s5957_s21 }
 0xa11   :  { %3592 = vrot.lane.b32.xlu0 %v7038_v51, %s5960_s4  ;;  %3381 = vrot.lane.b32.xlu1 %v7038_v51, %s5958_s25 }
 0xa73   :  { %v7066_v34 = vpop.permute.xlu1 %2961  ;;  %v7068_v18 = vpop.permute.xlu0 %2750 }
 0xa74   :  { %5146 = vmatprep.subr.bf16.mxu1 %v7068_v18 }
 0xa77   :  { %v7071_v42 = vpop.permute.xlu1 %3172  ;;  %v7172_v6 = vpop.permute.xlu0 %3594 }
 0xa7b   :  { %v3384_v11 = vpop.permute.xlu1 %3383  ;;  %v7178_v32 = vpop.permute.xlu0 %2959 }
 0xa7c   :  { %5170 = vmatprep.subr.bf16.mxu0 %v3384_v11 }
 0xa7d   :  { %5171 = vmatpush3.bf16.msra.mxu0 %v3384_v11 }
 0xa7f   :  { %v7073_v58 = vpop.permute.xlu1 %2748  ;;  %v7182_v23 = vpop.permute.xlu0 %3170 }
 0xa83   :  { %v3382_v25 = vpop.permute.xlu1 %3381  ;;  %v7189_v2 = vpop.permute.xlu0 %3592 }
 0xa84   :  { %5172 = vmatprep.subr.bf16.mxu0 %v3382_v25 }
 0xa85   :  { %5173 = vmatpush3.bf16.msra.mxu0 %v3382_v25 }
 0xac4   :  { %v7075_v3 = vpop.f32.mrf.mxu0 }
 0xac5   :  { %2479 = vperm.xlu0 %5414, %v7075_v3   ;;  %2620 = vrot.lane.b32.xlu1 %v7075_v3, %s5964_s24 }
 0xac6   :  { %v7098_v40 = vpop.f32.mrf.mxu0 }
 0xac8   :  { %v7126_v53 = vpop.f32.mrf.mxu0 }
 0xac9   :  { %3677 = vrot.lane.b32.xlu0 %v7075_v3, %s5967_s18  ;;  %2833 = vrot.lane.b32.xlu1 %v7075_v3, %s5963_s0 }
 0xaca   :  { %5418 = vset.pattern.permute.xlu0 %v7917_v50  ;;  %v2423_v20 = vpop.f32.mrf.mxu0 }
 0xacd   :  { %3304 = vperm.xlu0 %5418, %v7075_v3   ;;  %3044 = vrot.lane.b32.xlu1 %v7075_v3, %s5966_s15 }
 0xad1   :  { %5419 = vset.pattern.permute.xlu0 %v7918_v37  ;;  %3255 = vrot.lane.b32.xlu1 %v7075_v3, %s5965_s16 }
 0xad2   :  { %3515 = vperm.xlu0 %5419, %v7075_v3  }
 0xad5   :  { %3466 = vrot.lane.b32.xlu1 %v7075_v3, %s5968_s22 }
 0xad6   :  { %5420 = vset.pattern.permute.xlu0 %v7919_v4 }
 0xad7   :  { %3726 = vperm.xlu0 %5420, %v7075_v3  }
 0xad9   :  { %3888 = vrot.lane.b32.xlu1 %v7075_v3, %s5969_s9 }
 0xadb   :  { %2616 = vrot.lane.b32.xlu0 %v7098_v40, %s5964_s24 }
 0xadc   :  { %5422 = vset.pattern.permute.xlu0 %v7920_v7 }
 0xadd   :  { %2669 = vperm.xlu1 %5415, %v7075_v3  }
 0xadf   :  { %3462 = vrot.lane.b32.xlu0 %v7098_v40, %s5968_s22 }
 0xae1   :  { %5416 = vset.pattern.permute.xlu1 %v7921_v48 }
 0xae2   :  { %2882 = vperm.xlu1 %5416, %v7075_v3  }
 0xae3   :  { %2469 = vperm.xlu0 %5422, %v7098_v40  }
 0xae6   :  { %5417 = vset.pattern.permute.xlu1 %v7922_v62 }
 0xae7   :  { %3093 = vperm.xlu1 %5417, %v7075_v3   ;;  %3673 = vrot.lane.b32.xlu0 %v7098_v40, %s5967_s18 }
 0xae8   :  { %5425 = vset.pattern.permute.xlu0 %v7922_v62 }
 0xaeb   :  { %5421 = vset.pattern.permute.xlu1 %v7923_v43  ;;  %3085 = vperm.xlu0 %5425, %v7098_v40  }
 0xaec   :  { %3937 = vperm.xlu1 %5421, %v7075_v3  }
 0xaef   :  { %5426 = vset.pattern.permute.xlu0 %v7917_v50 }
 0xaf0   :  { %2829 = vrot.lane.b32.xlu1 %v7098_v40, %s5963_s0  ;;  %3296 = vperm.xlu0 %5426, %v7098_v40  }
 0xaf1   :  { %5423 = vset.pattern.permute.xlu1 %v7924_v28 }
 0xaf4   :  { %3040 = vrot.lane.b32.xlu1 %v7098_v40, %s5966_s15  ;;  %5427 = vset.pattern.permute.xlu0 %v7918_v37 }
 0xaf5   :  { %3507 = vperm.xlu0 %5427, %v7098_v40  }
 0xaf8   :  { %3251 = vrot.lane.b32.xlu1 %v7098_v40, %s5965_s16 }
 0xaf9   :  { %2622 = vrot.lane.b32.xlu0 %v7126_v53, %s5964_s24 }
 0xafa   :  { %5431 = vset.pattern.permute.xlu0 %v7924_v28 }
 0xafc   :  { %3884 = vrot.lane.b32.xlu1 %v7098_v40, %s5969_s9 }
 0xafd   :  { %2835 = vrot.lane.b32.xlu0 %v7126_v53, %s5963_s0 }
 0xb00   :  { %2661 = vperm.xlu1 %5423, %v7098_v40  }
 0xb01   :  { %3046 = vrot.lane.b32.xlu0 %v7126_v53, %s5966_s15 }
 0xb04   :  { %5424 = vset.pattern.permute.xlu1 %v7921_v48 }
 0xb05   :  { %2874 = vperm.xlu1 %5424, %v7098_v40   ;;  %3257 = vrot.lane.b32.xlu0 %v7126_v53, %s5965_s16 }
 0xb09   :  { %5428 = vset.pattern.permute.xlu1 %v7919_v4  ;;  %2673 = vperm.xlu0 %5431, %v7126_v53  }
 0xb0a   :  { %3718 = vperm.xlu1 %5428, %v7098_v40  }
 0xb0d   :  { %3890 = vrot.lane.b32.xlu0 %v7126_v53, %s5969_s9 }
 0xb0e   :  { %5429 = vset.pattern.permute.xlu1 %v7923_v43  ;;  %5433 = vset.pattern.permute.xlu0 %v7922_v62 }
 0xb0f   :  { %3929 = vperm.xlu1 %5429, %v7098_v40  }
 0xb11   :  { %3097 = vperm.xlu0 %5433, %v7126_v53  }
 0xb13   :  { %5430 = vset.pattern.permute.xlu1 %v7920_v7 }
 0xb14   :  { %2484 = vperm.xlu1 %5430, %v7126_v53  }
 0xb15   :  { %5434 = vset.pattern.permute.xlu0 %v7917_v50 }
 0xb16   :  { %3308 = vperm.xlu0 %5434, %v7126_v53  }
 0xb18   :  { %3468 = vrot.lane.b32.xlu1 %v7126_v53, %s5968_s22 }
 0xb19   :  { %5432 = vset.pattern.permute.xlu1 %v7921_v48 }
 0xb1a   :  { %5435 = vset.pattern.permute.xlu0 %v7918_v37 }
 0xb1b   :  { %3519 = vperm.xlu0 %5435, %v7126_v53  }
 0xb1c   :  { %3679 = vrot.lane.b32.xlu1 %v7126_v53, %s5967_s18 }
 0xb1f   :  { %2831 = vrot.lane.b32.xlu0 %v2423_v20, %s5963_s0 }
 0xb20   :  { %2886 = vperm.xlu1 %5432, %v7126_v53   ;;  %5439 = vset.pattern.permute.xlu0 %v7924_v28 }
 0xb23   :  { %3042 = vrot.lane.b32.xlu0 %v2423_v20, %s5966_s15 }
 0xb24   :  { %5436 = vset.pattern.permute.xlu1 %v7919_v4 }
 0xb25   :  { %3730 = vperm.xlu1 %5436, %v7126_v53  }
 0xb27   :  { %3464 = vrot.lane.b32.xlu0 %v2423_v20, %s5968_s22 }
 0xb29   :  { %5437 = vset.pattern.permute.xlu1 %v7923_v43 }
 0xb2a   :  { %3941 = vperm.xlu1 %5437, %v7126_v53  }
 0xb2b   :  { %3675 = vrot.lane.b32.xlu0 %v2423_v20, %s5967_s18 }
 0xb2e   :  { %2618 = vrot.lane.b32.xlu1 %v2423_v20, %s5964_s24 }
 0xb2f   :  { %2665 = vperm.xlu0 %5439, %v2423_v20   ;;  %5438 = vset.pattern.permute.xlu1 %v7920_v7 }
 0xb32   :  { %3253 = vrot.lane.b32.xlu1 %v2423_v20, %s5965_s16 }
 0xb33   :  { %5440 = vset.pattern.permute.xlu0 %v7921_v48 }
 0xb34   :  { %2878 = vperm.xlu0 %5440, %v2423_v20  }
 0xb36   :  { %2474 = vperm.xlu1 %5438, %v2423_v20  }
 0xb37   :  { %v7184_v19 = vpop.permute.xlu1 %2620 }
 0xb38   :  { %5442 = vset.pattern.permute.xlu0 %v7917_v50 }
 0xb39   :  { %3300 = vperm.xlu0 %5442, %v2423_v20  }
 0xb3a   :  { %3886 = vrot.lane.b32.xlu1 %v2423_v20, %s5969_s9 }
 0xb3b   :  { %5441 = vset.pattern.permute.xlu1 %v7922_v62  ;;  %v2834_v15 = vpop.permute.xlu1 %2833 }
 0xb3d   :  { %5443 = vset.pattern.permute.xlu0 %v7918_v37 }
 0xb3e   :  { %3511 = vperm.xlu0 %5443, %v2423_v20   ;;  %3089 = vperm.xlu1 %5441, %v2423_v20  }
 0xb3f   :  { %v7194_v12 = vpop.permute.xlu1 %3044 }
 0xb40   :  { %v7192_v49 = vpop.permute.xlu0 %2479 }
 0xb42   :  { %5444 = vset.pattern.permute.xlu1 %v7919_v4 }
 0xb43   :  { %3722 = vperm.xlu1 %5444, %v2423_v20   ;;  %v3256_v57 = vpop.permute.xlu1 %3255 }
 0xb44   :  { %v7197_v31 = vpop.permute.xlu0 %3677 }
 0xb47   :  { %5445 = vset.pattern.permute.xlu1 %v7923_v43  ;;  %v7204_v29 = vpop.permute.xlu1 %3466 }
 0xb48   :  { %v7200_v46 = vpop.permute.xlu0 %3304  ;;  %3933 = vperm.xlu1 %5445, %v2423_v20  }
 0xb4b   :  { %v7208_v39 = vpop.permute.xlu1 %3888 }
 0xb4d   :  { %v7202_v44 = vpop.permute.xlu0 %3515 }
 0xb52   :  { %v7206_v54 = vpop.permute.xlu0 %3726 }
 0xb56   :  { %v2617_v60 = vpop.permute.xlu0 %2616 }
 0xb58   :  { %v7210_v55 = vpop.permute.xlu1 %2669 }
 0xb5a   :  { %v3463_v1 = vpop.permute.xlu0 %3462 }
 0xb5c   :  { %2628 = vxpose.xlu0.b32.start [1/4] (short) (narrow) %v2617_v60, 8 }
 0xb5d   :  { %v7212_v47 = vpop.permute.xlu1 %2882 }
 0xb5e   :  { %v7214_v56 = vpop.permute.xlu0 %2469 }
 0xb62   :  { %v7216_v63 = vpop.permute.xlu1 %3093  ;;  %v3674_v5 = vpop.permute.xlu0 %3673 }
 0xb66   :  { %v7218_v14 = vpop.permute.xlu0 %3085 }
 0xb67   :  { %v7220_v52 = vpop.permute.xlu1 %3937 }
 0xb6b   :  { %v2830_v24 = vpop.permute.xlu1 %2829  ;;  %v7222_v13 = vpop.permute.xlu0 %3296 }
 0xb6f   :  { %v3041_v10 = vpop.permute.xlu1 %3040 }
 0xb70   :  { %v7224_v59 = vpop.permute.xlu0 %3507 }
 0xb71   :  { %2435 = vxpose.xlu1.b32.start [1/4] (short) (narrow) %v7098_v40, 8 }
 0xb73   :  { %v3252_v22 = vpop.permute.xlu1 %3251 }
 0xb74   :  { %v2623_v17 = vpop.permute.xlu0 %2622 }
 0xb75   :  { %2436 = vxpose.xlu1.b32.cont [2/4] (short) (narrow) %v2423_v20, 8 }
 0xb77   :  { %v3885_v35 = vpop.permute.xlu1 %3884 }
 0xb78   :  { %v2836_v33 = vpop.permute.xlu0 %2835 }
 0xb79   :  { %2437 = vxpose.xlu1.b32.cont [3/4] (short) (narrow) %v7075_v3, 8 }
 0xb7b   :  { %v7228_v61 = vpop.permute.xlu1 %2661 }
 0xb7c   :  { %v3047_v36 = vpop.permute.xlu0 %3046 }
 0xb7d   :  { %2438 = vxpose.xlu1.b32.end [4/4] (short) (narrow) %v7126_v53, 8 }
 0xb80   :  { %v7231_v38 = vpop.permute.xlu1 %2874  ;;  %v3258_v21 = vpop.permute.xlu0 %3257 }
 0xb81   :  { %2841 = vxpose.xlu1.b32.start [1/4] (short) (narrow) %v2830_v24, 8 }
 0xb84   :  { %v7233_v27 = vpop.permute.xlu0 %2673 }
 0xb85   :  { %v7235_v16 = vpop.permute.xlu1 %3718 }
 0xb88   :  { %v3891_v30 = vpop.permute.xlu0 %3890 }
 0xb8a   :  { %v7237_v45 = vpop.permute.xlu1 %3929 }
 0xb8c   :  { %v7239_v0 = vpop.permute.xlu0 %3097 }
 0xb8f   :  { %v2485_v11 = vpop.permute.xlu1 %2484 }
 0xb91   :  { %v7241_v25 = vpop.permute.xlu0 %3308 }
 0xb93   :  { %v3469_v3 = vpop.permute.xlu1 %3468 }
 0xb96   :  { %v7243_v50 = vpop.permute.xlu0 %3519 }
 0xb97   :  { %v3680_v37 = vpop.permute.xlu1 %3679 }
 0xb9a   :  { %v2832_v4 = vpop.permute.xlu0 %2831 }
 0xb9b   :  { %v7245_v40 = vpop.permute.xlu1 %2886  ;;  %2842 = vxpose.xlu1.b32.cont [2/4] (short) (narrow) %v2832_v4, 8 }
 0xb9e   :  { %v3043_v53 = vpop.permute.xlu0 %3042 }
 0xb9f   :  { %2843 = vxpose.xlu1.b32.cont [3/4] (short) (narrow) %v2834_v15, 8 }
 0xba0   :  { %v7247_v7 = vpop.permute.xlu1 %3730 }
 0xba2   :  { %v3465_v20 = vpop.permute.xlu0 %3464 }
 0xba3   :  { %2844 = vxpose.xlu1.b32.end [4/4] (short) (narrow) %v2836_v33, 8 }
 0xba5   :  { %v7249_v48 = vpop.permute.xlu1 %3941 }
 0xba6   :  { %v3676_v15 = vpop.permute.xlu0 %3675 }
 0xba7   :  { %3263 = vxpose.xlu1.b32.start [1/4] (short) (narrow) %v3252_v22, 8 }
 0xba9   :  { %v2619_v62 = vpop.permute.xlu1 %2618 }
 0xbaa   :  { %2629 = vxpose.xlu0.b32.cont [2/4] (short) (narrow) %v2619_v62, 8 }
 0xbad   :  { %v3254_v28 = vpop.permute.xlu1 %3253 }
 0xbae   :  { %2630 = vxpose.xlu0.b32.cont [3/4] (short) (narrow) %v7184_v19, 8  ;;  %3264 = vxpose.xlu1.b32.cont [2/4] (short) (narrow) %v3254_v28, 8 }
 0xbb1   :  { %v2475_v19 = vpop.permute.xlu1 %2474 }
 0xbb2   :  { %2631 = vxpose.xlu0.b32.end [4/4] (short) (narrow) %v2623_v17, 8  ;;  %3265 = vxpose.xlu1.b32.cont [3/4] (short) (narrow) %v3256_v57, 8 }
 0xbb5   :  { %v3887_v57 = vpop.permute.xlu1 %3886 }
 0xbb6   :  { %3052 = vxpose.xlu0.b32.start [1/4] (short) (narrow) %v3041_v10, 8  ;;  %3266 = vxpose.xlu1.b32.end [4/4] (short) (narrow) %v3258_v21, 8 }
 0xbb9   :  { %v7255_v60 = vpop.permute.xlu1 %3089 }
 0xbba   :  { %3053 = vxpose.xlu0.b32.cont [2/4] (short) (narrow) %v3043_v53, 8  ;;  %3685 = vxpose.xlu1.b32.start [1/4] (short) (narrow) %v3674_v5, 8 }
 0xbbe   :  { %3054 = vxpose.xlu0.b32.cont [3/4] (short) (narrow) %v7194_v12, 8  ;;  %3686 = vxpose.xlu1.b32.cont [2/4] (short) (narrow) %v3676_v15, 8  ;;  %v7258_v12 = vpop.permute.xlu1 %3722  ;;  %v7286_v15 = vld [vmem:[#allocation7 + $0x8] sm:$0xff] }
 0xbc2   :  { %3055 = vxpose.xlu0.b32.end [4/4] (short) (narrow) %v3047_v36, 8  ;;  %3687 = vxpose.xlu1.b32.cont [3/4] (short) (narrow) %v7197_v31, 8  ;;  %v7265_v36 = vld [vmem:[#allocation7 + $0x10] sm:$0xff] }
 0xbc3   :  { %v7260_v5 = vpop.permute.xlu1 %3933 }
 0xbc6   :  { %3474 = vxpose.xlu0.b32.start [1/4] (short) (narrow) %v3463_v1, 8  ;;  %3688 = vxpose.xlu1.b32.end [4/4] (short) (narrow) %v3680_v37, 8  ;;  %v7279_v37 = vld [vmem:[#allocation7 + $0x18] sm:$0xff] }
 0xbca   :  { %3475 = vxpose.xlu0.b32.cont [2/4] (short) (narrow) %v3465_v20, 8 }
 0xbce   :  { %3476 = vxpose.xlu0.b32.cont [3/4] (short) (narrow) %v7204_v29, 8 }
 0xbd2   :  { %3477 = vxpose.xlu0.b32.end [4/4] (short) (narrow) %v3469_v3, 8 }
 0xbd6   :  { %3896 = vxpose.xlu0.b32.start [1/4] (short) (narrow) %v3885_v35, 8 }
 0xbda   :  { %3897 = vxpose.xlu0.b32.cont [2/4] (short) (narrow) %v3887_v57, 8 }
 0xbde   :  { %3898 = vxpose.xlu0.b32.cont [3/4] (short) (narrow) %v7208_v39, 8 }
 0xbe2   :  { %3899 = vxpose.xlu0.b32.end [4/4] (short) (narrow) %v3891_v30, 8 }
 0xbed   :  { %v2451_v31 = vpop.trf.xlu1 }
 0xbee   :  { %v2490_v1 = vrot.slane %v2451_v31, %v6435_v9  ;;  %v2666_v31 = vpop.permute.xlu0 %2665 }
 0xbf0   :  { %v2493_v24 = vadd.f32 %v2490_v1, %v7192_v49  ;;  %v2491_v29 = vadd.f32 %v2490_v1, %v7214_v56  ;;  %v2494_v10 = vadd.f32 %v2490_v1, %v2485_v11  ;;  %v7272_v49 = vld [vmem:[#allocation7] sm:$0xff]  ;;  %v2492_v28 = vadd.f32 %v2490_v1, %v2475_v19 }
 0xbf2   :  { %vm2497_vm14 = vcmp.gt.f32.partialorder %v2493_v24, 0.0  ;;  %v2501_v22 = vmul.f32 0.2, %v2493_v24  ;;  %vm2495_vm15 = vcmp.gt.f32.partialorder %v2491_v29, 0.0  ;;  %v2499_v17 = vmul.f32 0.2, %v2491_v29 }
 0xbf3   :  { %v2502_v39 = vmul.f32 0.2, %v2494_v10  ;;  %vm2498_vm1 = vcmp.gt.f32.partialorder %v2494_v10, 0.0  ;;  %v2500_v53 = vmul.f32 0.2, %v2492_v28  ;;  %vm2496_vm3 = vcmp.gt.f32.partialorder %v2492_v28, 0.0 }
 0xbf4   :  { %v2505_v35 = vsel %vm2497_vm14, %v2493_v24, %v2501_v22  ;;  %v2503_v33 = vsel %vm2495_vm15, %v2491_v29, %v2499_v17  ;;  %v2879_v29 = vpop.permute.xlu0 %2878 }
 0xbf5   :  { %v7268_v21 = vadd.f32 %v7265_v36, %v2505_v35  ;;  %v7275_v56 = vadd.f32 %v7272_v49, %v2503_v33  ;;  %v2506_v11 = vsel %vm2498_vm1, %v2494_v10, %v2502_v39  ;;  %v2504_v20 = vsel %vm2496_vm3, %v2492_v28, %v2500_v53 }
 0xbf6   :  { %v7282_v4 = vadd.f32 %v7279_v37, %v2506_v11  ;;  %v7289_v57 = vadd.f32 %v7286_v15, %v2504_v20 }
 0xbf7   :  { %v2517_v30 = vsel %vm539_vm2, %v7268_v21, -inf  ;;  %v2511_v3 = vsel %vm539_vm2, %v7275_v56, -inf }
 0xbf8   :  { %2518 = vmax.xlane.f32.xlu1 %v2517_v30  ;;  %v2520_v62 = vsel %vm539_vm2, %v7282_v4, -inf  ;;  %v2514_v24 = vsel %vm539_vm2, %v7289_v57, -inf  ;;  %v7294_v10 = vpop.permute.xlu0 %3300 }
 0xbfc   :  { %2512 = vmax.xlane.f32.xlu1 %v2511_v3  ;;  %v7297_v22 = vpop.permute.xlu0 %3511 }
 0xc00   :  { %2521 = vmax.xlane.f32.xlu1 %v2520_v62 }
 0xc0b   :  { %5446 = vset.pattern.permute.xlu0 %v7923_v43 }
 0xc0f   :  { %2515 = vmax.xlane.f32.xlu0 %v2514_v24 }
 0xc13   :  { %v2857_v19 = vpop.trf.xlu1 }
 0xc14   :  { %v2892_v1 = vrot.slane %v2857_v19, %v6435_v9 }
 0xc16   :  { %v2893_v17 = vadd.f32 %v2892_v1, %v7231_v38  ;;  %v2895_v43 = vadd.f32 %v2892_v1, %v7212_v47  ;;  %v2894_v20 = vadd.f32 %v2892_v1, %v2879_v29  ;;  %v2896_v29 = vadd.f32 %v2892_v1, %v7245_v40 }
 0xc18   :  { %v2901_v3 = vmul.f32 0.2, %v2893_v17  ;;  %vm2897_vm4 = vcmp.gt.f32.partialorder %v2893_v17, 0.0  ;;  %vm2899_vm1 = vcmp.gt.f32.partialorder %v2895_v43, 0.0  ;;  %v2903_v47 = vmul.f32 0.2, %v2895_v43 }
 0xc19   :  { %v2904_v1 = vmul.f32 0.2, %v2896_v29 }
 0xc1a   :  { %v2905_v19 = vsel %vm2897_vm4, %v2893_v17, %v2901_v3  ;;  %v2902_v3 = vmul.f32 0.2, %v2894_v20  ;;  %vm2898_vm4 = vcmp.gt.f32.partialorder %v2894_v20, 0.0 }
 0xc22   :  { %v2644_v35 = vpop.trf.xlu0 }
 0xc23   :  { %v2679_v33 = vrot.slane %v2644_v35, %v6435_v9 }
 0xc25   :  { %v2682_v39 = vadd.f32 %v2679_v33, %v7210_v55  ;;  %v2680_v30 = vadd.f32 %v2679_v33, %v7228_v61  ;;  %v2681_v11 = vadd.f32 %v2679_v33, %v2666_v31  ;;  %v2683_v62 = vadd.f32 %v2679_v33, %v7233_v27 }
 0xc26   :  { %v7314_v33 = vadd.f32 %v7272_v49, %v2905_v19  ;;  %v3279_v17 = vpop.trf.xlu1 }
 0xc27   :  { %vm2686_vm5 = vcmp.gt.f32.partialorder %v2682_v39, 0.0  ;;  %v2690_v28 = vmul.f32 0.2, %v2682_v39  ;;  %vm2684_vm14 = vcmp.gt.f32.partialorder %v2680_v30, 0.0  ;;  %v2688_v53 = vmul.f32 0.2, %v2680_v30 }
 0xc28   :  { %vm2685_vm15 = vcmp.gt.f32.partialorder %v2681_v11, 0.0  ;;  %v2689_v38 = vmul.f32 0.2, %v2681_v11  ;;  %v2691_v35 = vmul.f32 0.2, %v2683_v62  ;;  %vm2687_vm3 = vcmp.gt.f32.partialorder %v2683_v62, 0.0 }
 0xc29   :  { %v2694_v24 = vsel %vm2686_vm5, %v2682_v39, %v2690_v28  ;;  %v2692_v61 = vsel %vm2684_vm14, %v2680_v30, %v2688_v53  ;;  %v3314_v53 = vrot.slane %v3279_v17, %v6435_v9  ;;  %vm2900_vm5 = vcmp.gt.f32.partialorder %v2896_v29, 0.0 }
 0xc2a   :  { %v7306_v55 = vadd.f32 %v7265_v36, %v2694_v24  ;;  %v2693_v31 = vsel %vm2685_vm15, %v2681_v11, %v2689_v38  ;;  %v7309_v41 = vadd.f32 %v7272_v49, %v2692_v61  ;;  %v2907_v11 = vsel %vm2899_vm1, %v2895_v43, %v2903_v47 }
 0xc2b   :  { %v7320_v30 = vadd.f32 %v7286_v15, %v2693_v31  ;;  %v2695_v28 = vsel %vm2687_vm3, %v2683_v62, %v2691_v35  ;;  %v2913_v38 = vsel %vm539_vm2, %v7314_v33, -inf  ;;  %v7326_v40 = vadd.f32 %v7265_v36, %v2907_v11 }
 0xc2c   :  { %v2706_v27 = vsel %vm539_vm2, %v7306_v55, -inf  ;;  %v2700_v39 = vsel %vm539_vm2, %v7309_v41, -inf  ;;  %v7331_v19 = vadd.f32 %v7279_v37, %v2695_v28  ;;  %v2906_v43 = vsel %vm2898_vm4, %v2894_v20, %v2902_v3 }
 0xc2d   :  { %2707 = vmax.xlane.f32.xlu0 %v2706_v27  ;;  %2701 = vmax.xlane.f32.xlu1 %v2700_v39  ;;  %v2703_v24 = vsel %vm539_vm2, %v7320_v30, -inf  ;;  %v2919_v61 = vsel %vm539_vm2, %v7326_v40, -inf  ;;  %v7337_v31 = vadd.f32 %v7286_v15, %v2906_v43  ;;  %v2908_v35 = vsel %vm2900_vm5, %v2896_v29, %v2904_v1 }
 0xc2e   :  { %v3315_v27 = vadd.f32 %v3314_v53, %v7222_v13  ;;  %v2709_v17 = vsel %vm539_vm2, %v7331_v19, -inf  ;;  %v3316_v28 = vadd.f32 %v3314_v53, %v7294_v10  ;;  %v3317_v13 = vadd.f32 %v3314_v53, %v7200_v46 }
 0xc2f   :  { %v7349_v29 = vadd.f32 %v7279_v37, %v2908_v35 }
 0xc30   :  { %vm3319_vm3 = vcmp.gt.f32.partialorder %v3315_v27, 0.0  ;;  %vm3320_vm5 = vcmp.gt.f32.partialorder %v3316_v28, 0.0  ;;  %v3324_v46 = vmul.f32 0.2, %v3316_v28 }
 0xc31   :  { %2914 = vmax.xlane.f32.xlu0 %v2913_v38  ;;  %2704 = vmax.xlane.f32.xlu1 %v2703_v24  ;;  %v3323_v24 = vmul.f32 0.2, %v3315_v27 }
 0xc32   :  { %v3068_v62 = vpop.trf.xlu0 }
 0xc33   :  { %v3103_v47 = vrot.slane %v3068_v62, %v6435_v9 }
 0xc35   :  { %2920 = vmax.xlane.f32.xlu0 %v2919_v61  ;;  %v3104_v20 = vadd.f32 %v3103_v47, %v7218_v14  ;;  %v3105_v39 = vadd.f32 %v3103_v47, %v7255_v60  ;;  %v3106_v11 = vadd.f32 %v3103_v47, %v7216_v63  ;;  %2710 = vmax.xlane.f32.xlu1 %v2709_v17  ;;  %v2916_v60 = vsel %vm539_vm2, %v7337_v31, -inf }
 0xc36   :  { %v3107_v3 = vadd.f32 %v3103_v47, %v7239_v0  ;;  %v3325_v47 = vmul.f32 0.2, %v3317_v13  ;;  %v3318_v17 = vadd.f32 %v3314_v53, %v7241_v25 }
 0xc37   :  { %vm3108_vm14 = vcmp.gt.f32.partialorder %v3104_v20, 0.0  ;;  %v3112_v38 = vmul.f32 0.2, %v3104_v20  ;;  %vm3109_vm15 = vcmp.gt.f32.partialorder %v3105_v39, 0.0  ;;  %v3113_v1 = vmul.f32 0.2, %v3105_v39 }
 0xc38   :  { %vm3110_vm1 = vcmp.gt.f32.partialorder %v3106_v11, 0.0  ;;  %v3114_v14 = vmul.f32 0.2, %v3106_v11  ;;  %v3115_v62 = vmul.f32 0.2, %v3107_v3  ;;  %vm3111_vm4 = vcmp.gt.f32.partialorder %v3107_v3, 0.0 }
 0xc39   :  { %v3116_v63 = vsel %vm3108_vm14, %v3104_v20, %v3112_v38  ;;  %2917 = vmax.xlane.f32.xlu1 %v2916_v60  ;;  %v3117_v10 = vsel %vm3109_vm15, %v3105_v39, %v3113_v1  ;;  %vm3321_vm14 = vcmp.gt.f32.partialorder %v3317_v13, 0.0  ;;  %v3701_v20 = vpop.trf.xlu1  ;;  %v2922_v38 = vsel %vm539_vm2, %v7349_v29, -inf }
 0xc3a   :  { %v7354_v0 = vadd.f32 %v7272_v49, %v3116_v63  ;;  %v3118_v43 = vsel %vm3110_vm1, %v3106_v11, %v3114_v14  ;;  %v7365_v39 = vadd.f32 %v7286_v15, %v3117_v10  ;;  %v3327_v11 = vsel %vm3319_vm3, %v3315_v27, %v3323_v24 }
 0xc3b   :  { %v7359_v35 = vadd.f32 %v7265_v36, %v3118_v43  ;;  %v3119_v1 = vsel %vm3111_vm4, %v3107_v3, %v3115_v62  ;;  %v3328_v14 = vsel %vm3320_vm5, %v3316_v28, %v3324_v46  ;;  %v3329_v60 = vsel %vm3321_vm14, %v3317_v13, %v3325_v47 }
 0xc3c   :  { %v3124_v61 = vsel %vm539_vm2, %v7354_v0, -inf  ;;  %v3736_v63 = vrot.slane %v3701_v20, %v6435_v9  ;;  %v7372_v25 = vadd.f32 %v7272_v49, %v3327_v11  ;;  %v3326_v53 = vmul.f32 0.2, %v3318_v17 }
 0xc3d   :  { %3125 = vmax.xlane.f32.xlu0 %v3124_v61  ;;  %2923 = vmax.xlane.f32.xlu1 %v2922_v38  ;;  %v3130_v43 = vsel %vm539_vm2, %v7359_v35, -inf  ;;  %v3127_v61 = vsel %vm539_vm2, %v7365_v39, -inf  ;;  %v7377_v10 = vadd.f32 %v7279_v37, %v3119_v1  ;;  %vm3322_vm15 = vcmp.gt.f32.partialorder %v3318_v17, 0.0 }
 0xc3e   :  { %v7380_v3 = vadd.f32 %v7286_v15, %v3328_v14  ;;  %v7383_v28 = vadd.f32 %v7265_v36, %v3329_v60  ;;  %v3335_v24 = vsel %vm539_vm2, %v7372_v25, -inf  ;;  %v3330_v62 = vsel %vm3322_vm15, %v3318_v17, %v3326_v53 }
 0xc3f   :  { %v3737_v46 = vadd.f32 %v3736_v63, %v7235_v16  ;;  %v3133_v47 = vsel %vm539_vm2, %v7377_v10, -inf }
 0xc40   :  { %v3338_v1 = vsel %vm539_vm2, %v7380_v3, -inf  ;;  %v3341_v14 = vsel %vm539_vm2, %v7383_v28, -inf }
 0xc41   :  { %3131 = vmax.xlane.f32.xlu0 %v3130_v43  ;;  %3128 = vmax.xlane.f32.xlu1 %v3127_v61  ;;  %v7400_v43 = vadd.f32 %v7279_v37, %v3330_v62  ;;  %vm3741_vm5 = vcmp.gt.f32.partialorder %v3737_v46, 0.0  ;;  %v3745_v53 = vmul.f32 0.2, %v3737_v46  ;;  %v3739_v61 = vadd.f32 %v3736_v63, %v7206_v54 }
 0xc42   :  { %v3490_v27 = vpop.trf.xlu0 }
 0xc43   :  { %v3525_v13 = vrot.slane %v3490_v27, %v6435_v9  ;;  %v3344_v62 = vsel %vm539_vm2, %v7400_v43, -inf }
 0xc45   :  { %3336 = vmax.xlane.f32.xlu0 %v3335_v24  ;;  %v3526_v20 = vadd.f32 %v3525_v13, %v7224_v59  ;;  %v3527_v38 = vadd.f32 %v3525_v13, %v7297_v22  ;;  %v3528_v11 = vadd.f32 %v3525_v13, %v7202_v44  ;;  %3134 = vmax.xlane.f32.xlu1 %v3133_v47 }
 0xc46   :  { %v3529_v17 = vadd.f32 %v3525_v13, %v7243_v50  ;;  %v3738_v44 = vadd.f32 %v3736_v63, %v7258_v12 }
 0xc47   :  { %vm3530_vm1 = vcmp.gt.f32.partialorder %v3526_v20, 0.0  ;;  %v3534_v16 = vmul.f32 0.2, %v3526_v20  ;;  %vm3531_vm3 = vcmp.gt.f32.partialorder %v3527_v38, 0.0  ;;  %v3535_v60 = vmul.f32 0.2, %v3527_v38 }
 0xc48   :  { %vm3532_vm4 = vcmp.gt.f32.partialorder %v3528_v11, 0.0  ;;  %v3536_v59 = vmul.f32 0.2, %v3528_v11  ;;  %v3537_v24 = vmul.f32 0.2, %v3529_v17  ;;  %vm3533_vm14 = vcmp.gt.f32.partialorder %v3529_v17, 0.0 }
 0xc49   :  { %3342 = vmax.xlane.f32.xlu0 %v3341_v14  ;;  %v3538_v22 = vsel %vm3530_vm1, %v3526_v20, %v3534_v16  ;;  %3339 = vmax.xlane.f32.xlu1 %v3338_v1  ;;  %v3539_v27 = vsel %vm3531_vm3, %v3527_v38, %v3535_v60  ;;  %v3749_v20 = vsel %vm3741_vm5, %v3737_v46, %v3745_v53  ;;  %v3746_v1 = vmul.f32 0.2, %v3738_v44 }
 0xc4a   :  { %v7405_v50 = vadd.f32 %v7272_v49, %v3538_v22  ;;  %v3540_v13 = vsel %vm3532_vm4, %v3528_v11, %v3536_v59  ;;  %v7415_v54 = vadd.f32 %v7286_v15, %v3539_v27  ;;  %v3747_v14 = vmul.f32 0.2, %v3739_v61 }
 0xc4b   :  { %v7412_v47 = vadd.f32 %v7265_v36, %v3540_v13  ;;  %v3541_v38 = vsel %vm3533_vm14, %v3529_v17, %v3537_v24  ;;  %vm3742_vm15 = vcmp.gt.f32.partialorder %v3738_v44, 0.0  ;;  %vm3743_vm1 = vcmp.gt.f32.partialorder %v3739_v61, 0.0 }
 0xc4c   :  { %v3546_v12 = vsel %vm539_vm2, %v7405_v50, -inf  ;;  %v3740_v11 = vadd.f32 %v3736_v63, %v7247_v7  ;;  %v7421_v60 = vadd.f32 %v7272_v49, %v3749_v20  ;;  %v3549_v59 = vsel %vm539_vm2, %v7415_v54, -inf }
 0xc4d   :  { %3547 = vmax.xlane.f32.xlu0 %v3546_v12  ;;  %3345 = vmax.xlane.f32.xlu1 %v3344_v62  ;;  %v3552_v16 = vsel %vm539_vm2, %v7412_v47, -inf  ;;  %v7426_v46 = vadd.f32 %v7279_v37, %v3541_v38  ;;  %v3750_v22 = vsel %vm3742_vm15, %v3738_v44, %v3746_v1  ;;  %v3751_v53 = vsel %vm3743_vm1, %v3739_v61, %v3747_v14 }
 0xc4e   :  { %v3748_v27 = vmul.f32 0.2, %v3740_v11  ;;  %vm3744_vm3 = vcmp.gt.f32.partialorder %v3740_v11, 0.0  ;;  %v3757_v63 = vsel %vm539_vm2, %v7421_v60, -inf  ;;  %v7432_v13 = vadd.f32 %v7286_v15, %v3750_v22 }
 0xc4f   :  { %v7435_v24 = vadd.f32 %v7265_v36, %v3751_v53  ;;  %v3555_v62 = vsel %vm539_vm2, %v7426_v46, -inf }
 0xc50   :  { %v3752_v12 = vsel %vm3744_vm3, %v3740_v11, %v3748_v27 }
 0xc51   :  { %3553 = vmax.xlane.f32.xlu0 %v3552_v16  ;;  %3550 = vmax.xlane.f32.xlu1 %v3549_v59  ;;  %v3763_v38 = vsel %vm539_vm2, %v7435_v24, -inf }
 0xc52   :  { %v3912_v17 = vpop.trf.xlu0 }
 0xc53   :  { %v3947_v7 = vrot.slane %v3912_v17, %v6435_v9 }
 0xc55   :  { %3758 = vmax.xlane.f32.xlu0 %v3757_v63  ;;  %v3948_v44 = vadd.f32 %v3947_v7, %v7237_v45  ;;  %v3949_v61 = vadd.f32 %v3947_v7, %v7260_v5  ;;  %v3950_v9 = vadd.f32 %v3947_v7, %v7220_v52  ;;  %3556 = vmax.xlane.f32.xlu1 %v3555_v62  ;;  %v3760_v45 = vsel %vm539_vm2, %v7432_v13, -inf }
 0xc56   :  { %v3951_v20 = vadd.f32 %v3947_v7, %v7249_v48  ;;  %v7448_v5 = vadd.f32 %v7279_v37, %v3752_v12 }
 0xc57   :  { %vm3952_vm4 = vcmp.gt.f32.partialorder %v3948_v44, 0.0  ;;  %v3956_v1 = vmul.f32 0.2, %v3948_v44  ;;  %vm3953_vm5 = vcmp.gt.f32.partialorder %v3949_v61, 0.0  ;;  %v3957_v14 = vmul.f32 0.2, %v3949_v61 }
 0xc58   :  { %vm3954_vm14 = vcmp.gt.f32.partialorder %v3950_v9, 0.0  ;;  %v3958_v16 = vmul.f32 0.2, %v3950_v9  ;;  %v3959_v22 = vmul.f32 0.2, %v3951_v20  ;;  %vm3955_vm15 = vcmp.gt.f32.partialorder %v3951_v20, 0.0 }
 0xc59   :  { %3764 = vmax.xlane.f32.xlu0 %v3763_v38  ;;  %v3960_v52 = vsel %vm3952_vm4, %v3948_v44, %v3956_v1  ;;  %3761 = vmax.xlane.f32.xlu1 %v3760_v45  ;;  %v3961_v11 = vsel %vm3953_vm5, %v3949_v61, %v3957_v14  ;;  %v3766_v27 = vsel %vm539_vm2, %v7448_v5, -inf }
 0xc5a   :  { %v7451_v48 = vadd.f32 %v7272_v49, %v3960_v52  ;;  %v3962_v59 = vsel %vm3954_vm14, %v3950_v9, %v3958_v16  ;;  %v7461_v7 = vadd.f32 %v7286_v15, %v3961_v11  ;;  %v3963_v49 = vsel %vm3955_vm15, %v3951_v20, %v3959_v22 }
 0xc5b   :  { %v7456_v17 = vadd.f32 %v7265_v36, %v3962_v59  ;;  %v7468_v44 = vadd.f32 %v7279_v37, %v3963_v49 }
 0xc5c   :  { %v3968_v53 = vsel %vm539_vm2, %v7451_v48, -inf  ;;  %v3971_v62 = vsel %vm539_vm2, %v7461_v7, -inf }
 0xc5d   :  { %3969 = vmax.xlane.f32.xlu0 %v3968_v53  ;;  %3767 = vmax.xlane.f32.xlu1 %v3766_v27  ;;  %v3974_v63 = vsel %vm539_vm2, %v7456_v17, -inf  ;;  %v3977_v36 = vsel %vm539_vm2, %v7468_v44, -inf }
 0xc61   :  { %3975 = vmax.xlane.f32.xlu0 %v3974_v63  ;;  %3972 = vmax.xlane.f32.xlu1 %v3971_v62 }
 0xc65   :  { %3978 = vmax.xlane.f32.xlu1 %v3977_v36 }
 0xc76   :  { %3805 = vrot.lane.b32.xlu1 %v7036_v8, %s5976_s14 }
 0xc77   :  { %4016 = vrot.lane.b32.xlu0 %v7036_v8, %s5977_s23 }
 0xc81   :  { %v2519_v15 = vpop.xlane.xlu1 %2518 }
 0xc82   :  { %v2525_v61 = vsub.f32 %v7268_v21, %v2519_v15 }
 0xc84   :  { %v2531_v9 = vmul.f32 1.442695, %v2525_v61 }
 0xc85   :  { %v2513_v12 = vpop.xlane.xlu1 %2512 }
 0xc86   :  { %5583 = vpow2.f32 %v2531_v9  ;;  %v2523_v37 = vsub.f32 %v7275_v56, %v2513_v12 }
 0xc88   :  { %v2527_v20 = vmul.f32 1.442695, %v2523_v37 }
 0xc89   :  { %v2522_v1 = vpop.xlane.xlu1 %2521 }
 0xc8a   :  { %5585 = vpow2.f32 %v2527_v20  ;;  %v2526_v14 = vsub.f32 %v7282_v4, %v2522_v1 }
 0xc8c   :  { %v2533_v38 = vmul.f32 1.442695, %v2526_v14 }
 0xc8e   :  { %5587 = vpow2.f32 %v2533_v38 }
 0xc93   :  { %v7479_v16 = vpop.eup %5583 }
 0xc94   :  { %v2541_v8 = vsel %vm539_vm2, %v7479_v16, 0.0 }
 0xc96   :  { %2542 = vadd.xlane.f32.xlu0 %v2541_v8 }
 0xc97   :  { %v7483_v45 = vpop.eup %5585 }
 0xc98   :  { %v2516_v21 = vpop.xlane.xlu0 %2515  ;;  %v2535_v52 = vsel %vm539_vm2, %v7483_v45, 0.0 }
 0xc99   :  { %v2524_v56 = vsub.f32 %v7289_v57, %v2516_v21 }
 0xc9a   :  { %2536 = vadd.xlane.f32.xlu0 %v2535_v52 }
 0xc9b   :  { %v7488_v11 = vpop.eup %5587  ;;  %v2529_v4 = vmul.f32 1.442695, %v2524_v56 }
 0xc9c   :  { %v2544_v59 = vsel %vm539_vm2, %v7488_v11, 0.0 }
 0xc9d   :  { %5589 = vpow2.f32 %v2529_v4  ;;  %2545 = vadd.xlane.f32.xlu1 %v2544_v59 }
 0xcaa   :  { %v7492_v22 = vpop.eup %5589 }
 0xcab   :  { %v2538_v53 = vsel %vm539_vm2, %v7492_v22, 0.0 }
 0xcac   :  { %2539 = vadd.xlane.f32.xlu1 %v2538_v53 }
 0xcb6   :  { %v2708_v27 = vpop.xlane.xlu0 %2707  ;;  %v2702_v63 = vpop.xlane.xlu1 %2701 }
 0xcb7   :  { %v2714_v49 = vsub.f32 %v7306_v55, %v2708_v27  ;;  %v2712_v57 = vsub.f32 %v7309_v41, %v2702_v63 }
 0xcb9   :  { %v2720_v62 = vmul.f32 1.442695, %v2714_v49  ;;  %v2716_v36 = vmul.f32 1.442695, %v2712_v57 }
 0xcba   :  { %v2915_v15 = vpop.xlane.xlu0 %2914  ;;  %v2705_v9 = vpop.xlane.xlu1 %2704 }
 0xcbb   :  { %v2925_v61 = vsub.f32 %v7314_v33, %v2915_v15  ;;  %5591 = vpow2.f32 %v2716_v36  ;;  %v2713_v12 = vsub.f32 %v7320_v30, %v2705_v9 }
 0xcbc   :  { %5593 = vpow2.f32 %v2720_v62 }
 0xcbd   :  { %v2929_v37 = vmul.f32 1.442695, %v2925_v61  ;;  %v2718_v20 = vmul.f32 1.442695, %v2713_v12 }
 0xcbe   :  { %v2921_v1 = vpop.xlane.xlu0 %2920  ;;  %v2711_v38 = vpop.xlane.xlu1 %2710 }
 0xcbf   :  { %v2927_v14 = vsub.f32 %v7326_v40, %v2921_v1  ;;  %5595 = vpow2.f32 %v2718_v20  ;;  %v2715_v55 = vsub.f32 %v7331_v19, %v2711_v38 }
 0xcc0   :  { %5597 = vpow2.f32 %v2929_v37 }
 0xcc1   :  { %v2933_v41 = vmul.f32 1.442695, %v2927_v14  ;;  %v2722_v8 = vmul.f32 1.442695, %v2715_v55 }
 0xcc2   :  { %v2918_v21 = vpop.xlane.xlu1 %2917 }
 0xcc3   :  { %5599 = vpow2.f32 %v2722_v8  ;;  %v2926_v33 = vsub.f32 %v7337_v31, %v2918_v21 }
 0xcc4   :  { %5601 = vpow2.f32 %v2933_v41 }
 0xcc5   :  { %v2931_v52 = vmul.f32 1.442695, %v2926_v33 }
 0xcc6   :  { %v3126_v30 = vpop.xlane.xlu0 %3125  ;;  %v2924_v4 = vpop.xlane.xlu1 %2923 }
 0xcc7   :  { %v3136_v56 = vsub.f32 %v7354_v0, %v3126_v30  ;;  %5603 = vpow2.f32 %v2931_v52  ;;  %v2928_v40 = vsub.f32 %v7349_v29, %v2924_v4 }
 0xcc8   :  { %v7505_v59 = vpop.eup %5591 }
 0xcc9   :  { %v3140_v53 = vmul.f32 1.442695, %v3136_v56  ;;  %v2935_v19 = vmul.f32 1.442695, %v2928_v40  ;;  %v2724_v49 = vsel %vm539_vm2, %v7505_v59, 0.0  ;;  %v7509_v63 = vpop.eup %5593 }
 0xcca   :  { %v3132_v27 = vpop.xlane.xlu0 %3131  ;;  %2725 = vadd.xlane.f32.xlu0 %v2724_v49  ;;  %v3129_v57 = vpop.xlane.xlu1 %3128  ;;  %v2730_v61 = vsel %vm539_vm2, %v7509_v63, 0.0 }
 0xccb   :  { %5605 = vpow2.f32 %v3140_v53  ;;  %v3138_v31 = vsub.f32 %v7359_v35, %v3132_v27  ;;  %v3137_v0 = vsub.f32 %v7365_v39, %v3129_v57 }
 0xccc   :  { %5607 = vpow2.f32 %v2935_v19  ;;  %v7513_v62 = vpop.eup %5595 }
 0xccd   :  { %v3144_v29 = vmul.f32 1.442695, %v3138_v31  ;;  %v3142_v36 = vmul.f32 1.442695, %v3137_v0  ;;  %v2727_v9 = vsel %vm539_vm2, %v7513_v62, 0.0  ;;  %v7519_v12 = vpop.eup %5597 }
 0xcce   :  { %v3337_v15 = vpop.xlane.xlu0 %3336  ;;  %2731 = vadd.xlane.f32.xlu0 %v2730_v61  ;;  %2728 = vadd.xlane.f32.xlu1 %v2727_v9  ;;  %v3135_v37 = vpop.xlane.xlu1 %3134  ;;  %v2937_v55 = vsel %vm539_vm2, %v7519_v12, 0.0 }
 0xccf   :  { %5609 = vpow2.f32 %v3144_v29  ;;  %v3347_v35 = vsub.f32 %v7372_v25, %v3337_v15  ;;  %v3139_v39 = vsub.f32 %v7377_v10, %v3135_v37 }
 0xcd0   :  { %5611 = vpow2.f32 %v3142_v36  ;;  %v7523_v20 = vpop.eup %5599 }
 0xcd1   :  { %v3351_v1 = vmul.f32 1.442695, %v3347_v35  ;;  %v3146_v14 = vmul.f32 1.442695, %v3139_v39  ;;  %v2733_v41 = vsel %vm539_vm2, %v7523_v20, 0.0  ;;  %v7529_v8 = vpop.eup %5601 }
 0xcd2   :  { %v3343_v38 = vpop.xlane.xlu0 %3342  ;;  %2938 = vadd.xlane.f32.xlu0 %v2937_v55  ;;  %2734 = vadd.xlane.f32.xlu1 %v2733_v41  ;;  %v3340_v25 = vpop.xlane.xlu1 %3339  ;;  %v2943_v56 = vsel %vm539_vm2, %v7529_v8, 0.0 }
 0xcd3   :  { %5613 = vpow2.f32 %v3146_v14  ;;  %v3348_v21 = vsub.f32 %v7380_v3, %v3340_v25  ;;  %v3349_v33 = vsub.f32 %v7383_v28, %v3343_v38 }
 0xcd4   :  { %v7532_v10 = vpop.eup %5603  ;;  %5615 = vpow2.f32 %v3351_v1 }
 0xcd5   :  { %v3353_v52 = vmul.f32 1.442695, %v3348_v21  ;;  %v2940_v4 = vsel %vm539_vm2, %v7532_v10, 0.0  ;;  %v3355_v3 = vmul.f32 1.442695, %v3349_v33 }
 0xcd6   :  { %v3548_v30 = vpop.xlane.xlu0 %3547  ;;  %2944 = vadd.xlane.f32.xlu0 %v2943_v56  ;;  %2941 = vadd.xlane.f32.xlu1 %v2940_v4  ;;  %v3346_v40 = vpop.xlane.xlu1 %3345 }
 0xcd7   :  { %5617 = vpow2.f32 %v3353_v52  ;;  %v3350_v27 = vsub.f32 %v7400_v43, %v3346_v40  ;;  %v3558_v15 = vsub.f32 %v7405_v50, %v3548_v30 }
 0xcd8   :  { %v7539_v53 = vpop.eup %5605  ;;  %5619 = vpow2.f32 %v3355_v3 }
 0xcd9   :  { %v7541_v19 = vpop.eup %5607  ;;  %v3148_v28 = vsel %vm539_vm2, %v7539_v53, 0.0  ;;  %v3357_v43 = vmul.f32 1.442695, %v3350_v27 }
 0xcda   :  { %v3554_v49 = vpop.xlane.xlu0 %3553  ;;  %v2946_v31 = vsel %vm539_vm2, %v7541_v19, 0.0  ;;  %3149 = vadd.xlane.f32.xlu0 %v3148_v28  ;;  %v3551_v57 = vpop.xlane.xlu1 %3550 }
 0xcdb   :  { %2947 = vadd.xlane.f32.xlu1 %v2946_v31  ;;  %v3559_v29 = vsub.f32 %v7415_v54, %v3551_v57  ;;  %v3562_v54 = vmul.f32 1.442695, %v3558_v15  ;;  %v3560_v14 = vsub.f32 %v7412_v47, %v3554_v49 }
 0xcdc   :  { %v7548_v0 = vpop.eup %5609 }
 0xcdd   :  { %v7551_v36 = vpop.eup %5611  ;;  %v3154_v61 = vsel %vm539_vm2, %v7548_v0, 0.0  ;;  %v3564_v9 = vmul.f32 1.442695, %v3559_v29  ;;  %v3566_v33 = vmul.f32 1.442695, %v3560_v14 }
 0xcde   :  { %v3759_v35 = vpop.xlane.xlu0 %3758  ;;  %v3151_v37 = vsel %vm539_vm2, %v7551_v36, 0.0  ;;  %3155 = vadd.xlane.f32.xlu0 %v3154_v61  ;;  %v3557_v39 = vpop.xlane.xlu1 %3556 }
 0xcdf   :  { %3152 = vadd.xlane.f32.xlu1 %v3151_v37  ;;  %5621 = vpow2.f32 %v3564_v9  ;;  %v3561_v52 = vsub.f32 %v7426_v46, %v3557_v39 }
 0xce0   :  { %v7558_v1 = vpop.eup %5613  ;;  %5623 = vpow2.f32 %v3357_v43 }
 0xce1   :  { %v3157_v38 = vsel %vm539_vm2, %v7558_v1, 0.0  ;;  %v7563_v55 = vpop.eup %5615  ;;  %5625 = vpow2.f32 %v3562_v54  ;;  %v3568_v28 = vmul.f32 1.442695, %v3561_v52 }
 0xce2   :  { %v3765_v50 = vpop.xlane.xlu0 %3764  ;;  %v3762_v25 = vpop.xlane.xlu1 %3761  ;;  %v3359_v47 = vsel %vm539_vm2, %v7563_v55, 0.0 }
 0xce3   :  { %v3771_v41 = vsub.f32 %v7435_v24, %v3765_v50  ;;  %3158 = vadd.xlane.f32.xlu1 %v3157_v38  ;;  %v3770_v21 = vsub.f32 %v7432_v13, %v3762_v25  ;;  %v3769_v13 = vsub.f32 %v7421_v60, %v3759_v35 }
 0xce4   :  { %v7570_v4 = vpop.eup %5617 }
 0xce5   :  { %v3777_v30 = vmul.f32 1.442695, %v3771_v41  ;;  %v3775_v56 = vmul.f32 1.442695, %v3770_v21  ;;  %v7574_v27 = vpop.eup %5619  ;;  %v3362_v31 = vsel %vm539_vm2, %v7570_v4, 0.0 }
 0xce6   :  { %v3970_v40 = vpop.xlane.xlu0 %3969  ;;  %v3768_v3 = vpop.xlane.xlu1 %3767  ;;  %v3773_v15 = vmul.f32 1.442695, %v3769_v13 }
 0xce7   :  { %3360 = vadd.xlane.f32.xlu1 %v3359_v47  ;;  %5627 = vpow2.f32 %v3775_v56  ;;  %v3772_v24 = vsub.f32 %v7448_v5, %v3768_v3  ;;  %v3980_v46 = vsub.f32 %v7451_v48, %v3970_v40  ;;  %v3365_v5 = vsel %vm539_vm2, %v7574_v27, 0.0 }
 0xce8   :  { %5629 = vpow2.f32 %v3566_v33 }
 0xce9   :  { %5631 = vpow2.f32 %v3777_v30  ;;  %v3779_v49 = vmul.f32 1.442695, %v3772_v24  ;;  %v3984_v60 = vmul.f32 1.442695, %v3980_v46 }
 0xcea   :  { %v3973_v57 = vpop.xlane.xlu1 %3972  ;;  %5633 = vpow2.f32 %v3568_v28  ;;  %v3976_v9 = vpop.xlane.xlu0 %3975 }
 0xceb   :  { %3363 = vadd.xlane.f32.xlu1 %v3362_v31  ;;  %5635 = vpow2.f32 %v3779_v49  ;;  %v3981_v61 = vsub.f32 %v7461_v7, %v3973_v57  ;;  %v3982_v39 = vsub.f32 %v7456_v17, %v3976_v9 }
 0xcec   :  { %v7579_v29 = vpop.eup %5621  ;;  %5637 = vpow2.f32 %v3773_v15 }
 0xced   :  { %v3573_v48 = vsel %vm539_vm2, %v7579_v29, 0.0  ;;  %v7586_v43 = vpop.eup %5623  ;;  %5639 = vpow2.f32 %v3984_v60  ;;  %v3986_v54 = vmul.f32 1.442695, %v3981_v61  ;;  %v3988_v25 = vmul.f32 1.442695, %v3982_v39 }
 0xcee   :  { %3574 = vadd.xlane.f32.xlu0 %v3573_v48  ;;  %v3979_v35 = vpop.xlane.xlu1 %3978  ;;  %v7588_v37 = vpop.eup %5625  ;;  %v3368_v14 = vsel %vm539_vm2, %v7586_v43, 0.0 }
 0xcef   :  { %3366 = vadd.xlane.f32.xlu1 %v3365_v5  ;;  %v3570_v38 = vsel %vm539_vm2, %v7588_v37, 0.0  ;;  %5641 = vpow2.f32 %v3986_v54  ;;  %v3983_v17 = vsub.f32 %v7468_v44, %v3979_v35  ;;  %v7643_v61 = vpop.permute.xlu0 %4016 }
 0xcf0   :  { %5643 = vpow2.f32 %v3988_v25 }
 0xcf1   :  { %v3990_v30 = vmul.f32 1.442695, %v3983_v17 }
 0xcf2   :  { %v7593_v7 = vpop.permute.xlu1 %3805 }
 0xcf3   :  { %3369 = vadd.xlane.f32.xlu1 %v3368_v14  ;;  %5186 = vmatprep.subr.bf16.mxu0 %v7593_v7  ;;  %5645 = vpow2.f32 %v3990_v30 }
 0xcf4   :  { %v7596_v50 = vpop.eup %5627 }
 0xcf5   :  { %v7600_v41 = vpop.eup %5629  ;;  %v3784_v21 = vsel %vm539_vm2, %v7596_v50, 0.0 }
 0xcf6   :  { %v7605_v33 = vpop.eup %5631  ;;  %3785 = vadd.xlane.f32.xlu0 %v3784_v21  ;;  %v3576_v56 = vsel %vm539_vm2, %v7600_v41, 0.0 }
 0xcf7   :  { %3571 = vadd.xlane.f32.xlu1 %v3570_v38  ;;  %v7607_v52 = vpop.eup %5633  ;;  %v3787_v47 = vsel %vm539_vm2, %v7605_v33, 0.0 }
 0xcf8   :  { %v7613_v40 = vpop.eup %5635  ;;  %v3579_v3 = vsel %vm539_vm2, %v7607_v52, 0.0 }
 0xcf9   :  { %v7615_v44 = vpop.eup %5637  ;;  %v3790_v24 = vsel %vm539_vm2, %v7613_v40, 0.0 }
 0xcfa   :  { %3788 = vadd.xlane.f32.xlu0 %v3787_v47  ;;  %v7621_v13 = vpop.eup %5639  ;;  %v3781_v28 = vsel %vm539_vm2, %v7615_v44, 0.0 }
 0xcfb   :  { %3577 = vadd.xlane.f32.xlu1 %v3576_v56  ;;  %v3992_v46 = vsel %vm539_vm2, %v7621_v13, 0.0 }
 0xcfc   :  { %v7627_v49 = vpop.eup %5641 }
 0xcfd   :  { %v3995_v31 = vsel %vm539_vm2, %v7627_v49, 0.0  ;;  %v7631_v57 = vpop.eup %5643 }
 0xcfe   :  { %3791 = vadd.xlane.f32.xlu0 %v3790_v24  ;;  %v3998_v15 = vsel %vm539_vm2, %v7631_v57, 0.0 }
 0xcff   :  { %3580 = vadd.xlane.f32.xlu1 %v3579_v3 }
 0xd00   :  { %v7635_v5 = vpop.eup %5645 }
 0xd01   :  { %v4001_v60 = vsel %vm539_vm2, %v7635_v5, 0.0 }
 0xd02   :  { %3993 = vadd.xlane.f32.xlu0 %v3992_v46 }
 0xd03   :  { %3782 = vadd.xlane.f32.xlu1 %v3781_v28 }
 0xd06   :  { %3996 = vadd.xlane.f32.xlu0 %v3995_v31 }
 0xd0a   :  { %3999 = vadd.xlane.f32.xlu0 %v3998_v15 }
 0xd0e   :  { %4002 = vadd.xlane.f32.xlu0 %v4001_v60 }
 0xd14   :  { %3803 = vrot.lane.b32.xlu1 %v7038_v51, %s5976_s14 }
 0xd1f   :  { %v2543_v48 = vpop.xlane.xlu0 %2542 }
 0xd23   :  { %v2537_v35 = vpop.xlane.xlu0 %2536 }
 0xd24   :  { %4014 = vrot.lane.b32.xlu0 %v7038_v51, %s5977_s23 }
 0xd26   :  { %v2546_v9 = vpop.xlane.xlu1 %2545 }
 0xd27   :  { %5647 = vrcp.f32 %v2546_v9 }
 0xd28   :  { %5649 = vrcp.f32 %v2537_v35 }
 0xd29   :  { %5651 = vrcp.f32 %v2543_v48 }
 0xd34   :  { %v5648_v54 = vpop.eup %5647 }
 0xd35   :  { %v2540_v39 = vpop.xlane.xlu1 %2539  ;;  %v5650_v14 = vpop.eup %5649  ;;  %v2554_v17 = vmul.f32 %v5648_v54, %v7488_v11 }
 0xd36   :  { %5653 = vrcp.f32 %v2540_v39  ;;  %v5652_v38 = vpop.eup %5651  ;;  %v2551_v21 = vmul.f32 %v5650_v14, %v7483_v45 }
 0xd37   :  { %v2553_v30 = vmul.f32 %v5652_v38, %v7479_v16 }
 0xd39   :  { %v2556_v47 = vpack.c.bf16 %v2554_v17, %v2553_v30 }
 0xd43   :  { %v5654_v25 = vpop.eup %5653 }
 0xd44   :  { %v2552_v51 = vmul.f32 %v5654_v25, %v7492_v22 }
 0xd46   :  { %v2555_v56 = vpack.c.bf16 %v2552_v51, %v2551_v21 }
 0xd48   :  { %5142 = vmatprep.mubr.msk.bf16.mxu1 %vm539_vm2, %v2555_v56 }
 0xd49   :  { %5143 = vmatmul.mubr.msk.bf16.vlgmr.msra.gmra.mxu1 %vm539_vm2, %v2556_v47 }
 0xd4a   :  { %5147 = vmatpush3.bf16.msra.mxu1 %v7068_v18 }
 0xd4b   :  { %5148 = vmatprep.subr.bf16.mxu1 %v7073_v58 }
 0xd4e   :  { %5149 = vmatpush3.bf16.msra.mxu1 %v7073_v58 }
 0xd4f   :  { %5154 = vmatprep.subr.bf16.mxu1 %v7066_v34 }
 0xd53   :  { %v2726_v11 = vpop.xlane.xlu0 %2725 }
 0xd54   :  { %5655 = vrcp.f32 %v2726_v11 }
 0xd57   :  { %v2732_v45 = vpop.xlane.xlu0 %2731  ;;  %v2729_v22 = vpop.xlane.xlu1 %2728 }
 0xd58   :  { %5657 = vrcp.f32 %v2729_v22 }
 0xd59   :  { %5659 = vrcp.f32 %v2732_v45 }
 0xd5b   :  { %v2939_v16 = vpop.xlane.xlu0 %2938  ;;  %v2735_v3 = vpop.xlane.xlu1 %2734 }
 0xd5c   :  { %5661 = vrcp.f32 %v2735_v3 }
 0xd5d   :  { %5663 = vrcp.f32 %v2939_v16 }
 0xd5f   :  { %v2945_v24 = vpop.xlane.xlu0 %2944  ;;  %v2942_v28 = vpop.xlane.xlu1 %2941 }
 0xd60   :  { %5665 = vrcp.f32 %v2942_v28 }
 0xd61   :  { %5667 = vrcp.f32 %v2945_v24  ;;  %v5656_v31 = vpop.eup %5655 }
 0xd62   :  { %v2740_v48 = vmul.f32 %v5656_v31, %v7505_v59 }
 0xd63   :  { %v3150_v18 = vpop.xlane.xlu0 %3149 }
 0xd64   :  { %v2948_v46 = vpop.xlane.xlu1 %2947 }
 0xd65   :  { %5669 = vrcp.f32 %v2948_v46  ;;  %v5658_v58 = vpop.eup %5657 }
 0xd66   :  { %5671 = vrcp.f32 %v3150_v18  ;;  %v2741_v9 = vmul.f32 %v5658_v58, %v7513_v62  ;;  %v5660_v35 = vpop.eup %5659 }
 0xd67   :  { %v3156_v15 = vpop.xlane.xlu0 %3155  ;;  %v2742_v38 = vmul.f32 %v5660_v35, %v7509_v63 }
 0xd68   :  { %v3153_v60 = vpop.xlane.xlu1 %3152  ;;  %v2744_v39 = vpack.c.bf16 %v2741_v9, %v2740_v48 }
 0xd69   :  { %5673 = vrcp.f32 %v3153_v60  ;;  %v5662_v54 = vpop.eup %5661 }
 0xd6a   :  { %5675 = vrcp.f32 %v3156_v15  ;;  %5150 = vmatprep.mubr.msk.bf16.mxu1 %vm539_vm2, %v2744_v39  ;;  %v2743_v25 = vmul.f32 %v5662_v54, %v7523_v20  ;;  %v5664_v17 = vpop.eup %5663 }
 0xd6b   :  { %v2953_v62 = vmul.f32 %v5664_v17, %v7519_v12 }
 0xd6c   :  { %v3159_v14 = vpop.xlane.xlu1 %3158  ;;  %v2745_v21 = vpack.c.bf16 %v2743_v25, %v2742_v38 }
 0xd6d   :  { %5677 = vrcp.f32 %v3159_v14  ;;  %v5666_v51 = vpop.eup %5665 }
 0xd6e   :  { %5151 = vmatmul.mubr.msk.bf16.vlgmr.msra.gmra.mxu1 %vm539_vm2, %v2745_v21  ;;  %v2954_v30 = vmul.f32 %v5666_v51, %v7532_v10  ;;  %v5668_v56 = vpop.eup %5667 }
 0xd6f   :  { %5155 = vmatpush3.bf16.msra.mxu1 %v7066_v34  ;;  %v2955_v11 = vmul.f32 %v5668_v56, %v7529_v8 }
 0xd70   :  { %v3361_v59 = vpop.xlane.xlu1 %3360  ;;  %5156 = vmatprep.subr.bf16.mxu1 %v7178_v32  ;;  %v2957_v47 = vpack.c.bf16 %v2954_v30, %v2953_v62 }
 0xd71   :  { %5679 = vrcp.f32 %v3361_v59 }
 0xd72   :  { %v5670_v63 = vpop.eup %5669  ;;  %5158 = vmatprep.mubr.msk.bf16.mxu1 %vm539_vm2, %v2957_v47 }
 0xd73   :  { %v2956_v45 = vmul.f32 %v5670_v63, %v7541_v19  ;;  %v5672_v22 = vpop.eup %5671  ;;  %5157 = vmatpush3.bf16.msra.mxu1 %v7178_v32 }
 0xd74   :  { %v3364_v20 = vpop.xlane.xlu1 %3363  ;;  %5162 = vmatprep.subr.bf16.mxu1 %v7071_v42  ;;  %v3164_v3 = vmul.f32 %v5672_v22, %v7539_v53  ;;  %v4262_v22 = vld [vmem:[#allocation12 + $0x78] sm:$0xff] }
 0xd75   :  { %5681 = vrcp.f32 %v3364_v20  ;;  %v2958_v12 = vpack.c.bf16 %v2956_v45, %v2955_v11  ;;  %v4261_v45 = vld [vmem:[#allocation12 + $0x70] sm:$0xff] }
 0xd76   :  { %v5674_v34 = vpop.eup %5673 }
 0xd77   :  { %v5676_v10 = vpop.eup %5675  ;;  %5159 = vmatmul.mubr.msk.bf16.vlgmr.msra.gmra.mxu1 %vm539_vm2, %v2958_v12  ;;  %v3165_v24 = vmul.f32 %v5674_v34, %v7551_v36  ;;  %v3575_v18 = vpop.xlane.xlu0 %3574 }
 0xd78   :  { %v3367_v16 = vpop.xlane.xlu1 %3366  ;;  %5163 = vmatpush3.bf16.msra.mxu1 %v7071_v42  ;;  %v3166_v32 = vmul.f32 %v5676_v10, %v7548_v0 }
 0xd79   :  { %5164 = vmatprep.subr.bf16.mxu1 %v7182_v23  ;;  %v3168_v19 = vpack.c.bf16 %v3165_v24, %v3164_v3  ;;  %5683 = vrcp.f32 %v3367_v16  ;;  %v4270_v24 = vpack.c.bf16 %v4262_v22, %v4261_v45 }
 0xd7a   :  { %v5678_v8 = vpop.eup %5677 }
 0xd7b   :  { %v3167_v28 = vmul.f32 %v5678_v8, %v7558_v1  ;;  %5166 = vmatprep.mubr.msk.bf16.mxu1 %vm539_vm2, %v3168_v19 }
 0xd7c   :  { %v3370_v46 = vpop.xlane.xlu1 %3369  ;;  %5165 = vmatpush3.bf16.msra.mxu1 %v7182_v23 }
 0xd7d   :  { %5685 = vrcp.f32 %v3370_v46  ;;  %v3169_v53 = vpack.c.bf16 %v3167_v28, %v3166_v32  ;;  %5178 = vmatprep.subr.bf16.mxu1 %v7172_v6  ;;  %v4260_v32 = vld [vmem:[#allocation12 + $0x68] sm:$0xff] }
 0xd7e   :  { %v5680_v42 = vpop.eup %5679  ;;  %5687 = vrcp.f32 %v3575_v18 }
 0xd7f   :  { %5167 = vmatmul.mubr.msk.bf16.vlgmr.msra.gmra.mxu1 %vm539_vm2, %v3169_v53  ;;  %v3786_v36 = vpop.xlane.xlu0 %3785  ;;  %v3375_v1 = vmul.f32 %v5680_v42, %v7563_v55  ;;  %v4258_v53 = vld [vmem:[#allocation12 + $0x58] sm:$0xff] }
 0xd80   :  { %v3572_v31 = vpop.xlane.xlu1 %3571  ;;  %5179 = vmatpush3.bf16.msra.mxu1 %v7172_v6 }
 0xd81   :  { %5180 = vmatprep.subr.bf16.mxu1 %v7189_v2  ;;  %5689 = vrcp.f32 %v3572_v31  ;;  %v4256_v31 = vld [vmem:[#allocation12 + $0x48] sm:$0xff] }
 0xd82   :  { %v5682_v0 = vpop.eup %5681 }
 0xd83   :  { %v3376_v23 = vmul.f32 %v5682_v0, %v7570_v4  ;;  %v3789_v58 = vpop.xlane.xlu0 %3788 }
 0xd84   :  { %v3578_v15 = vpop.xlane.xlu1 %3577  ;;  %5181 = vmatpush3.bf16.msra.mxu1 %v7189_v2 }
 0xd85   :  { %v3379_v60 = vpack.c.bf16 %v3376_v23, %v3375_v1  ;;  %5194 = vmatprep.subr.bf16.mxu1 %v7643_v61  ;;  %5691 = vrcp.f32 %v3578_v15  ;;  %v4253_v1 = vld [vmem:[#allocation12 + $0x30] sm:$0xff]  ;;  %v4251_v23 = vld [vmem:[#allocation12 + $0x20] sm:$0xff] }
 0xd86   :  { %v5684_v48 = vpop.eup %5683 }
 0xd87   :  { %5174 = vmatprep.mubr.msk.bf16.mxu0 %vm539_vm2, %v3379_v60  ;;  %v3792_v6 = vpop.xlane.xlu0 %3791  ;;  %v3377_v55 = vmul.f32 %v5684_v48, %v7574_v27  ;;  %v4249_v60 = vld [vmem:[#allocation12 + $0x10] sm:$0xff]  ;;  %v4250_v48 = vld [vmem:[#allocation12 + $0x18] sm:$0xff] }
 0xd88   :  { %v3581_v9 = vpop.xlane.xlu1 %3580 }
 0xd89   :  { %5693 = vrcp.f32 %v3581_v9  ;;  %v4248_v9 = vld [vmem:[#allocation12 + $0x8] sm:$0xff] }
 0xd8a   :  { %v5686_v35 = vpop.eup %5685  ;;  %5695 = vrcp.f32 %v3792_v6  ;;  %v4247_v6 = vld [vmem:[#allocation12] sm:$0xff] }
 0xd8b   :  { %v3378_v4 = vmul.f32 %v5686_v35, %v7586_v43  ;;  %5697 = vrcp.f32 %v3786_v36  ;;  %v3994_v39 = vpop.xlane.xlu0 %3993  ;;  %v5688_v2 = vpop.eup %5687  ;;  %v4255_v36 = vld [vmem:[#allocation12 + $0x40] sm:$0xff]  ;;  %v4263_v35 = vpack.c.bf16 %v4248_v9, %v4247_v6 }
 0xd8c   :  { %v3783_v54 = vpop.xlane.xlu1 %3782  ;;  %5699 = vrcp.f32 %v3789_v58  ;;  %v3587_v27 = vmul.f32 %v5688_v2, %v7579_v29  ;;  %v4267_v0 = vpack.c.bf16 %v4256_v31, %v4255_v36  ;;  %v4252_v58 = vld [vmem:[#allocation12 + $0x28] sm:$0xff]  ;;  %v4104_v31 = vld [vmem:[%s7926_s19 + $0x18] sm:$0xff] }
 0xd8d   :  { %v3380_v14 = vpack.c.bf16 %v3378_v4, %v3377_v55  ;;  %5701 = vrcp.f32 %v3783_v54  ;;  %v4265_v15 = vpack.c.bf16 %v4252_v58, %v4251_v23  ;;  %v7925_v55 = vld [vmem:[#allocation35_spill] sm:$0xff] }
 0xd8e   :  { %v5690_v38 = vpop.eup %5689  ;;  %5703 = vrcp.f32 %v3994_v39  ;;  %v4103_v36 = vld [vmem:[%s7926_s19 + $0x10] sm:$0xff] }
 0xd8f   :  { %5175 = vmatmul.mubr.msk.bf16.vlgmr.msra.gmra.mxu0 %vm539_vm2, %v3380_v14  ;;  %v3997_v25 = vpop.xlane.xlu0 %3996  ;;  %v3586_v21 = vmul.f32 %v5690_v38, %v7588_v37 }
 0xd90   :  { %5187 = vmatpush3.bf16.msra.mxu0 %v7593_v7  ;;  %v3804_v17 = vpop.permute.xlu1 %3803  ;;  %5705 = vrcp.f32 %v3997_v25 }
 0xd91   :  { %5188 = vmatprep.subr.bf16.mxu0 %v3804_v17  ;;  %v3590_v43 = vpack.c.bf16 %v3587_v27, %v3586_v21 }
 0xd92   :  { %v5692_v59 = vpop.eup %5691 }
 0xd93   :  { %5182 = vmatprep.mubr.msk.bf16.mxu1 %vm539_vm2, %v3590_v43  ;;  %v4000_v51 = vpop.xlane.xlu0 %3999  ;;  %v3588_v7 = vmul.f32 %v5692_v59, %v7600_v41 }
 0xd94   :  { %5189 = vmatpush3.bf16.msra.mxu0 %v3804_v17  ;;  %5707 = vrcp.f32 %v4000_v51 }
 0xd96   :  { %v5694_v62 = vpop.eup %5693 }
 0xd97   :  { %v5696_v30 = vpop.eup %5695  ;;  %v4003_v56 = vpop.xlane.xlu0 %4002  ;;  %v3589_v47 = vmul.f32 %v5694_v62, %v7607_v52 }
 0xd98   :  { %v5698_v63 = vpop.eup %5697  ;;  %5709 = vrcp.f32 %v4003_v56  ;;  %v3800_v11 = vmul.f32 %v5696_v30, %v7613_v40 }
 0xd99   :  { %v5700_v37 = vpop.eup %5699  ;;  %v3591_v29 = vpack.c.bf16 %v3589_v47, %v3588_v7  ;;  %v3798_v16 = vmul.f32 %v5698_v63, %v7596_v50 }
 0xd9a   :  { %v5702_v20 = vpop.eup %5701  ;;  %v3799_v41 = vmul.f32 %v5700_v37, %v7605_v33 }
 0xd9b   :  { %v5704_v12 = vpop.eup %5703  ;;  %5183 = vmatmul.mubr.msk.bf16.vlgmr.msra.gmra.mxu1 %vm539_vm2, %v3591_v29  ;;  %v4015_v34 = vpop.permute.xlu0 %4014  ;;  %v3797_v10 = vmul.f32 %v5702_v20, %v7615_v44  ;;  %v4115_v29 = vld [vmem:[%s7926_s19 + $0x70] sm:$0xff]  ;;  %v4116_v20 = vld [vmem:[%s7926_s19 + $0x78] sm:$0xff] }
 0xd9c   :  { %5195 = vmatpush3.bf16.msra.mxu1 %v7643_v61  ;;  %v3802_v8 = vpack.c.bf16 %v3800_v11, %v3799_v41  ;;  %v4008_v40 = vmul.f32 %v5704_v12, %v7621_v13  ;;  %v4259_v61 = vld [vmem:[#allocation12 + $0x60] sm:$0xff]  ;;  %v4124_v45 = vpack.c.bf16 %v4116_v20, %v4115_v29 }
 0xd9d   :  { %v5706_v52 = vpop.eup %5705  ;;  %5196 = vmatprep.subr.bf16.mxu1 %v4015_v34  ;;  %v3801_v3 = vpack.c.bf16 %v3798_v16, %v3797_v10  ;;  %v4269_v46 = vpack.c.bf16 %v4260_v32, %v4259_v61  ;;  %v4114_v10 = vld [vmem:[%s7926_s19 + $0x68] sm:$0xff]  ;;  %v4107_v61 = vld [vmem:[%s7926_s19 + $0x30] sm:$0xff]  ;;  %v4108_v32 = vld [vmem:[%s7926_s19 + $0x38] sm:$0xff] }
 0xd9e   :  { %v4009_v19 = vmul.f32 %v5706_v52, %v7627_v49  ;;  %v4257_v49 = vld [vmem:[#allocation12 + $0x50] sm:$0xff]  ;;  %5202 = vmatprep.subr.bf16.mxu0 %v4124_v45 }
 0xd9f   :  { %5190 = vmatprep.mubr.msk.bf16.mxu0 %vm539_vm2, %v3801_v3  ;;  %v4268_v42 = vpack.c.bf16 %v4258_v53, %v4257_v49  ;;  %v4111_v52 = vld [vmem:[%s7926_s19 + $0x50] sm:$0xff]  ;;  %v4112_v3 = vld [vmem:[%s7926_s19 + $0x58] sm:$0xff]  ;;  %v4106_v49 = vld [vmem:[%s7926_s19 + $0x28] sm:$0xff] }
 0xda0   :  { %5197 = vmatpush3.bf16.msra.mxu1 %v4015_v34  ;;  %5191 = vmatmul.mubr.msk.bf16.vlgmr.msra.gmra.mxu0 %vm539_vm2, %v3802_v8  ;;  %v4012_v44 = vpack.c.bf16 %v4009_v19, %v4008_v40  ;;  %v4113_v34 = vld [vmem:[%s7926_s19 + $0x60] sm:$0xff]  ;;  %v4122_v8 = vpack.c.bf16 %v4112_v3, %v4111_v52 }
 0xda1   :  { %5222 = vmatprep.subr.bf16.mxu1 %v4270_v24  ;;  %v5708_v50 = vpop.eup %5707  ;;  %5203 = vmatpush3.bf16.msra.mxu0 %v4124_v45  ;;  %v4123_v41 = vpack.c.bf16 %v4114_v10, %v4113_v34  ;;  %v4109_v19 = vld [vmem:[%s7926_s19 + $0x40] sm:$0xff] }
 0xda2   :  { %5198 = vmatprep.mubr.msk.bf16.mxu1 %vm539_vm2, %v4012_v44  ;;  %v4010_v28 = vmul.f32 %v5708_v50, %v7631_v57  ;;  %v4254_v57 = vld [vmem:[#allocation12 + $0x38] sm:$0xff]  ;;  %v4110_v44 = vld [vmem:[%s7926_s19 + $0x48] sm:$0xff] }
 0xda3   :  { %5204 = vmatprep.subr.bf16.mxu0 %v4123_v41  ;;  %v4774_v10 = vld [vmem:[%s7927_s26] ss:$0 sm:$0xff] }
 0xda5   :  { %v5710_v33 = vpop.eup %5709  ;;  %5205 = vmatpush3.bf16.msra.mxu0 %v4123_v41 }
 0xda6   :  { %v4011_v18 = vmul.f32 %v5710_v33, %v7635_v5  ;;  %v4266_v5 = vpack.c.bf16 %v4254_v57, %v4253_v1  ;;  %5206 = vmatprep.subr.bf16.mxu0 %v4122_v8  ;;  %v4121_v33 = vpack.c.bf16 %v4110_v44, %v4109_v19  ;;  %v4118_v1 = vpack.c.bf16 %v4104_v31, %v4103_v36  ;;  %v4102_v57 = vld [vmem:[%s7926_s19 + $0x8] sm:$0xff] }
 0xda8   :  { %v4013_v13 = vpack.c.bf16 %v4011_v18, %v4010_v28  ;;  %v4120_v18 = vpack.c.bf16 %v4108_v32, %v4107_v61 }
 0xda9   :  { %5207 = vmatpush3.bf16.msra.mxu0 %v4122_v8 }
 0xdaa   :  { %5199 = vmatmul.mubr.msk.bf16.vlgmr.msra.gmra.mxu1 %vm539_vm2, %v4013_v13  ;;  %5208 = vmatprep.subr.bf16.mxu0 %v4121_v33 }
 0xdab   :  { %5223 = vmatpush3.bf16.msra.mxu1 %v4270_v24  ;;  %5238 = vmatprep.mubr.bf16.mxu1 %v7026_v26  ;;  %v4264_v26 = vpack.c.bf16 %v4250_v48, %v4249_v60 }
 0xdac   :  { %5224 = vmatprep.subr.bf16.mxu1 %v4269_v46 }
 0xdad   :  { %5209 = vmatpush3.bf16.msra.mxu0 %v4121_v33 }
 0xdae   :  { %5210 = vmatprep.subr.bf16.mxu0 %v4120_v18 }
 0xdaf   :  { %5225 = vmatpush3.bf16.msra.mxu1 %v4269_v46  ;;  %v4105_v46 = vld [vmem:[%s7926_s19 + $0x20] sm:$0xff] }
 0xdb0   :  { %5226 = vmatprep.subr.bf16.mxu1 %v4268_v42  ;;  %v4119_v53 = vpack.c.bf16 %v4106_v49, %v4105_v46 }
 0xdb1   :  { %5211 = vmatpush3.bf16.msra.mxu0 %v4120_v18 }
 0xdb2   :  { %5212 = vmatprep.subr.bf16.mxu0 %v4119_v53 }
 0xdb3   :  { %5227 = vmatpush3.bf16.msra.mxu1 %v4268_v42 }
 0xdb4   :  { %5228 = vmatprep.subr.bf16.mxu1 %v4267_v0 }
 0xdb5   :  { %5213 = vmatpush3.bf16.msra.mxu0 %v4119_v53 }
 0xdb6   :  { %5214 = vmatprep.subr.bf16.mxu0 %v4118_v1 }
 0xdb7   :  { %5229 = vmatpush3.bf16.msra.mxu1 %v4267_v0  ;;  %v4101_v0 = vld [vmem:[%s7926_s19] sm:$0xff] }
 0xdb8   :  { %5230 = vmatprep.subr.bf16.mxu1 %v4266_v5 }
 0xdb9   :  { %5215 = vmatpush3.bf16.msra.mxu0 %v4118_v1  ;;  %v4351_v1 = vld [vmem:[%s7928_s28 + $0x70] sm:$0xff] }
 0xdbb   :  { %5231 = vmatpush3.bf16.msra.mxu1 %v4266_v5  ;;  %v4117_v5 = vpack.c.bf16 %v4102_v57, %v4101_v0  ;;  %v4352_v57 = vld [vmem:[%s7928_s28 + $0x78] sm:$0xff] }
 0xdbc   :  { %5232 = vmatprep.subr.bf16.mxu1 %v4265_v15 }
 0xdbd   :  { %5216 = vmatprep.subr.bf16.mxu0 %v4117_v5 }
 0xdbe   :  { %5217 = vmatpush3.bf16.msra.mxu0 %v4117_v5  ;;  %v4360_v5 = vpack.c.bf16 %v4352_v57, %v4351_v1 }
 0xdbf   :  { %5233 = vmatpush3.bf16.msra.mxu1 %v4265_v15 }
 0xdc0   :  { %5234 = vmatprep.subr.bf16.mxu1 %v4264_v26  ;;  %5242 = vmatprep.subr.bf16.mxu0 %v4360_v5 }
 0xdc3   :  { %5235 = vmatpush3.bf16.msra.mxu1 %v4264_v26 }
 0xdc4   :  { %5236 = vmatprep.subr.bf16.mxu1 %v4263_v35 }
 0xdc7   :  { %5237 = vmatpush3.bf16.msra.mxu1 %v4263_v35 }
 0xdca   :  { %5239 = vmatmul.mubr.bf16.vlgmr.msra.gmra.mxu1 %v7925_v55 }
 0xe09   :  { %v5144_v4 = vpop.f32.mrf.mxu1 }
 0xe0a   :  { %2614 = vst.msk [vmem:[#allocation2 + $0x10] sm:$0xff] %vm641_vm6, %v5144_v4 }
 0xe0b   :  { %v2597_v39 = vpop.f32.mrf.mxu1 }
 0xe0c   :  { %2612 = vst.msk [vmem:[#allocation2] sm:$0xff] %vm641_vm6, %v2597_v39 }
 0xe0d   :  { %v5145_v54 = vpop.f32.mrf.mxu1 }
 0xe0e   :  { %2615 = vst.msk [vmem:[#allocation2 + $0x18] sm:$0xff] %vm641_vm6, %v5145_v54 }
 0xe0f   :  { %v2600_v2 = vpop.f32.mrf.mxu1 }
 0xe10   :  { %2613 = vst.msk [vmem:[#allocation2 + $0x8] sm:$0xff] %vm641_vm6, %v2600_v2  ;;  %vm5979_vm6 = vmmov 0  }
 0xe2e   :  { %v5152_v14 = vpop.f32.mrf.mxu1 }
 0xe2f   :  { %2817 = vrot.lane.b32.xlu1 %v5152_v14, %s5977_s23 }
 0xe30   :  { %v2794_v38 = vpop.f32.mrf.mxu1 }
 0xe32   :  { %v5153_v25 = vpop.f32.mrf.mxu1 }
 0xe33   :  { %2819 = vrot.lane.b32.xlu0 %v5153_v25, %s5977_s23 }
 0xe34   :  { %v2797_v17 = vpop.f32.mrf.mxu1 }
 0xe37   :  { %v5160_v21 = vpop.f32.mrf.mxu1 }
 0xe39   :  { %v3005_v27 = vpop.f32.mrf.mxu1 }
 0xe3b   :  { %v5161_v51 = vpop.f32.mrf.mxu1 }
 0xe3d   :  { %v3008_v30 = vpop.f32.mrf.mxu1 }
 0xe3f   :  { %v5168_v56 = vpop.f32.mrf.mxu1 }
 0xe41   :  { %v3216_v47 = vpop.f32.mrf.mxu1 }
 0xe43   :  { %v5169_v63 = vpop.f32.mrf.mxu1 }
 0xe45   :  { %v3219_v22 = vpop.f32.mrf.mxu1 }
 0xe4f   :  { %v5176_v43 = vpop.f32.mrf.mxu0 }
 0xe50   :  { %3450 = vrot.lane.b32.xlu1 %v5176_v43, %s5958_s25 }
 0xe51   :  { %v3427_v59 = vpop.f32.mrf.mxu0 }
 0xe53   :  { %v5177_v62 = vpop.f32.mrf.mxu0 }
 0xe54   :  { %2813 = vrot.lane.b32.xlu1 %v2794_v38, %s5977_s23  ;;  %3452 = vrot.lane.b32.xlu0 %v5177_v62, %s5958_s25 }
 0xe55   :  { %v3430_v7 = vpop.f32.mrf.mxu0 }
 0xe58   :  { %3446 = vrot.lane.b32.xlu1 %v3427_v59, %s5958_s25  ;;  %2815 = vrot.lane.b32.xlu0 %v2797_v17, %s5977_s23 }
 0xe5b   :  { %v5184_v16 = vpop.f32.mrf.mxu1 }
 0xe5c   :  { %3028 = vrot.lane.b32.xlu1 %v5160_v21, %s5976_s14  ;;  %3448 = vrot.lane.b32.xlu0 %v3430_v7, %s5958_s25 }
 0xe5d   :  { %v3638_v24 = vpop.f32.mrf.mxu1 }
 0xe5f   :  { %v5185_v50 = vpop.f32.mrf.mxu1 }
 0xe60   :  { %3030 = vrot.lane.b32.xlu0 %v5161_v51, %s5976_s14  ;;  %v5192_v37 = vpop.f32.mrf.mxu0 }
 0xe61   :  { %3872 = vrot.lane.b32.xlu1 %v5192_v37, %s5956_s17  ;;  %v3641_v28 = vpop.f32.mrf.mxu1 }
 0xe62   :  { %v3849_v11 = vpop.f32.mrf.mxu0 }
 0xe64   :  { %v5193_v12 = vpop.f32.mrf.mxu0 }
 0xe65   :  { %3024 = vrot.lane.b32.xlu1 %v3005_v27, %s5976_s14  ;;  %3874 = vrot.lane.b32.xlu0 %v5193_v12, %s5956_s17 }
 0xe66   :  { %v3852_v40 = vpop.f32.mrf.mxu0 }
 0xe69   :  { %3868 = vrot.lane.b32.xlu1 %v3849_v11, %s5956_s17  ;;  %3026 = vrot.lane.b32.xlu0 %v3008_v30, %s5976_s14 }
 0xe6a   :  { %v5200_v13 = vpop.f32.mrf.mxu1 }
 0xe6c   :  { %v4060_v42 = vpop.f32.mrf.mxu1 }
 0xe6d   :  { %3239 = vrot.lane.b32.xlu1 %v5168_v56, %s5960_s4  ;;  %3870 = vrot.lane.b32.xlu0 %v3852_v40, %s5956_s17 }
 0xe6e   :  { %v5201_v23 = vpop.f32.mrf.mxu1 }
 0xe70   :  { %v4063_v58 = vpop.f32.mrf.mxu1 }
 0xe71   :  { %3235 = vrot.lane.b32.xlu1 %v3216_v47, %s5960_s4  ;;  %3241 = vrot.lane.b32.xlu0 %v5169_v63, %s5960_s4 }
 0xe75   :  { %3661 = vrot.lane.b32.xlu1 %v5184_v16, %s5959_s6  ;;  %3237 = vrot.lane.b32.xlu0 %v3219_v22, %s5960_s4 }
 0xe79   :  { %3657 = vrot.lane.b32.xlu1 %v3638_v24, %s5959_s6  ;;  %3663 = vrot.lane.b32.xlu0 %v5185_v50, %s5959_s6 }
 0xe7d   :  { %4079 = vrot.lane.b32.xlu1 %v4060_v42, %s5957_s21  ;;  %3659 = vrot.lane.b32.xlu0 %v3641_v28, %s5959_s6 }
 0xe81   :  { %4083 = vrot.lane.b32.xlu1 %v5200_v13, %s5957_s21  ;;  %4081 = vrot.lane.b32.xlu0 %v4063_v58, %s5957_s21  ;;  %v4350_v58 = vld [vmem:[%s7928_s28 + $0x68] sm:$0xff] }
 0xe85   :  { %4085 = vrot.lane.b32.xlu0 %v5201_v23, %s5957_s21  ;;  %v4349_v23 = vld [vmem:[%s7928_s28 + $0x60] sm:$0xff] }
 0xea1   :  { %v2818_v15 = vpop.permute.xlu1 %2817 }
 0xea2   :  { %2827 = vst.msk [vmem:[#allocation2 + $0x10] sm:$0xff] %vm855_vm7, %v2818_v15  ;;  %v4359_v15 = vpack.c.bf16 %v4350_v58, %v4349_v23 }
 0xea5   :  { %v2820_v60 = vpop.permute.xlu0 %2819 }
 0xea6   :  { %2828 = vst.msk [vmem:[#allocation2 + $0x18] sm:$0xff] %vm855_vm7, %v2820_v60  ;;  %v4347_v60 = vld [vmem:[%s7928_s28 + $0x50] sm:$0xff] }
 0xec2   :  { %v3451_v48 = vpop.permute.xlu1 %3450 }
 0xec6   :  { %v3453_v26 = vpop.permute.xlu0 %3452  ;;  %v2814_v6 = vpop.permute.xlu1 %2813 }
 0xec7   :  { %2825 = vst.msk [vmem:[#allocation2] sm:$0xff] %vm855_vm7, %v2814_v6  ;;  %v4345_v6 = vld [vmem:[%s7928_s28 + $0x40] sm:$0xff] }
 0xeca   :  { %v2816_v9 = vpop.permute.xlu0 %2815  ;;  %v3447_v35 = vpop.permute.xlu1 %3446 }
 0xecb   :  { %2826 = vst.msk [vmem:[#allocation2 + $0x8] sm:$0xff] %vm855_vm7, %v2816_v9  ;;  %v4346_v9 = vld [vmem:[%s7928_s28 + $0x48] sm:$0xff] }
 0xece   :  { %v3449_v55 = vpop.permute.xlu0 %3448  ;;  %v3029_v4 = vpop.permute.xlu1 %3028 }
 0xecf   :  { %3038 = vst.msk [vmem:[#allocation2 + $0x10] sm:$0xff] %vm1067_vm8, %v3029_v4  ;;  %v4344_v4 = vld [vmem:[%s7928_s28 + $0x38] sm:$0xff] }
 0xed2   :  { %v3031_v39 = vpop.permute.xlu0 %3030 }
 0xed3   :  { %3039 = vst.msk [vmem:[#allocation2 + $0x18] sm:$0xff] %vm1067_vm8, %v3031_v39  ;;  %v3873_v54 = vpop.permute.xlu1 %3872 }
 0xed7   :  { %v3875_v2 = vpop.permute.xlu0 %3874  ;;  %v3025_v14 = vpop.permute.xlu1 %3024 }
 0xed8   :  { %3036 = vst.msk [vmem:[#allocation2] sm:$0xff] %vm1067_vm8, %v3025_v14  ;;  %v4339_v14 = vld [vmem:[%s7928_s28 + $0x10] sm:$0xff] }
 0xedb   :  { %v3027_v38 = vpop.permute.xlu0 %3026  ;;  %v3869_v25 = vpop.permute.xlu1 %3868 }
 0xedc   :  { %3037 = vst.msk [vmem:[#allocation2 + $0x8] sm:$0xff] %vm1067_vm8, %v3027_v38 }
 0xedf   :  { %v3871_v17 = vpop.permute.xlu0 %3870  ;;  %v3240_v21 = vpop.permute.xlu1 %3239 }
 0xee0   :  { %3249 = vst.msk [vmem:[#allocation2 + $0x10] sm:$0xff] %vm1279_vm9, %v3240_v21  ;;  %v4337_v21 = vld [vmem:[%s7928_s28] sm:$0xff] }
 0xee1   :  { %3460 = vst.msk [vmem:[#allocation2 + $0x10] sm:$0xff] %vm1491_vm10, %v3451_v48  ;;  %v4348_v48 = vld [vmem:[%s7928_s28 + $0x58] sm:$0xff] }
 0xee3   :  { %v3242_v27 = vpop.permute.xlu0 %3241  ;;  %v3236_v43 = vpop.permute.xlu1 %3235 }
 0xee4   :  { %3250 = vst.msk [vmem:[#allocation2 + $0x18] sm:$0xff] %vm1279_vm9, %v3242_v27  ;;  %3247 = vst.msk [vmem:[#allocation2] sm:$0xff] %vm1279_vm9, %v3236_v43  ;;  %v4338_v27 = vld [vmem:[%s7928_s28 + $0x8] sm:$0xff] }
 0xee5   :  { %3461 = vst.msk [vmem:[#allocation2 + $0x18] sm:$0xff] %vm1491_vm10, %v3453_v26  ;;  %3458 = vst.msk [vmem:[#allocation2] sm:$0xff] %vm1491_vm10, %v3447_v35  ;;  %v4358_v26 = vpack.c.bf16 %v4348_v48, %v4347_v60  ;;  %v4357_v35 = vpack.c.bf16 %v4346_v9, %v4345_v6  ;;  %v4353_v43 = vpack.c.bf16 %v4338_v27, %v4337_v21 }
 0xee7   :  { %v3238_v51 = vpop.permute.xlu0 %3237  ;;  %v3662_v59 = vpop.permute.xlu1 %3661 }
 0xee8   :  { %3248 = vst.msk [vmem:[#allocation2 + $0x8] sm:$0xff] %vm1279_vm9, %v3238_v51  ;;  %v4429_v51 = vld [vmem:[#allocation15 + $0x30] sm:$0xff] }
 0xee9   :  { %3671 = vst.msk [vmem:[#allocation2 + $0x10] sm:$0xff] %vm1703_vm11, %v3662_v59  ;;  %v4430_v59 = vld [vmem:[#allocation15 + $0x38] sm:$0xff] }
 0xeea   :  { %3459 = vst.msk [vmem:[#allocation2 + $0x8] sm:$0xff] %vm1491_vm10, %v3449_v55  ;;  %v4343_v55 = vld [vmem:[%s7928_s28 + $0x30] sm:$0xff] }
 0xeeb   :  { %3882 = vst.msk [vmem:[#allocation2 + $0x10] sm:$0xff] %vm1915_vm12, %v3873_v54  ;;  %v3664_v62 = vpop.permute.xlu0 %3663  ;;  %v3658_v30 = vpop.permute.xlu1 %3657  ;;  %v4356_v39 = vpack.c.bf16 %v4344_v4, %v4343_v55  ;;  %v4341_v54 = vld [vmem:[%s7928_s28 + $0x20] sm:$0xff]  ;;  %v4428_v55 = vld [vmem:[#allocation15 + $0x28] sm:$0xff] }
 0xeec   :  { %3672 = vst.msk [vmem:[#allocation2 + $0x18] sm:$0xff] %vm1703_vm11, %v3664_v62  ;;  %3669 = vst.msk [vmem:[#allocation2] sm:$0xff] %vm1703_vm11, %v3658_v30  ;;  %v4434_v62 = vpack.c.bf16 %v4430_v59, %v4429_v51 }
 0xeed   :  { %3883 = vst.msk [vmem:[#allocation2 + $0x18] sm:$0xff] %vm1915_vm12, %v3875_v2  ;;  %3880 = vst.msk [vmem:[#allocation2] sm:$0xff] %vm1915_vm12, %v3869_v25  ;;  %v4342_v2 = vld [vmem:[%s7928_s28 + $0x28] sm:$0xff]  ;;  %v4340_v25 = vld [vmem:[%s7928_s28 + $0x18] sm:$0xff] }
 0xeee   :  { %v4355_v38 = vpack.c.bf16 %v4342_v2, %v4341_v54  ;;  %5262 = vmatprep.subr.bf16.mxu1 %v4434_v62  ;;  %v4426_v54 = vld [vmem:[#allocation15 + $0x18] sm:$0xff] }
 0xeef   :  { %v3660_v56 = vpop.permute.xlu0 %3659  ;;  %v4080_v7 = vpop.permute.xlu1 %4079  ;;  %5263 = vmatpush3.bf16.msra.mxu1 %v4434_v62 }
 0xef0   :  { %3670 = vst.msk [vmem:[#allocation2 + $0x8] sm:$0xff] %vm1703_vm11, %v3660_v56 }
 0xef1   :  { %4091 = vst.msk [vmem:[#allocation2] sm:$0xff] %vm2127_vm13, %v4080_v7 }
 0xef2   :  { %3881 = vst.msk [vmem:[#allocation2 + $0x8] sm:$0xff] %vm1915_vm12, %v3871_v17  ;;  %v4354_v17 = vpack.c.bf16 %v4340_v25, %v4339_v14  ;;  %v4423_v14 = vld [vmem:[#allocation15] sm:$0xff] }
 0xef3   :  { %v4082_v47 = vpop.permute.xlu0 %4081  ;;  %v4084_v63 = vpop.permute.xlu1 %4083 }
 0xef4   :  { %4092 = vst.msk [vmem:[#allocation2 + $0x8] sm:$0xff] %vm2127_vm13, %v4082_v47  ;;  %4093 = vst.msk [vmem:[#allocation2 + $0x10] sm:$0xff] %vm2127_vm13, %v4084_v63 }
 0xef7   :  { %v4086_v37 = vpop.permute.xlu0 %4085 }
 0xef8   :  { %4094 = vst.msk [vmem:[#allocation2 + $0x18] sm:$0xff] %vm2127_vm13, %v4086_v37  ;;  %v4095_v29 = vld [vmem:[#allocation2] sm:$0xff] }
 0xefb   :  { %v4096_v20 = vld [vmem:[#allocation2 + $0x8] sm:$0xff]  ;;  %v4097_v45 = vld [vmem:[#allocation2 + $0x10] sm:$0xff] }
 0xefc   :  { %v4099_v11 = vpack.c.bf16 %v4096_v20, %v4095_v29 }
 0xefe   :  { %5218 = vmatprep.mubr.bf16.mxu0 %v4099_v11 }
 0xeff   :  { %v4098_v22 = vld [vmem:[#allocation2 + $0x18] sm:$0xff] }
 0xf00   :  { %v4100_v12 = vpack.c.bf16 %v4098_v22, %v4097_v45 }
 0xf02   :  { %5219 = vmatmul.mubr.bf16.vlgmr.msra.gmra.mxu0 %v4100_v12 }
 0xf03   :  { %5243 = vmatpush3.bf16.msra.mxu0 %v4360_v5 }
 0xf04   :  { %5244 = vmatprep.subr.bf16.mxu0 %v4359_v15 }
 0xf07   :  { %5245 = vmatpush3.bf16.msra.mxu0 %v4359_v15 }
 0xf08   :  { %5246 = vmatprep.subr.bf16.mxu0 %v4358_v26 }
 0xf0b   :  { %5247 = vmatpush3.bf16.msra.mxu0 %v4358_v26 }
 0xf0c   :  { %5248 = vmatprep.subr.bf16.mxu0 %v4357_v35 }
 0xf0f   :  { %5249 = vmatpush3.bf16.msra.mxu0 %v4357_v35 }
 0xf10   :  { %5250 = vmatprep.subr.bf16.mxu0 %v4356_v39 }
 0xf13   :  { %5251 = vmatpush3.bf16.msra.mxu0 %v4356_v39  ;;  %v4425_v39 = vld [vmem:[#allocation15 + $0x10] sm:$0xff] }
 0xf14   :  { %5252 = vmatprep.subr.bf16.mxu0 %v4355_v38  ;;  %v4432_v2 = vpack.c.bf16 %v4426_v54, %v4425_v39 }
 0xf17   :  { %5253 = vmatpush3.bf16.msra.mxu0 %v4355_v38  ;;  %v4424_v38 = vld [vmem:[#allocation15 + $0x8] sm:$0xff] }
 0xf18   :  { %5254 = vmatprep.subr.bf16.mxu0 %v4354_v17  ;;  %v4431_v25 = vpack.c.bf16 %v4424_v38, %v4423_v14 }
 0xf1b   :  { %5255 = vmatpush3.bf16.msra.mxu0 %v4354_v17  ;;  %v5978_v17 = vmov 0.0  }
 0xf1c   :  { %5256 = vmatprep.subr.bf16.mxu0 %v4353_v43 }
 0xf1f   :  { %5257 = vmatpush3.bf16.msra.mxu0 %v4353_v43  ;;  %v4778_v43 = vld [vmem:[#allocation13] ss:$0 sm:$0xff] }
 0xf20   :  { %5309 = vmatprep.subr.mxu0 %v5978_v17 }
 0xfc2   :  { %v5220_v34 = vpop.f32.mrf.mxu0 }
 0xfc3   :  { %v4175_v40 = vadd.f32 %v5220_v34, %v4774_v10  ;;  %v5240_v34 = vpop.f32.mrf.mxu1 }
 0xfc4   :  { %v4166_v16 = vpop.f32.mrf.mxu0 }
 0xfc5   :  { %v4167_v41 = vadd.f32 %v4774_v10, %v4166_v16  ;;  %v4775_v16 = vld [vmem:[%s7929_s1] ss:$0 sm:$0xff] }
 0xfc6   :  { %v5221_v52 = vpop.f32.mrf.mxu0 }
 0xfc7   :  { %4181 = vadd.xlane.f32.xlu1 %v4167_v41  ;;  %v4178_v24 = vadd.f32 %v5221_v52, %v4774_v10  ;;  %v4305_v52 = vpop.f32.mrf.mxu1 }
 0xfc8   :  { %v4169_v3 = vpop.f32.mrf.mxu0 }
 0xfc9   :  { %v4170_v8 = vadd.f32 %v4774_v10, %v4169_v3  ;;  %v4776_v3 = vld [vmem:[%s7930_s20] ss:$0 sm:$0xff] }
 0xfcb   :  { %4183 = vadd.xlane.f32.xlu0 %v4170_v8  ;;  %4187 = vadd.xlane.f32.xlu1 %v4178_v24 }
 0xfcf   :  { %4185 = vadd.xlane.f32.xlu0 %v4175_v40 }
0x1050   :  { %v4182_v19 = vpop.xlane.xlu1 %4181 }
0x1051   :  { %v4189_v44 = vmul.f32 0.0078125, %v4182_v19 }
0x1053   :  { %v7790_v50 = vsub.f32 %v4167_v41, %v4189_v44  ;;  %v5241_v44 = vpop.f32.mrf.mxu1 }
0x1054   :  { %v4184_v33 = vpop.xlane.xlu0 %4183  ;;  %v4188_v61 = vpop.xlane.xlu1 %4187 }
0x1055   :  { %v4190_v32 = vmul.f32 0.0078125, %v4184_v33  ;;  %v4192_v28 = vmul.f32 0.0078125, %v4188_v61  ;;  %v4197_v18 = vmul.f32 %v7790_v50, %v7790_v50 }
0x1057   :  { %v7794_v13 = vsub.f32 %v4170_v8, %v4190_v32  ;;  %4201 = vadd.xlane.f32.xlu0 %v4197_v18  ;;  %v7796_v49 = vsub.f32 %v4178_v24, %v4192_v28 }
0x1058   :  { %v4186_v46 = vpop.xlane.xlu0 %4185 }
0x1059   :  { %v4191_v53 = vmul.f32 0.0078125, %v4186_v46  ;;  %v4198_v42 = vmul.f32 %v7794_v13, %v7794_v13  ;;  %v4200_v0 = vmul.f32 %v7796_v49, %v7796_v49 }
0x105b   :  { %v7800_v36 = vsub.f32 %v4175_v40, %v4191_v53  ;;  %4203 = vadd.xlane.f32.xlu1 %v4198_v42  ;;  %v4308_v53 = vpop.f32.mrf.mxu1 }
0x105d   :  { %v4199_v31 = vmul.f32 %v7800_v36, %v7800_v36 }
0x105f   :  { %4205 = vadd.xlane.f32.xlu0 %v4199_v31  ;;  %4207 = vadd.xlane.f32.xlu1 %v4200_v0 }
0x10e0   :  { %v4202_v30 = vpop.xlane.xlu0 %4201 }
0x10e1   :  { %v4209_v56 = vmul.f32 0.0078125, %v4202_v30 }
0x10e3   :  { %v4213_v7 = vadd.f32 1e-05, %v4209_v56 }
0x10e4   :  { %v4204_v47 = vpop.xlane.xlu1 %4203 }
0x10e5   :  { %5711 = vrsqrt.f32 %v4213_v7  ;;  %v4210_v63 = vmul.f32 0.0078125, %v4204_v47 }
0x10e7   :  { %v4214_v37 = vadd.f32 1e-05, %v4210_v63 }
0x10e8   :  { %v4206_v29 = vpop.xlane.xlu0 %4205  ;;  %v4208_v20 = vpop.xlane.xlu1 %4207 }
0x10e9   :  { %5713 = vrsqrt.f32 %v4214_v37  ;;  %v4211_v11 = vmul.f32 0.0078125, %v4206_v29  ;;  %v4212_v45 = vmul.f32 0.0078125, %v4208_v20 }
0x10eb   :  { %v4215_v22 = vadd.f32 1e-05, %v4211_v11  ;;  %v4216_v12 = vadd.f32 1e-05, %v4212_v45  ;;  %v4527_v45 = vld [vmem:[%s7932_s2 + $0x78] sm:$0xff] }
0x10ed   :  { %5715 = vrsqrt.f32 %v4215_v22  ;;  %v4526_v22 = vld [vmem:[%s7932_s2 + $0x70] sm:$0xff] }
0x10ee   :  { %5717 = vrsqrt.f32 %v4216_v12  ;;  %v4525_v12 = vld [vmem:[%s7932_s2 + $0x68] sm:$0xff] }
0x10f2   :  { %v5712_v10 = vpop.eup %5711 }
0x10f3   :  { %v4221_v41 = vmul.f32 %v5712_v10, %v7790_v50  ;;  %v4777_v50 = vld [vmem:[%s7931_s5] ss:$0 sm:$0xff] }
0x10f5   :  { %v4232_v24 = vmul.f32 %v4775_v16, %v4221_v41  ;;  %v4522_v41 = vld [vmem:[%s7932_s2 + $0x50] sm:$0xff] }
0x10f6   :  { %v5714_v8 = vpop.eup %5713 }
0x10f7   :  { %v4222_v40 = vmul.f32 %v5714_v8, %v7794_v13  ;;  %v4243_v19 = vadd.f32 %v4776_v3, %v4232_v24  ;;  %v4520_v24 = vld [vmem:[%s7932_s2 + $0x40] sm:$0xff]  ;;  %v4519_v8 = vld [vmem:[%s7932_s2 + $0x38] sm:$0xff] }
0x10f9   :  { %v4233_v33 = vmul.f32 %v4775_v16, %v4222_v40  ;;  %v4320_v46 = vadd.f32 %v4305_v52, %v4243_v19  ;;  %v4521_v52 = vld [vmem:[%s7932_s2 + $0x48] sm:$0xff]  ;;  %v4518_v19 = vld [vmem:[%s7932_s2 + $0x30] sm:$0xff] }
0x10fa   :  { %v5716_v61 = vpop.eup %5715 }
0x10fb   :  { %v5718_v32 = vpop.eup %5717  ;;  %v4223_v28 = vmul.f32 %v5716_v61, %v7800_v36  ;;  %v4244_v18 = vadd.f32 %v4776_v3, %v4233_v33  ;;  %v4331_v57 = vadd.f32 %v4777_v50, %v4320_v46  ;;  %v4516_v61 = vld [vmem:[%s7932_s2 + $0x20] sm:$0xff]  ;;  %v4513_v46 = vld [vmem:[%s7932_s2 + $0x8] sm:$0xff] }
0x10fc   :  { %v4224_v42 = vmul.f32 %v5718_v32, %v7796_v49  ;;  %v4427_v49 = vld [vmem:[#allocation15 + $0x20] sm:$0xff]  ;;  %v4515_v32 = vld [vmem:[%s7932_s2 + $0x18] sm:$0xff] }
0x10fd   :  { %v4321_v31 = vadd.f32 %v4308_v53, %v4244_v18  ;;  %v4234_v0 = vmul.f32 %v4775_v16, %v4223_v28  ;;  %v4433_v4 = vpack.c.bf16 %v4428_v55, %v4427_v49  ;;  %v4514_v18 = vld [vmem:[%s7932_s2 + $0x10] sm:$0xff] }
0x10fe   :  { %v4235_v1 = vmul.f32 %v4775_v16, %v4224_v42  ;;  %v4523_v16 = vld [vmem:[%s7932_s2 + $0x58] sm:$0xff]  ;;  %v4512_v42 = vld [vmem:[%s7932_s2] sm:$0xff] }
0x10ff   :  { %v4332_v5 = vadd.f32 %v4777_v50, %v4321_v31  ;;  %v4245_v23 = vadd.f32 %v4776_v3, %v4234_v0  ;;  %5264 = vmatprep.subr.bf16.mxu1 %v4433_v4  ;;  %v4603_v31 = vld [vmem:[%s6109_s8 + $0x18] sm:$0xff]  ;;  %v4602_v0 = vld [vmem:[%s6109_s8 + $0x10] sm:$0xff] }
0x1100   :  { %v4246_v13 = vadd.f32 %v4776_v3, %v4235_v1  ;;  %5265 = vmatpush3.bf16.msra.mxu1 %v4433_v4  ;;  %v4601_v1 = vld [vmem:[%s6109_s8 + $0x8] sm:$0xff]  ;;  %v4604_v4 = vld [vmem:[#allocation3] sm:$0x1] }
0x1101   :  { %v4335_v58 = vpack.c.bf16 %v4332_v5, %v4331_v57  ;;  %v4501_v15 = vadd.f32 %v4332_v5, %v4331_v57  ;;  %v4322_v60 = vadd.f32 %v5240_v34, %v4245_v23  ;;  %5266 = vmatprep.subr.bf16.mxu1 %v4432_v2  ;;  %v4524_v34 = vld [vmem:[%s7932_s2 + $0x60] sm:$0xff] }
0x1102   :  { %v4323_v48 = vadd.f32 %v5241_v44, %v4246_v13  ;;  %v4517_v44 = vld [vmem:[%s7932_s2 + $0x28] sm:$0xff]  ;;  %v4600_v57 = vld [vmem:[%s6109_s8] sm:$0xff]  ;;  %s5980_s8 = smov [#allocation18]  }
0x1103   :  { %5258 = vmatprep.mubr.bf16.mxu0 %v4335_v58  ;;  %v4333_v26 = vadd.f32 %v4777_v50, %v4322_v60  ;;  %v4779_v5 = vld [vmem:[#allocation16] ss:$0 sm:$0xff]  ;;  %s4694_s7 = sshll.u32 %s5980_s8, 4  ;;  %s4695_s7 = int_to_ptr.vmem [resolvable:$true] %s4694_s7 }
0x1104   :  { %v4334_v36 = vadd.f32 %v4777_v50, %v4323_v48  ;;  %5267 = vmatpush3.bf16.msra.mxu1 %v4432_v2  ;;  %s5891_s11 = scalar_lea.vmem %s4695_s7, 32  ;;  %p5892_p13 = scmp.lt.s32.totalorder %s4695_s7, %s4695_s7 }
0x1105   :  { %v4502_v6 = vadd.f32 %v4501_v15, %v4333_v26  ;;  %5268 = vmatprep.subr.bf16.mxu1 %v4431_v25 }
0x1106   :  { %v4336_v9 = vpack.c.bf16 %v4334_v36, %v4333_v26 }
0x1107   :  { %v4503_v35 = vadd.f32 %v4502_v6, %v4334_v36  ;;  %v4528_v6 = vld [vmem:[%s7933_s10] sm:$0x1] }
0x1108   :  { %5259 = vmatmul.mubr.bf16.vlgmr.msra.gmra.mxu0 %v4336_v9  ;;  %5269 = vmatpush3.bf16.msra.mxu1 %v4431_v25 }
0x1109   :  { %5274 = vmatprep.subr.mxu1 %v5978_v17  ;;  %5317 = vmatprep.mubr.msk.f32.mxu0 %vm5979_vm6, %v5978_v17  ;;  %v4504_v10 = vrot.slane %v4503_v35, 4 }
0x110a   :  { %5310 = vmatpush3.msra.mxu0 %v4603_v31 }
0x110b   :  { %v4505_v3 = vadd.f32 %v4504_v10, %v4503_v35  ;;  %5311 = vmatprep.subr.mxu0 %v5978_v17 }
0x110c   :  { %5312 = vmatpush3.msra.mxu0 %v4602_v0 }
0x110d   :  { %v4506_v40 = vrot.slane %v4505_v3, 2  ;;  %5313 = vmatprep.subr.mxu0 %v5978_v17 }
0x110e   :  { %5314 = vmatpush3.msra.mxu0 %v4601_v1 }
0x110f   :  { %v4507_v33 = vadd.f32 %v4506_v40, %v4505_v3  ;;  %5315 = vmatprep.subr.mxu0 %v5978_v17 }
0x1110   :  { %5316 = vmatpush3.msra.mxu0 %v4600_v57 }
0x1111   :  { %v4508_v28 = vrot.slane %v4507_v33, 1 }
0x1113   :  { %v4509_v53 = vadd.f32 %v4508_v28, %v4507_v33 }
0x1115   :  { %v4511_v50 = vmul.f32 0.03125, %v4509_v53 }
0x11c8   :  { %v5260_v21 = vpop.f32.mrf.mxu0 }
0x11c9   :  { %v4411_v30 = vadd.f32 %v5260_v21, %v4778_v43 }
0x11ca   :  { %v4402_v27 = vpop.f32.mrf.mxu0 }
0x11cb   :  { %v4403_v59 = vadd.f32 %v4778_v43, %v4402_v27  ;;  %v4419_v29 = vmax.f32 %v4411_v30, 0.0 }
0x11cc   :  { %v5261_v51 = vpop.f32.mrf.mxu0 }
0x11cd   :  { %v4414_v62 = vadd.f32 %v5261_v51, %v4778_v43  ;;  %v4417_v63 = vmax.f32 %v4403_v59, 0.0 }
0x11ce   :  { %v4405_v56 = vpop.f32.mrf.mxu0 }
0x11cf   :  { %v4406_v7 = vadd.f32 %v4778_v43, %v4405_v56  ;;  %v4420_v47 = vmax.f32 %v4414_v62, 0.0 }
0x11d1   :  { %v4418_v37 = vmax.f32 %v4406_v7, 0.0  ;;  %v4422_v11 = vpack.c.bf16 %v4420_v47, %v4419_v29 }
0x11d3   :  { %v4421_v20 = vpack.c.bf16 %v4418_v37, %v4417_v63 }
0x11d5   :  { %5270 = vmatprep.mubr.msk.bf16.mxu1 %vm257_vm0, %v4421_v20 }
0x11d6   :  { %5271 = vmatmul.mubr.msk.bf16.vlgmr.msra.gmra.mxu1 %vm257_vm0, %v4422_v11  ;;  %vm4684_vm0 = vcmask 0  }
0x11d7   :  { %5275 = vmatpush3.msra.mxu1 %v4527_v45  ;;  %5306 = vmatprep.mubr.msk.f32.mxu1 %vm5979_vm6, %v5978_v17 }
0x11d8   :  { %5276 = vmatprep.subr.mxu1 %v5978_v17 }
0x11d9   :  { %5277 = vmatpush3.msra.mxu1 %v4526_v22 }
0x11da   :  { %5278 = vmatprep.subr.mxu1 %v5978_v17 }
0x11db   :  { %5279 = vmatpush3.msra.mxu1 %v4525_v12 }
0x11dc   :  { %5280 = vmatprep.subr.mxu1 %v5978_v17 }
0x11dd   :  { %5281 = vmatpush3.msra.mxu1 %v4524_v34 }
0x11de   :  { %5282 = vmatprep.subr.mxu1 %v5978_v17 }
0x11df   :  { %5283 = vmatpush3.msra.mxu1 %v4523_v16 }
0x11e0   :  { %5284 = vmatprep.subr.mxu1 %v5978_v17 }
0x11e1   :  { %5285 = vmatpush3.msra.mxu1 %v4522_v41 }
0x11e2   :  { %5286 = vmatprep.subr.mxu1 %v5978_v17 }
0x11e3   :  { %5287 = vmatpush3.msra.mxu1 %v4521_v52 }
0x11e4   :  { %5288 = vmatprep.subr.mxu1 %v5978_v17 }
0x11e5   :  { %5289 = vmatpush3.msra.mxu1 %v4520_v24 }
0x11e6   :  { %5290 = vmatprep.subr.mxu1 %v5978_v17 }
0x11e7   :  { %5291 = vmatpush3.msra.mxu1 %v4519_v8 }
0x11e8   :  { %5292 = vmatprep.subr.mxu1 %v5978_v17 }
0x11e9   :  { %5293 = vmatpush3.msra.mxu1 %v4518_v19 }
0x11ea   :  { %5294 = vmatprep.subr.mxu1 %v5978_v17 }
0x11eb   :  { %5295 = vmatpush3.msra.mxu1 %v4517_v44 }
0x11ec   :  { %5296 = vmatprep.subr.mxu1 %v5978_v17 }
0x11ed   :  { %5297 = vmatpush3.msra.mxu1 %v4516_v61 }
0x11ee   :  { %5298 = vmatprep.subr.mxu1 %v5978_v17 }
0x11ef   :  { %5299 = vmatpush3.msra.mxu1 %v4515_v32 }
0x11f0   :  { %5300 = vmatprep.subr.mxu1 %v5978_v17 }
0x11f1   :  { %5301 = vmatpush3.msra.mxu1 %v4514_v18 }
0x11f2   :  { %5302 = vmatprep.subr.mxu1 %v5978_v17 }
0x11f3   :  { %5303 = vmatpush3.msra.mxu1 %v4513_v46 }
0x11f4   :  { %5304 = vmatprep.subr.mxu1 %v5978_v17 }
0x11f5   :  { %5305 = vmatpush3.msra.mxu1 %v4512_v42 }
0x11f6   :  { %5307 = vmatmul.mubr.f32.vlgmr.msra.gmra.mxu1 %v4511_v50 }
0x1296   :  { %v5272_v23 = vpop.f32.mrf.mxu1 }
0x1297   :  { %v4491_v13 = vadd.f32 %v5272_v23, %v4779_v5 }
0x1298   :  { %v4482_v58 = vpop.f32.mrf.mxu1 }
0x1299   :  { %4499 = vst [vmem:[%s6117_s12 + $0x10] sm:$0xff] %v4491_v13  ;;  %v4483_v15 = vadd.f32 %v4779_v5, %v4482_v58 }
0x129a   :  { %v5273_v60 = vpop.f32.mrf.mxu1 }
0x129b   :  { %4497 = vst [vmem:[%s6117_s12] sm:$0xff] %v4483_v15  ;;  %v4494_v48 = vadd.f32 %v5273_v60, %v4779_v5 }
0x129c   :  { %v4485_v26 = vpop.f32.mrf.mxu1 }
0x129d   :  { %4500 = vst [vmem:[%s6117_s12 + $0x18] sm:$0xff] %v4494_v48  ;;  %v4486_v36 = vadd.f32 %v4779_v5, %v4485_v26 }
0x129f   :  { %4498 = vst [vmem:[%s6117_s12 + $0x8] sm:$0xff] %v4486_v36  ;;  %s5887_s12 = scalar_lea.vmem %s4695_s7, 16 }
0x12a0   :  { %p5888_p12 = scmp.ne.s32.totalorder %s4695_s7, %s5887_s12  ;;  %p5893_p0 = scmp.lt.s32.totalorder %s5891_s11, %s5887_s12 }
0x12a2   :  { %p5894_p1 = por %p5893_p0, %p5892_p13 }
0x12a4   :  { %p5895_p2 = pnand %p5894_p1, %p5888_p12 }
0x12b6   :  { %v4595_v9 = vpop.f32.mrf.mxu1 }
0x12b7   :  { %v4596_v35 = vadd.f32 %v4595_v9, %v4528_v6 }
0x12b8   :  { %v5308_v49 = vpop.f32.mrf.mxu1 }
0x12b9   :  { %v4599_v55 = vmax.f32 %v4596_v35, 0.0 }
0x12bb   :  { %5318 = vmatmul.mubr.msk.f32.vlgmr.msra.gmra.mxu0 %vm539_vm2, %v4599_v55 }
0x137b   :  { %v4674_v39 = vpop.f32.mrf.mxu0 }
0x137c   :  { %v4675_v54 = vadd.f32 %v4674_v39, %v4604_v4 }
0x137d   :  { %v5319_v2 = vpop.f32.mrf.mxu0 }
0x137e   :  { %v4783_v14 = vmul.f32 -1.442695, %v4675_v54 }
0x1380   :  { %5719 = vpow2.f32 %v4783_v14 }
0x138d   :  { %v5720_v38 = vpop.eup %5719 }
0x138e   :  { %v4681_v25 = vadd.f32 1.0, %v5720_v38 }
0x1390   :  { %5721 = vrcp.f32 %v4681_v25 }
0x139d   :  { %v5722_v17 = vpop.eup %5721 }
0x139e   :  { %4685 = vst.msk [vmem:[#allocation18] sm:$0x1] %vm4684_vm0, %v5722_v17 }
0x139f   :  { %5898 = shalt.err (!%p5895_p2)
}
0x13a0   :  { %4697 = dma.vmem_to_hbm [thread:$0]  %s4695_s7, 16, %s6122_s30, [#allocation6]  }
0x13a1   :  { %5917 = dma.done.wait [#allocation6], 16  }
0x13a2   :  { %5918 = vsyncadd [#allocation6], 4294967280 }
0x13a3   :  { %4703 = vsyncpa [#allocation5], 1 }
0x13a4   :  { %4704 = vsyncpa [#allocation8], 1 }
0x13a5   :  { %4705 = vsyncpa [#allocation11], 1 }
0x13a6   :  { %4706 = vsyncpa [#allocation14], 1 }
0x13a7   :  { %4707 = vsyncpa [#allocation17], 1 }
0x13a8   :  { %4708 = vsyncpa [#allocation6], 1 }

</bundles_post_ra>
